<compile_context>
chip_gen: v7x
topology: tpu7x:2x2x1
jax: 0.10.0
libtpu: 0.0.40
codegen_flags: <defaults>
</compile_context>

<pallas_src>
import functools
import numpy as np

import jax
import jax.numpy as jnp
from jax.experimental import pallas as pl
from jax.experimental.pallas import tpu as pltpu


# ----------------------------------------------------------------------------
# JAX glue: window partition / reverse (pure reshapes/permutes)
# ----------------------------------------------------------------------------
def window_partition(x, ws):
    # x: (B, H, W, C) -> (num_windows*B, ws, ws, C), batch-major window order
    B, H, W, C = x.shape
    x = x.reshape(B, H // ws, ws, W // ws, ws, C)
    return x.transpose(0, 1, 3, 2, 4, 5).reshape(-1, ws, ws, C)


def window_reverse(windows, ws, H, W):
    # windows: (num_windows*B, ws, ws, C) -> (B, H, W, C)
    B = windows.shape[0] // (H * W // ws // ws)
    x = windows.reshape(B, H // ws, W // ws, ws, ws, -1)
    return x.transpose(0, 1, 3, 2, 4, 5).reshape(B, H, W, -1)


# ----------------------------------------------------------------------------
# Static (numpy) setup: relative position index, shifted-window attention mask
# ----------------------------------------------------------------------------
def relative_position_index(ws):
    coords_h = np.arange(ws)
    coords_w = np.arange(ws)
    coords = np.stack(np.meshgrid(coords_h, coords_w, indexing="ij"))   # (2, ws, ws)
    coords_flat = coords.reshape(2, -1)                                 # (2, N)
    rel = coords_flat[:, :, None] - coords_flat[:, None, :]             # (2, N, N)
    rel = rel.transpose(1, 2, 0).astype(np.int64)                       # (N, N, 2)
    rel[:, :, 0] += ws - 1
    rel[:, :, 1] += ws - 1
    rel[:, :, 0] *= 2 * ws - 1
    return rel.sum(-1)                                                  # (N, N)


def compute_attn_mask(H, W, ws, ss):
    img_mask = np.zeros((1, H, W, 1), np.float32)
    slices = (slice(0, -ws), slice(-ws, -ss), slice(-ss, None))
    cnt = 0
    for h in slices:
        for w in slices:
            img_mask[:, h, w, :] = cnt
            cnt += 1
    mw = img_mask.reshape(1, H // ws, ws, W // ws, ws, 1)
    mw = mw.transpose(0, 1, 3, 2, 4, 5).reshape(-1, ws * ws)            # (nW, N)
    am = mw[:, None, :] - mw[:, :, None]                                # (nW, N, N)
    am = np.where(am != 0, np.float32(-100.0), np.float32(0.0))
    return am.astype(np.float32)


# ----------------------------------------------------------------------------
# In-kernel exact GELU (erf via A&S 7.1.26; exp + approx reciprocal on the EUP)
# TODO(synk): switch to jax.lax.erf once erf_p has a guaranteed Mosaic lowering.
# ----------------------------------------------------------------------------
def _erf(x):
    a1, a2, a3, a4, a5 = 0.254829592, -0.284496736, 1.421413741, -1.453152027, 1.061405429
    p = 0.3275911
    sgn = jnp.where(x >= 0.0, 1.0, -1.0)
    ax = jnp.abs(x)
    t = pl.reciprocal(1.0 + p * ax, approx=True)            # EUP slot, frees VALU
    poly = ((((a5 * t + a4) * t + a3) * t + a2) * t + a1) * t
    return sgn * (1.0 - poly * jnp.exp(-ax * ax))


def _gelu_exact(x):
    return 0.5 * x * (1.0 + _erf(x * (1.0 / np.sqrt(2.0))))


# ----------------------------------------------------------------------------
# Attention cores (shared by the block kernel and the capability probe)
# ----------------------------------------------------------------------------
def _mha_heads_batched(q, k, v, rpb, mask, WG, N, nH, hd):
    """All heads of all windows in two dot_generals (batch dims = (window, head)).

    q/k/v: (WG*N, C) bf16. Returns the un-projected per-token context with heads
    concatenated along channels: (WG*N, nH*hd) f32.
    """
    f32, bf16 = jnp.float32, jnp.bfloat16
    q4 = q.reshape(WG, N, nH, hd)
    k4 = k.reshape(WG, N, nH, hd)
    v4 = v.reshape(WG, N, nH, hd)
    a = jnp.einsum('wnhd,wmhd->whnm', q4, k4, preferred_element_type=f32)
    a = a + rpb[None]                                        # (1, nH, N, N) rel-pos
    if mask is not None:
        a = a + mask[:, None]                                # (WG, 1, N, N) shift mask
    a = a - jnp.max(a, axis=-1, keepdims=True)
    e = jnp.exp(a)
    p = e * pl.reciprocal(jnp.sum(e, axis=-1, keepdims=True), approx=True)
    o = jnp.einsum('whnm,wmhd->wnhd', p.astype(bf16), v4, preferred_element_type=f32)
    return o.reshape(WG * N, nH * hd)


def _mha_per_head(q, k, v, rpb, mask, wproj_ref, WG, N, nH, hd):
    """Fallback path (identical math, proven lowering): per-head lane slices and a
    distributed per-head output projection. Only used when the head-batched
    dot_general path is rejected by the Mosaic lowering (see probe below)."""
    f32, bf16 = jnp.float32, jnp.bfloat16
    Mt, C = WG * N, nH * hd
    q3 = q.reshape(WG, N, C)
    k3 = k.reshape(WG, N, C)
    v3 = v.reshape(WG, N, C)
    out = jnp.zeros((Mt, C), f32)
    for h in range(nH):
        sl = slice(h * hd, (h + 1) * hd)
        a = jnp.einsum('wnd,wmd->wnm', q3[..., sl], k3[..., sl],
                       preferred_element_type=f32)
        a = a + rpb[h]
        if mask is not None:
            a = a + mask
        a = a - jnp.max(a, axis=-1, keepdims=True)
        e = jnp.exp(a)
        pr = e * pl.reciprocal(jnp.sum(e, axis=-1, keepdims=True), approx=True)
        oh = jnp.einsum('wnm,wmd->wnd', pr.astype(bf16), v3[..., sl],
                        preferred_element_type=f32)
        out = out + jnp.dot(oh.reshape(Mt, hd).astype(bf16),
                            wproj_ref[h * hd:(h + 1) * hd, :],
                            preferred_element_type=f32)
    return out


def _heads_batched_supported(WG, N, nH, hd):
    """Feature-detect the Mosaic lowering of the head-batched attention path
    (multi-batch-dim dot_general + lane-splitting/merging reshapes) with a tiny
    standalone pallas_call at the model's actual per-tile dims."""
    C, Mt = nH * hd, WG * N

    def probe(q_ref, k_ref, v_ref, o_ref):
        rpb = jnp.zeros((nH, N, N), jnp.float32)
        o_ref[...] = _mha_heads_batched(q_ref[...], k_ref[...], v_ref[...],
                                        rpb, None, WG, N, nH, hd)

    try:
        x = jnp.ones((Mt, C), jnp.bfloat16)
        out = pl.pallas_call(
            probe, out_shape=jax.ShapeDtypeStruct((Mt, C), jnp.float32))(x, x, x)
        jax.block_until_ready(out)
        return True
    except Exception:
        return False


# ----------------------------------------------------------------------------
# Fused Swin block kernel: one grid step == one window group of one batch element
# ----------------------------------------------------------------------------
def _swin_block_kernel(*refs, has_mask, batched_heads, window_group, win_tokens,
                       num_heads, head_dim, eps):
    if has_mask:
        (x_ref, g1_ref, b1_ref, wq_ref, bq_ref, wk_ref, bk_ref, wv_ref, bv_ref,
         rpb_ref, mask_ref, wproj_ref, bproj_ref, g2_ref, b2_ref,
         w1_ref, bfc1_ref, w2_ref, bfc2_ref, o_ref) = refs
    else:
        (x_ref, g1_ref, b1_ref, wq_ref, bq_ref, wk_ref, bk_ref, wv_ref, bv_ref,
         rpb_ref, wproj_ref, bproj_ref, g2_ref, b2_ref,
         w1_ref, bfc1_ref, w2_ref, bfc2_ref, o_ref) = refs
        mask_ref = None

    f32, bf16 = jnp.float32, jnp.bfloat16
    WG, N, nH, hd = window_group, win_tokens, num_heads, head_dim

    x = x_ref[0].astype(f32)                               # (Mt, C); bf16 at the boundary
    Mt, C = x.shape

    # ---- LayerNorm1 (token-wise, f32) ----
    mu = jnp.mean(x, axis=-1, keepdims=True)
    var = jnp.mean(jnp.square(x - mu), axis=-1, keepdims=True)
    xn = ((x - mu) * jax.lax.rsqrt(var + eps) * g1_ref[0] + b1_ref[0]).astype(bf16)

    # ---- Q/K/V: three tile-aligned (Mt,C)x(C,C) dots, bf16 operands, f32 accumulate.
    #      qk scale is pre-folded into Wq/bq; only bf16 q/k/v stay live. ----
    q = (jnp.dot(xn, wq_ref[...], preferred_element_type=f32) + bq_ref[0]).astype(bf16)
    k = (jnp.dot(xn, wk_ref[...], preferred_element_type=f32) + bk_ref[0]).astype(bf16)
    v = (jnp.dot(xn, wv_ref[...], preferred_element_type=f32) + bv_ref[0]).astype(bf16)

    rpb = rpb_ref[...]                                     # (nH, N, N) f32
    mask = mask_ref[...] if mask_ref is not None else None  # (WG, N, N) f32 or None

    if batched_heads:
        ctx = _mha_heads_batched(q, k, v, rpb, mask, WG, N, nH, hd)      # (Mt, C) f32
        attn = jnp.dot(ctx.astype(bf16), wproj_ref[...],                 # single proj
                       preferred_element_type=f32)
    else:
        attn = _mha_per_head(q, k, v, rpb, mask, wproj_ref, WG, N, nH, hd)

    # ---- residual 1 ----
    y = x + attn + bproj_ref[0]

    # ---- LayerNorm2 + MLP (fc1 -> exact GELU -> fc2) + residual 2 ----
    mu2 = jnp.mean(y, axis=-1, keepdims=True)
    var2 = jnp.mean(jnp.square(y - mu2), axis=-1, keepdims=True)
    yn = ((y - mu2) * jax.lax.rsqrt(var2 + eps) * g2_ref[0] + b2_ref[0]).astype(bf16)
    h1 = jnp.dot(yn, w1_ref[...], preferred_element_type=f32) + bfc1_ref[0]
    h1 = _gelu_exact(h1)
    mlp = jnp.dot(h1.astype(bf16), w2_ref[...], preferred_element_type=f32) + bfc2_ref[0]

    o_ref[0] = (y + mlp).astype(o_ref.dtype)


# ----------------------------------------------------------------------------
# Pallas-call wrapper: grid over (batch, window group), both parallel
# ----------------------------------------------------------------------------
def swin_block_fused(xw, p, num_heads, window_size, window_group, batched_heads):
    B, M, C = xw.shape                       # M = nW * N (windowed token order)
    N = window_size * window_size
    nW = M // N
    hd = C // num_heads
    Hd = p["w1"].shape[1]
    has_mask = "mask" in p

    WG = nW if window_group is None else window_group
    assert nW % WG == 0, "window_group must divide the number of windows"
    Mt = WG * N

    kernel = functools.partial(
        _swin_block_kernel, has_mask=has_mask, batched_heads=batched_heads,
        window_group=WG, win_tokens=N, num_heads=num_heads, head_dim=hd, eps=1e-5)

    rep2 = lambda b, w: (0, 0)
    rep3 = lambda b, w: (0, 0, 0)

    # TODO(synk): at production dims, mark the grid-invariant weight specs below with
    # pipeline_mode=pl.Buffered(1) so they are not double-buffered across grid steps.
    in_specs = [
        pl.BlockSpec((1, Mt, C), lambda b, w: (b, w, 0)),     # tokens (windowed, bf16)
        pl.BlockSpec((1, C), rep2),                           # ln1 gamma
        pl.BlockSpec((1, C), rep2),                           # ln1 beta
        pl.BlockSpec((C, C), rep2),                           # Wq (scale folded, bf16)
        pl.BlockSpec((1, C), rep2),                           # bq
        pl.BlockSpec((C, C), rep2),                           # Wk (bf16)
        pl.BlockSpec((1, C), rep2),                           # bk
        pl.BlockSpec((C, C), rep2),                           # Wv (bf16)
        pl.BlockSpec((1, C), rep2),                           # bv
        pl.BlockSpec((num_heads, N, N), rep3),                # rel-pos bias (factored)
    ]
    args = [xw, p["g1"], p["b1"], p["wq"], p["bq"], p["wk"], p["bk"],
            p["wv"], p["bv"], p["rpb"]]
    if has_mask:                                              # shift mask kept factored
        in_specs.append(pl.BlockSpec((WG, N, N), lambda b, w: (w, 0, 0)))
        args.append(p["mask"])
    in_specs += [
        pl.BlockSpec((C, C), rep2),                           # Wproj (bf16)
        pl.BlockSpec((1, C), rep2),                           # bproj
        pl.BlockSpec((1, C), rep2),                           # ln2 gamma
        pl.BlockSpec((1, C), rep2),                           # ln2 beta
        pl.BlockSpec((C, Hd), rep2),                          # fc1 W (bf16)
        pl.BlockSpec((1, Hd), rep2),                          # fc1 b
        pl.BlockSpec((Hd, C), rep2),                          # fc2 W (bf16)
        pl.BlockSpec((1, C), rep2),                           # fc2 b
    ]
    args += [p["wproj"], p["bproj"], p["g2"], p["b2"],
             p["w1"], p["bfc1"], p["w2"], p["bfc2"]]

    # TODO(synk): on v5e with C < 128 the output store is lane-masked; a wrapper-side
    # reshape to a 128-lane-dense slab + matching out_spec would remove that if needed.
    return pl.pallas_call(
        kernel,
        out_shape=jax.ShapeDtypeStruct((B, M, C), xw.dtype),
        grid=(B, nW // WG),
        in_specs=in_specs,
        out_specs=pl.BlockSpec((1, Mt, C), lambda b, w: (b, w, 0)),
        compiler_params=pltpu.CompilerParams(
            dimension_semantics=("parallel", "parallel"),
            vmem_limit_bytes=64 * 1024 * 1024),
    )(*args)


# ----------------------------------------------------------------------------
# Swin block / BasicLayer forward
# ----------------------------------------------------------------------------
def swin_block_forward(x, p, H, W, window_size, shift_size, num_heads,
                       window_group, batched_heads):
    B, L, C = x.shape
    ws = window_size

    x4 = x.reshape(B, H, W, C)
    if shift_size > 0:
        x4 = jnp.roll(x4, shift=(-shift_size, -shift_size), axis=(1, 2))
    # (B, nW*N, C): windows of one batch element are contiguous
    xw = window_partition(x4, ws).reshape(B, -1, C)

    yw = swin_block_fused(xw, p, num_heads, ws, window_group, batched_heads)

    yw = yw.reshape(-1, ws, ws, C)
    y4 = window_reverse(yw, ws, H, W)
    if shift_size > 0:
        y4 = jnp.roll(y4, shift=(shift_size, shift_size), axis=(1, 2))
    return y4.reshape(B, L, C)


def basic_layer_forward(x, blocks_params, H, W, window_size, num_heads,
                        window_group=None, batched_heads=True):
    orig_dtype = x.dtype
    x = x.astype(jnp.bfloat16)      # activations carried in bf16 between fused blocks
    for i, p in enumerate(blocks_params):
        shift = 0 if i % 2 == 0 else window_size // 2
        x = swin_block_forward(x, p, H, W, window_size, shift, num_heads,
                               window_group, batched_heads)
    # TODO(synk): downsample=None in this configuration, so no PatchMerging stage.
    return x.astype(orig_dtype)


# ----------------------------------------------------------------------------
# Deterministic parameter construction
# NOTE: weights are used as x @ W (in, out). When porting a PyTorch checkpoint,
# transpose nn.Linear's (out, in) weights first, and pre-multiply Wq / the Q third
# of the qkv bias by `scale`.
# ----------------------------------------------------------------------------
def init_block_params(key, dim, num_heads, window_size, hidden, H, W, shift):
    N = window_size * window_size
    hd = dim // num_heads
    scale = hd ** (-0.5)
    ks = jax.random.split(key, 5)
    wqkv = jax.random.normal(ks[0], (dim, 3 * dim), jnp.float32) * 0.02
    p = dict(
        g1=jnp.ones((1, dim), jnp.float32),
        b1=jnp.zeros((1, dim), jnp.float32),
        wq=(wqkv[:, 0 * dim:1 * dim] * scale).astype(jnp.bfloat16),  # scale folded in
        bq=jnp.zeros((1, dim), jnp.float32),                         # (zero bias * scale)
        wk=wqkv[:, 1 * dim:2 * dim].astype(jnp.bfloat16),
        bk=jnp.zeros((1, dim), jnp.float32),
        wv=wqkv[:, 2 * dim:3 * dim].astype(jnp.bfloat16),
        bv=jnp.zeros((1, dim), jnp.float32),
        wproj=(jax.random.normal(ks[1], (dim, dim)) * 0.02).astype(jnp.bfloat16),
        bproj=jnp.zeros((1, dim), jnp.float32),
        g2=jnp.ones((1, dim), jnp.float32),
        b2=jnp.zeros((1, dim), jnp.float32),
        w1=(jax.random.normal(ks[2], (dim, hidden)) * 0.02).astype(jnp.bfloat16),
        bfc1=jnp.zeros((1, hidden), jnp.float32),
        w2=(jax.random.normal(ks[3], (hidden, dim)) * 0.02).astype(jnp.bfloat16),
        bfc2=jnp.zeros((1, dim), jnp.float32),
    )
    table = (jax.random.normal(ks[4], ((2 * window_size - 1) ** 2, num_heads)) * 0.02
             ).astype(jnp.float32)
    rpi = relative_position_index(window_size)                        # (N, N) numpy
    rpb = table[rpi.reshape(-1)].reshape(N, N, num_heads).transpose(2, 0, 1)
    p["rpb"] = jnp.asarray(rpb, jnp.float32)                          # (nH, N, N)
    if shift > 0:
        p["mask"] = jnp.asarray(compute_attn_mask(H, W, window_size, shift))  # (nW,N,N)
    return p


# ----------------------------------------------------------------------------
# Main
# ----------------------------------------------------------------------------
if __name__ == "__main__":
    # BasicLayer config (small, consistent with the module's forward):
    dim = 32
    H, W = 8, 8
    depth = 2
    num_heads = 4
    window_size = 4
    mlp_ratio = 4.0
    hidden = int(dim * mlp_ratio)
    B = 2
    L = H * W
    window_group = 2          # 2 windows (32 tokens) per grid step -> exercises tiling

    key = jax.random.PRNGKey(0)
    kx, kp = jax.random.split(key)
    x = jax.random.normal(kx, (B, L, dim), dtype=jnp.float32)

    block_keys = jax.random.split(kp, depth)
    blocks_params = []
    for i in range(depth):
        shift = 0 if i % 2 == 0 else window_size // 2
        blocks_params.append(
            init_block_params(block_keys[i], dim, num_heads, window_size,
                              hidden, H, W, shift))

    N = window_size * window_size
    hd = dim // num_heads
    batched = _heads_batched_supported(window_group, N, num_heads, hd)

    fwd = jax.jit(functools.partial(
        basic_layer_forward, H=H, W=W, window_size=window_size,
        num_heads=num_heads, window_group=window_group, batched_heads=batched))
    out = jax.block_until_ready(fwd(x, blocks_params))
    assert out.shape == (B, L, dim) and bool(jnp.all(jnp.isfinite(out)))
    print("KERNEL_OK")
</pallas_src>

<mosaic_0001>
module attributes {stable_mosaic.version = 11 : i64} {
  func.func @_swin_block_kernel(%arg0: i32, %arg1: i32, %arg2: memref<1x32x32xbf16, #tpu.memory_space<vmem>>, %arg3: memref<1x32xf32, #tpu.memory_space<vmem>>, %arg4: memref<1x32xf32, #tpu.memory_space<vmem>>, %arg5: memref<32x32xbf16, #tpu.memory_space<vmem>>, %arg6: memref<1x32xf32, #tpu.memory_space<vmem>>, %arg7: memref<32x32xbf16, #tpu.memory_space<vmem>>, %arg8: memref<1x32xf32, #tpu.memory_space<vmem>>, %arg9: memref<32x32xbf16, #tpu.memory_space<vmem>>, %arg10: memref<1x32xf32, #tpu.memory_space<vmem>>, %arg11: memref<4x16x16xf32, #tpu.memory_space<vmem>>, %arg12: memref<32x32xbf16, #tpu.memory_space<vmem>>, %arg13: memref<1x32xf32, #tpu.memory_space<vmem>>, %arg14: memref<1x32xf32, #tpu.memory_space<vmem>>, %arg15: memref<1x32xf32, #tpu.memory_space<vmem>>, %arg16: memref<32x128xbf16, #tpu.memory_space<vmem>>, %arg17: memref<1x128xf32, #tpu.memory_space<vmem>>, %arg18: memref<128x32xbf16, #tpu.memory_space<vmem>>, %arg19: memref<1x32xf32, #tpu.memory_space<vmem>>, %arg20: memref<1x32x32xbf16, #tpu.memory_space<vmem>>) attributes {dimension_semantics = [#tpu.dimension_semantics<parallel>, #tpu.dimension_semantics<parallel>], iteration_bounds = array<i64: 2, 2>, scalar_prefetch = 0 : i64, scratch_operands = 0 : i64, tpu.core_type = #tpu.core_type<tc>, window_params = [{transform_indices = @transform_0, window_bounds = array<i64: 1, 32, 32>}, {pipeline_mode = #tpu.pipeline_mode<synchronous>, transform_indices = @transform_1, window_bounds = array<i64: 1, 32>}, {pipeline_mode = #tpu.pipeline_mode<synchronous>, transform_indices = @transform_2, window_bounds = array<i64: 1, 32>}, {pipeline_mode = #tpu.pipeline_mode<synchronous>, transform_indices = @transform_3, window_bounds = array<i64: 32, 32>}, {pipeline_mode = #tpu.pipeline_mode<synchronous>, transform_indices = @transform_4, window_bounds = array<i64: 1, 32>}, {pipeline_mode = #tpu.pipeline_mode<synchronous>, transform_indices = @transform_5, window_bounds = array<i64: 32, 32>}, {pipeline_mode = #tpu.pipeline_mode<synchronous>, transform_indices = @transform_6, window_bounds = array<i64: 1, 32>}, {pipeline_mode = #tpu.pipeline_mode<synchronous>, transform_indices = @transform_7, window_bounds = array<i64: 32, 32>}, {pipeline_mode = #tpu.pipeline_mode<synchronous>, transform_indices = @transform_8, window_bounds = array<i64: 1, 32>}, {pipeline_mode = #tpu.pipeline_mode<synchronous>, transform_indices = @transform_9, window_bounds = array<i64: 4, 16, 16>}, {pipeline_mode = #tpu.pipeline_mode<synchronous>, transform_indices = @transform_10, window_bounds = array<i64: 32, 32>}, {pipeline_mode = #tpu.pipeline_mode<synchronous>, transform_indices = @transform_11, window_bounds = array<i64: 1, 32>}, {pipeline_mode = #tpu.pipeline_mode<synchronous>, transform_indices = @transform_12, window_bounds = array<i64: 1, 32>}, {pipeline_mode = #tpu.pipeline_mode<synchronous>, transform_indices = @transform_13, window_bounds = array<i64: 1, 32>}, {pipeline_mode = #tpu.pipeline_mode<synchronous>, transform_indices = @transform_14, window_bounds = array<i64: 32, 128>}, {pipeline_mode = #tpu.pipeline_mode<synchronous>, transform_indices = @transform_15, window_bounds = array<i64: 1, 128>}, {pipeline_mode = #tpu.pipeline_mode<synchronous>, transform_indices = @transform_16, window_bounds = array<i64: 128, 32>}, {pipeline_mode = #tpu.pipeline_mode<synchronous>, transform_indices = @transform_17, window_bounds = array<i64: 1, 32>}, {transform_indices = @transform_18, window_bounds = array<i64: 1, 32, 32>}]} {
    %c0 = arith.constant 0 : index
    %c0_0 = arith.constant 0 : index
    %c0_1 = arith.constant 0 : index
    %0 = vector.load %arg2[%c0, %c0_0, %c0_1] : memref<1x32x32xbf16, #tpu.memory_space<vmem>>, vector<1x32x32xbf16>
    %1 = vector.shape_cast %0 : vector<1x32x32xbf16> to vector<32x32xbf16>
    %2 = arith.extf %1 : vector<32x32xbf16> to vector<32x32xf32>
    %cst = arith.constant dense<0.000000e+00> : vector<32xf32>
    %3 = vector.multi_reduction <add>, %2, %cst [1] : vector<32x32xf32> to vector<32xf32>
    %4 = vector.shape_cast %3 : vector<32xf32> to vector<32x1xf32>
    %cst_2 = arith.constant 3.200000e+01 : f32
    %5 = vector.broadcast %cst_2 : f32 to vector<32x1xf32>
    %6 = arith.divf %4, %5 : vector<32x1xf32>
    %7 = vector.broadcast %6 : vector<32x1xf32> to vector<32x32xf32>
    %8 = arith.subf %2, %7 : vector<32x32xf32>
    %9 = arith.mulf %8, %8 : vector<32x32xf32>
    %cst_3 = arith.constant dense<0.000000e+00> : vector<32xf32>
    %10 = vector.multi_reduction <add>, %9, %cst_3 [1] : vector<32x32xf32> to vector<32xf32>
    %11 = vector.shape_cast %10 : vector<32xf32> to vector<32x1xf32>
    %cst_4 = arith.constant 3.200000e+01 : f32
    %12 = vector.broadcast %cst_4 : f32 to vector<32x1xf32>
    %13 = arith.divf %11, %12 : vector<32x1xf32>
    %14 = vector.broadcast %6 : vector<32x1xf32> to vector<32x32xf32>
    %15 = arith.subf %2, %14 : vector<32x32xf32>
    %cst_5 = arith.constant 9.99999974E-6 : f32
    %16 = vector.broadcast %cst_5 : f32 to vector<32x1xf32>
    %17 = arith.addf %13, %16 : vector<32x1xf32>
    %18 = math.rsqrt %17 : vector<32x1xf32>
    %19 = vector.broadcast %18 : vector<32x1xf32> to vector<32x32xf32>
    %20 = arith.mulf %15, %19 : vector<32x32xf32>
    %c0_6 = arith.constant 0 : index
    %c0_7 = arith.constant 0 : index
    %21 = vector.load %arg3[%c0_6, %c0_7] : memref<1x32xf32, #tpu.memory_space<vmem>>, vector<1x32xf32>
    %22 = vector.shape_cast %21 : vector<1x32xf32> to vector<32xf32>
    %23 = vector.shape_cast %22 : vector<32xf32> to vector<1x32xf32>
    %24 = vector.broadcast %23 : vector<1x32xf32> to vector<32x32xf32>
    %25 = arith.mulf %20, %24 : vector<32x32xf32>
    %c0_8 = arith.constant 0 : index
    %c0_9 = arith.constant 0 : index
    %26 = vector.load %arg4[%c0_8, %c0_9] : memref<1x32xf32, #tpu.memory_space<vmem>>, vector<1x32xf32>
    %27 = vector.shape_cast %26 : vector<1x32xf32> to vector<32xf32>
    %28 = vector.shape_cast %27 : vector<32xf32> to vector<1x32xf32>
    %29 = vector.broadcast %28 : vector<1x32xf32> to vector<32x32xf32>
    %30 = arith.addf %25, %29 : vector<32x32xf32>
    %31 = arith.truncf %30 : vector<32x32xf32> to vector<32x32xbf16>
    %c0_10 = arith.constant 0 : index
    %c0_11 = arith.constant 0 : index
    %32 = vector.load %arg5[%c0_10, %c0_11] : memref<32x32xbf16, #tpu.memory_space<vmem>>, vector<32x32xbf16>
    %cst_12 = arith.constant dense<0.000000e+00> : vector<32x32xf32>
    %33 = tpu.matmul %31, %32, %cst_12 {dimension_numbers = #tpu.dot_dimension_numbers<[1], [0], [0], [1], [0, 0, 1, 1], [], []>} : vector<32x32xbf16>, vector<32x32xbf16>, vector<32x32xf32> -> vector<32x32xf32>
    %c0_13 = arith.constant 0 : index
    %c0_14 = arith.constant 0 : index
    %34 = vector.load %arg6[%c0_13, %c0_14] : memref<1x32xf32, #tpu.memory_space<vmem>>, vector<1x32xf32>
    %35 = vector.shape_cast %34 : vector<1x32xf32> to vector<32xf32>
    %36 = vector.shape_cast %35 : vector<32xf32> to vector<1x32xf32>
    %37 = vector.broadcast %36 : vector<1x32xf32> to vector<32x32xf32>
    %38 = arith.addf %33, %37 : vector<32x32xf32>
    %39 = arith.truncf %38 : vector<32x32xf32> to vector<32x32xbf16>
    %c0_15 = arith.constant 0 : index
    %c0_16 = arith.constant 0 : index
    %40 = vector.load %arg7[%c0_15, %c0_16] : memref<32x32xbf16, #tpu.memory_space<vmem>>, vector<32x32xbf16>
    %cst_17 = arith.constant dense<0.000000e+00> : vector<32x32xf32>
    %41 = tpu.matmul %31, %40, %cst_17 {dimension_numbers = #tpu.dot_dimension_numbers<[1], [0], [0], [1], [0, 0, 1, 1], [], []>} : vector<32x32xbf16>, vector<32x32xbf16>, vector<32x32xf32> -> vector<32x32xf32>
    %c0_18 = arith.constant 0 : index
    %c0_19 = arith.constant 0 : index
    %42 = vector.load %arg8[%c0_18, %c0_19] : memref<1x32xf32, #tpu.memory_space<vmem>>, vector<1x32xf32>
    %43 = vector.shape_cast %42 : vector<1x32xf32> to vector<32xf32>
    %44 = vector.shape_cast %43 : vector<32xf32> to vector<1x32xf32>
    %45 = vector.broadcast %44 : vector<1x32xf32> to vector<32x32xf32>
    %46 = arith.addf %41, %45 : vector<32x32xf32>
    %47 = arith.truncf %46 : vector<32x32xf32> to vector<32x32xbf16>
    %c0_20 = arith.constant 0 : index
    %c0_21 = arith.constant 0 : index
    %48 = vector.load %arg9[%c0_20, %c0_21] : memref<32x32xbf16, #tpu.memory_space<vmem>>, vector<32x32xbf16>
    %cst_22 = arith.constant dense<0.000000e+00> : vector<32x32xf32>
    %49 = tpu.matmul %31, %48, %cst_22 {dimension_numbers = #tpu.dot_dimension_numbers<[1], [0], [0], [1], [0, 0, 1, 1], [], []>} : vector<32x32xbf16>, vector<32x32xbf16>, vector<32x32xf32> -> vector<32x32xf32>
    %c0_23 = arith.constant 0 : index
    %c0_24 = arith.constant 0 : index
    %50 = vector.load %arg10[%c0_23, %c0_24] : memref<1x32xf32, #tpu.memory_space<vmem>>, vector<1x32xf32>
    %51 = vector.shape_cast %50 : vector<1x32xf32> to vector<32xf32>
    %52 = vector.shape_cast %51 : vector<32xf32> to vector<1x32xf32>
    %53 = vector.broadcast %52 : vector<1x32xf32> to vector<32x32xf32>
    %54 = arith.addf %49, %53 : vector<32x32xf32>
    %55 = arith.truncf %54 : vector<32x32xf32> to vector<32x32xbf16>
    %c0_25 = arith.constant 0 : index
    %c0_26 = arith.constant 0 : index
    %c0_27 = arith.constant 0 : index
    %56 = vector.load %arg11[%c0_25, %c0_26, %c0_27] : memref<4x16x16xf32, #tpu.memory_space<vmem>>, vector<4x16x16xf32>
    %57 = vector.shape_cast %39 : vector<32x32xbf16> to vector<2x16x32xbf16>
    %58 = vector.shape_cast %47 : vector<32x32xbf16> to vector<2x16x32xbf16>
    %59 = vector.shape_cast %55 : vector<32x32xbf16> to vector<2x16x32xbf16>
    %cst_28 = arith.constant 0.000000e+00 : f32
    %60 = vector.broadcast %cst_28 : f32 to vector<32x32xf32>
    %61 = vector.extract_strided_slice %57 {offsets = [0, 0, 0], sizes = [2, 16, 8], strides = [1, 1, 1]} : vector<2x16x32xbf16> to vector<2x16x8xbf16>
    %62 = vector.extract_strided_slice %58 {offsets = [0, 0, 0], sizes = [2, 16, 8], strides = [1, 1, 1]} : vector<2x16x32xbf16> to vector<2x16x8xbf16>
    "tpu.trace_start"() <{level = 10 : i32, message = "wnd,wmd->wnm"}> : () -> ()
    %cst_29 = arith.constant dense<0.000000e+00> : vector<2x16x16xf32>
    %63 = tpu.matmul %61, %62, %cst_29 {dimension_numbers = #tpu.dot_dimension_numbers<[2], [2], [1], [1], [0, 0, 0, 1, 1, 1], [0], [0]>} : vector<2x16x8xbf16>, vector<2x16x8xbf16>, vector<2x16x16xf32> -> vector<2x16x16xf32>
    "tpu.trace_stop"() : () -> ()
    %64 = vector.extract_strided_slice %56 {offsets = [0, 0, 0], sizes = [1, 16, 16], strides = [1, 1, 1]} : vector<4x16x16xf32> to vector<1x16x16xf32>
    %65 = vector.shape_cast %64 : vector<1x16x16xf32> to vector<16x16xf32>
    %66 = vector.shape_cast %65 : vector<16x16xf32> to vector<1x16x16xf32>
    %67 = vector.broadcast %66 : vector<1x16x16xf32> to vector<2x16x16xf32>
    %68 = arith.addf %63, %67 : vector<2x16x16xf32>
    %cst_30 = arith.constant dense<0xFF800000> : vector<2x16xf32>
    %69 = vector.multi_reduction <maximumf>, %68, %cst_30 [2] : vector<2x16x16xf32> to vector<2x16xf32>
    %70 = vector.shape_cast %69 : vector<2x16xf32> to vector<2x16x1xf32>
    %71 = vector.broadcast %70 : vector<2x16x1xf32> to vector<2x16x16xf32>
    %72 = arith.subf %68, %71 : vector<2x16x16xf32>
    %73 = math.exp %72 : vector<2x16x16xf32>
    %cst_31 = arith.constant dense<0.000000e+00> : vector<2x16xf32>
    %74 = vector.multi_reduction <add>, %73, %cst_31 [2] : vector<2x16x16xf32> to vector<2x16xf32>
    %75 = vector.shape_cast %74 : vector<2x16xf32> to vector<2x16x1xf32>
    %76 = tpu.reciprocal %75 {approx = true} : vector<2x16x1xf32> -> vector<2x16x1xf32>
    %77 = vector.broadcast %76 : vector<2x16x1xf32> to vector<2x16x16xf32>
    %78 = arith.mulf %73, %77 : vector<2x16x16xf32>
    %79 = arith.truncf %78 : vector<2x16x16xf32> to vector<2x16x16xbf16>
    %80 = vector.extract_strided_slice %59 {offsets = [0, 0, 0], sizes = [2, 16, 8], strides = [1, 1, 1]} : vector<2x16x32xbf16> to vector<2x16x8xbf16>
    "tpu.trace_start"() <{level = 10 : i32, message = "wnm,wmd->wnd"}> : () -> ()
    %cst_32 = arith.constant dense<0.000000e+00> : vector<2x16x8xf32>
    %81 = tpu.matmul %79, %80, %cst_32 {dimension_numbers = #tpu.dot_dimension_numbers<[2], [1], [1], [2], [0, 0, 0, 1, 1, 2], [0], [0]>} : vector<2x16x16xbf16>, vector<2x16x8xbf16>, vector<2x16x8xf32> -> vector<2x16x8xf32>
    "tpu.trace_stop"() : () -> ()
    %82 = vector.shape_cast %81 : vector<2x16x8xf32> to vector<32x8xf32>
    %83 = arith.truncf %82 : vector<32x8xf32> to vector<32x8xbf16>
    %c0_33 = arith.constant 0 : index
    %c0_34 = arith.constant 0 : index
    %84 = vector.load %arg12[%c0_33, %c0_34] : memref<32x32xbf16, #tpu.memory_space<vmem>>, vector<8x32xbf16>
    %cst_35 = arith.constant dense<0.000000e+00> : vector<32x32xf32>
    %85 = tpu.matmul %83, %84, %cst_35 {dimension_numbers = #tpu.dot_dimension_numbers<[1], [0], [0], [1], [0, 0, 1, 1], [], []>} : vector<32x8xbf16>, vector<8x32xbf16>, vector<32x32xf32> -> vector<32x32xf32>
    %86 = arith.addf %60, %85 : vector<32x32xf32>
    %87 = vector.extract_strided_slice %57 {offsets = [0, 0, 8], sizes = [2, 16, 8], strides = [1, 1, 1]} : vector<2x16x32xbf16> to vector<2x16x8xbf16>
    %88 = vector.extract_strided_slice %58 {offsets = [0, 0, 8], sizes = [2, 16, 8], strides = [1, 1, 1]} : vector<2x16x32xbf16> to vector<2x16x8xbf16>
    "tpu.trace_start"() <{level = 10 : i32, message = "wnd,wmd->wnm"}> : () -> ()
    %cst_36 = arith.constant dense<0.000000e+00> : vector<2x16x16xf32>
    %89 = tpu.matmul %87, %88, %cst_36 {dimension_numbers = #tpu.dot_dimension_numbers<[2], [2], [1], [1], [0, 0, 0, 1, 1, 1], [0], [0]>} : vector<2x16x8xbf16>, vector<2x16x8xbf16>, vector<2x16x16xf32> -> vector<2x16x16xf32>
    "tpu.trace_stop"() : () -> ()
    %90 = vector.extract_strided_slice %56 {offsets = [1, 0, 0], sizes = [1, 16, 16], strides = [1, 1, 1]} : vector<4x16x16xf32> to vector<1x16x16xf32>
    %91 = vector.shape_cast %90 : vector<1x16x16xf32> to vector<16x16xf32>
    %92 = vector.shape_cast %91 : vector<16x16xf32> to vector<1x16x16xf32>
    %93 = vector.broadcast %92 : vector<1x16x16xf32> to vector<2x16x16xf32>
    %94 = arith.addf %89, %93 : vector<2x16x16xf32>
    %cst_37 = arith.constant dense<0xFF800000> : vector<2x16xf32>
    %95 = vector.multi_reduction <maximumf>, %94, %cst_37 [2] : vector<2x16x16xf32> to vector<2x16xf32>
    %96 = vector.shape_cast %95 : vector<2x16xf32> to vector<2x16x1xf32>
    %97 = vector.broadcast %96 : vector<2x16x1xf32> to vector<2x16x16xf32>
    %98 = arith.subf %94, %97 : vector<2x16x16xf32>
    %99 = math.exp %98 : vector<2x16x16xf32>
    %cst_38 = arith.constant dense<0.000000e+00> : vector<2x16xf32>
    %100 = vector.multi_reduction <add>, %99, %cst_38 [2] : vector<2x16x16xf32> to vector<2x16xf32>
    %101 = vector.shape_cast %100 : vector<2x16xf32> to vector<2x16x1xf32>
    %102 = tpu.reciprocal %101 {approx = true} : vector<2x16x1xf32> -> vector<2x16x1xf32>
    %103 = vector.broadcast %102 : vector<2x16x1xf32> to vector<2x16x16xf32>
    %104 = arith.mulf %99, %103 : vector<2x16x16xf32>
    %105 = arith.truncf %104 : vector<2x16x16xf32> to vector<2x16x16xbf16>
    %106 = vector.extract_strided_slice %59 {offsets = [0, 0, 8], sizes = [2, 16, 8], strides = [1, 1, 1]} : vector<2x16x32xbf16> to vector<2x16x8xbf16>
    "tpu.trace_start"() <{level = 10 : i32, message = "wnm,wmd->wnd"}> : () -> ()
    %cst_39 = arith.constant dense<0.000000e+00> : vector<2x16x8xf32>
    %107 = tpu.matmul %105, %106, %cst_39 {dimension_numbers = #tpu.dot_dimension_numbers<[2], [1], [1], [2], [0, 0, 0, 1, 1, 2], [0], [0]>} : vector<2x16x16xbf16>, vector<2x16x8xbf16>, vector<2x16x8xf32> -> vector<2x16x8xf32>
    "tpu.trace_stop"() : () -> ()
    %108 = vector.shape_cast %107 : vector<2x16x8xf32> to vector<32x8xf32>
    %109 = arith.truncf %108 : vector<32x8xf32> to vector<32x8xbf16>
    %c8 = arith.constant 8 : index
    %c0_40 = arith.constant 0 : index
    %110 = vector.load %arg12[%c8, %c0_40] : memref<32x32xbf16, #tpu.memory_space<vmem>>, vector<8x32xbf16>
    %cst_41 = arith.constant dense<0.000000e+00> : vector<32x32xf32>
    %111 = tpu.matmul %109, %110, %cst_41 {dimension_numbers = #tpu.dot_dimension_numbers<[1], [0], [0], [1], [0, 0, 1, 1], [], []>} : vector<32x8xbf16>, vector<8x32xbf16>, vector<32x32xf32> -> vector<32x32xf32>
    %112 = arith.addf %86, %111 : vector<32x32xf32>
    %113 = vector.extract_strided_slice %57 {offsets = [0, 0, 16], sizes = [2, 16, 8], strides = [1, 1, 1]} : vector<2x16x32xbf16> to vector<2x16x8xbf16>
    %114 = vector.extract_strided_slice %58 {offsets = [0, 0, 16], sizes = [2, 16, 8], strides = [1, 1, 1]} : vector<2x16x32xbf16> to vector<2x16x8xbf16>
    "tpu.trace_start"() <{level = 10 : i32, message = "wnd,wmd->wnm"}> : () -> ()
    %cst_42 = arith.constant dense<0.000000e+00> : vector<2x16x16xf32>
    %115 = tpu.matmul %113, %114, %cst_42 {dimension_numbers = #tpu.dot_dimension_numbers<[2], [2], [1], [1], [0, 0, 0, 1, 1, 1], [0], [0]>} : vector<2x16x8xbf16>, vector<2x16x8xbf16>, vector<2x16x16xf32> -> vector<2x16x16xf32>
    "tpu.trace_stop"() : () -> ()
    %116 = vector.extract_strided_slice %56 {offsets = [2, 0, 0], sizes = [1, 16, 16], strides = [1, 1, 1]} : vector<4x16x16xf32> to vector<1x16x16xf32>
    %117 = vector.shape_cast %116 : vector<1x16x16xf32> to vector<16x16xf32>
    %118 = vector.shape_cast %117 : vector<16x16xf32> to vector<1x16x16xf32>
    %119 = vector.broadcast %118 : vector<1x16x16xf32> to vector<2x16x16xf32>
    %120 = arith.addf %115, %119 : vector<2x16x16xf32>
    %cst_43 = arith.constant dense<0xFF800000> : vector<2x16xf32>
    %121 = vector.multi_reduction <maximumf>, %120, %cst_43 [2] : vector<2x16x16xf32> to vector<2x16xf32>
    %122 = vector.shape_cast %121 : vector<2x16xf32> to vector<2x16x1xf32>
    %123 = vector.broadcast %122 : vector<2x16x1xf32> to vector<2x16x16xf32>
    %124 = arith.subf %120, %123 : vector<2x16x16xf32>
    %125 = math.exp %124 : vector<2x16x16xf32>
    %cst_44 = arith.constant dense<0.000000e+00> : vector<2x16xf32>
    %126 = vector.multi_reduction <add>, %125, %cst_44 [2] : vector<2x16x16xf32> to vector<2x16xf32>
    %127 = vector.shape_cast %126 : vector<2x16xf32> to vector<2x16x1xf32>
    %128 = tpu.reciprocal %127 {approx = true} : vector<2x16x1xf32> -> vector<2x16x1xf32>
    %129 = vector.broadcast %128 : vector<2x16x1xf32> to vector<2x16x16xf32>
    %130 = arith.mulf %125, %129 : vector<2x16x16xf32>
    %131 = arith.truncf %130 : vector<2x16x16xf32> to vector<2x16x16xbf16>
    %132 = vector.extract_strided_slice %59 {offsets = [0, 0, 16], sizes = [2, 16, 8], strides = [1, 1, 1]} : vector<2x16x32xbf16> to vector<2x16x8xbf16>
    "tpu.trace_start"() <{level = 10 : i32, message = "wnm,wmd->wnd"}> : () -> ()
    %cst_45 = arith.constant dense<0.000000e+00> : vector<2x16x8xf32>
    %133 = tpu.matmul %131, %132, %cst_45 {dimension_numbers = #tpu.dot_dimension_numbers<[2], [1], [1], [2], [0, 0, 0, 1, 1, 2], [0], [0]>} : vector<2x16x16xbf16>, vector<2x16x8xbf16>, vector<2x16x8xf32> -> vector<2x16x8xf32>
    "tpu.trace_stop"() : () -> ()
    %134 = vector.shape_cast %133 : vector<2x16x8xf32> to vector<32x8xf32>
    %135 = arith.truncf %134 : vector<32x8xf32> to vector<32x8xbf16>
    %c16 = arith.constant 16 : index
    %c0_46 = arith.constant 0 : index
    %136 = vector.load %arg12[%c16, %c0_46] : memref<32x32xbf16, #tpu.memory_space<vmem>>, vector<8x32xbf16>
    %cst_47 = arith.constant dense<0.000000e+00> : vector<32x32xf32>
    %137 = tpu.matmul %135, %136, %cst_47 {dimension_numbers = #tpu.dot_dimension_numbers<[1], [0], [0], [1], [0, 0, 1, 1], [], []>} : vector<32x8xbf16>, vector<8x32xbf16>, vector<32x32xf32> -> vector<32x32xf32>
    %138 = arith.addf %112, %137 : vector<32x32xf32>
    %139 = vector.extract_strided_slice %57 {offsets = [0, 0, 24], sizes = [2, 16, 8], strides = [1, 1, 1]} : vector<2x16x32xbf16> to vector<2x16x8xbf16>
    %140 = vector.extract_strided_slice %58 {offsets = [0, 0, 24], sizes = [2, 16, 8], strides = [1, 1, 1]} : vector<2x16x32xbf16> to vector<2x16x8xbf16>
    "tpu.trace_start"() <{level = 10 : i32, message = "wnd,wmd->wnm"}> : () -> ()
    %cst_48 = arith.constant dense<0.000000e+00> : vector<2x16x16xf32>
    %141 = tpu.matmul %139, %140, %cst_48 {dimension_numbers = #tpu.dot_dimension_numbers<[2], [2], [1], [1], [0, 0, 0, 1, 1, 1], [0], [0]>} : vector<2x16x8xbf16>, vector<2x16x8xbf16>, vector<2x16x16xf32> -> vector<2x16x16xf32>
    "tpu.trace_stop"() : () -> ()
    %142 = vector.extract_strided_slice %56 {offsets = [3, 0, 0], sizes = [1, 16, 16], strides = [1, 1, 1]} : vector<4x16x16xf32> to vector<1x16x16xf32>
    %143 = vector.shape_cast %142 : vector<1x16x16xf32> to vector<16x16xf32>
    %144 = vector.shape_cast %143 : vector<16x16xf32> to vector<1x16x16xf32>
    %145 = vector.broadcast %144 : vector<1x16x16xf32> to vector<2x16x16xf32>
    %146 = arith.addf %141, %145 : vector<2x16x16xf32>
    %cst_49 = arith.constant dense<0xFF800000> : vector<2x16xf32>
    %147 = vector.multi_reduction <maximumf>, %146, %cst_49 [2] : vector<2x16x16xf32> to vector<2x16xf32>
    %148 = vector.shape_cast %147 : vector<2x16xf32> to vector<2x16x1xf32>
    %149 = vector.broadcast %148 : vector<2x16x1xf32> to vector<2x16x16xf32>
    %150 = arith.subf %146, %149 : vector<2x16x16xf32>
    %151 = math.exp %150 : vector<2x16x16xf32>
    %cst_50 = arith.constant dense<0.000000e+00> : vector<2x16xf32>
    %152 = vector.multi_reduction <add>, %151, %cst_50 [2] : vector<2x16x16xf32> to vector<2x16xf32>
    %153 = vector.shape_cast %152 : vector<2x16xf32> to vector<2x16x1xf32>
    %154 = tpu.reciprocal %153 {approx = true} : vector<2x16x1xf32> -> vector<2x16x1xf32>
    %155 = vector.broadcast %154 : vector<2x16x1xf32> to vector<2x16x16xf32>
    %156 = arith.mulf %151, %155 : vector<2x16x16xf32>
    %157 = arith.truncf %156 : vector<2x16x16xf32> to vector<2x16x16xbf16>
    %158 = vector.extract_strided_slice %59 {offsets = [0, 0, 24], sizes = [2, 16, 8], strides = [1, 1, 1]} : vector<2x16x32xbf16> to vector<2x16x8xbf16>
    "tpu.trace_start"() <{level = 10 : i32, message = "wnm,wmd->wnd"}> : () -> ()
    %cst_51 = arith.constant dense<0.000000e+00> : vector<2x16x8xf32>
    %159 = tpu.matmul %157, %158, %cst_51 {dimension_numbers = #tpu.dot_dimension_numbers<[2], [1], [1], [2], [0, 0, 0, 1, 1, 2], [0], [0]>} : vector<2x16x16xbf16>, vector<2x16x8xbf16>, vector<2x16x8xf32> -> vector<2x16x8xf32>
    "tpu.trace_stop"() : () -> ()
    %160 = vector.shape_cast %159 : vector<2x16x8xf32> to vector<32x8xf32>
    %161 = arith.truncf %160 : vector<32x8xf32> to vector<32x8xbf16>
    %c24 = arith.constant 24 : index
    %c0_52 = arith.constant 0 : index
    %162 = vector.load %arg12[%c24, %c0_52] : memref<32x32xbf16, #tpu.memory_space<vmem>>, vector<8x32xbf16>
    %cst_53 = arith.constant dense<0.000000e+00> : vector<32x32xf32>
    %163 = tpu.matmul %161, %162, %cst_53 {dimension_numbers = #tpu.dot_dimension_numbers<[1], [0], [0], [1], [0, 0, 1, 1], [], []>} : vector<32x8xbf16>, vector<8x32xbf16>, vector<32x32xf32> -> vector<32x32xf32>
    %164 = arith.addf %138, %163 : vector<32x32xf32>
    %165 = arith.addf %2, %164 : vector<32x32xf32>
    %c0_54 = arith.constant 0 : index
    %c0_55 = arith.constant 0 : index
    %166 = vector.load %arg13[%c0_54, %c0_55] : memref<1x32xf32, #tpu.memory_space<vmem>>, vector<1x32xf32>
    %167 = vector.shape_cast %166 : vector<1x32xf32> to vector<32xf32>
    %168 = vector.shape_cast %167 : vector<32xf32> to vector<1x32xf32>
    %169 = vector.broadcast %168 : vector<1x32xf32> to vector<32x32xf32>
    %170 = arith.addf %165, %169 : vector<32x32xf32>
    %cst_56 = arith.constant dense<0.000000e+00> : vector<32xf32>
    %171 = vector.multi_reduction <add>, %170, %cst_56 [1] : vector<32x32xf32> to vector<32xf32>
    %172 = vector.shape_cast %171 : vector<32xf32> to vector<32x1xf32>
    %cst_57 = arith.constant 3.200000e+01 : f32
    %173 = vector.broadcast %cst_57 : f32 to vector<32x1xf32>
    %174 = arith.divf %172, %173 : vector<32x1xf32>
    %175 = vector.broadcast %174 : vector<32x1xf32> to vector<32x32xf32>
    %176 = arith.subf %170, %175 : vector<32x32xf32>
    %177 = arith.mulf %176, %176 : vector<32x32xf32>
    %cst_58 = arith.constant dense<0.000000e+00> : vector<32xf32>
    %178 = vector.multi_reduction <add>, %177, %cst_58 [1] : vector<32x32xf32> to vector<32xf32>
    %179 = vector.shape_cast %178 : vector<32xf32> to vector<32x1xf32>
    %cst_59 = arith.constant 3.200000e+01 : f32
    %180 = vector.broadcast %cst_59 : f32 to vector<32x1xf32>
    %181 = arith.divf %179, %180 : vector<32x1xf32>
    %182 = vector.broadcast %174 : vector<32x1xf32> to vector<32x32xf32>
    %183 = arith.subf %170, %182 : vector<32x32xf32>
    %cst_60 = arith.constant 9.99999974E-6 : f32
    %184 = vector.broadcast %cst_60 : f32 to vector<32x1xf32>
    %185 = arith.addf %181, %184 : vector<32x1xf32>
    %186 = math.rsqrt %185 : vector<32x1xf32>
    %187 = vector.broadcast %186 : vector<32x1xf32> to vector<32x32xf32>
    %188 = arith.mulf %183, %187 : vector<32x32xf32>
    %c0_61 = arith.constant 0 : index
    %c0_62 = arith.constant 0 : index
    %189 = vector.load %arg14[%c0_61, %c0_62] : memref<1x32xf32, #tpu.memory_space<vmem>>, vector<1x32xf32>
    %190 = vector.shape_cast %189 : vector<1x32xf32> to vector<32xf32>
    %191 = vector.shape_cast %190 : vector<32xf32> to vector<1x32xf32>
    %192 = vector.broadcast %191 : vector<1x32xf32> to vector<32x32xf32>
    %193 = arith.mulf %188, %192 : vector<32x32xf32>
    %c0_63 = arith.constant 0 : index
    %c0_64 = arith.constant 0 : index
    %194 = vector.load %arg15[%c0_63, %c0_64] : memref<1x32xf32, #tpu.memory_space<vmem>>, vector<1x32xf32>
    %195 = vector.shape_cast %194 : vector<1x32xf32> to vector<32xf32>
    %196 = vector.shape_cast %195 : vector<32xf32> to vector<1x32xf32>
    %197 = vector.broadcast %196 : vector<1x32xf32> to vector<32x32xf32>
    %198 = arith.addf %193, %197 : vector<32x32xf32>
    %199 = arith.truncf %198 : vector<32x32xf32> to vector<32x32xbf16>
    %c0_65 = arith.constant 0 : index
    %c0_66 = arith.constant 0 : index
    %200 = vector.load %arg16[%c0_65, %c0_66] : memref<32x128xbf16, #tpu.memory_space<vmem>>, vector<32x128xbf16>
    %cst_67 = arith.constant dense<0.000000e+00> : vector<32x128xf32>
    %201 = tpu.matmul %199, %200, %cst_67 {dimension_numbers = #tpu.dot_dimension_numbers<[1], [0], [0], [1], [0, 0, 1, 1], [], []>} : vector<32x32xbf16>, vector<32x128xbf16>, vector<32x128xf32> -> vector<32x128xf32>
    %c0_68 = arith.constant 0 : index
    %c0_69 = arith.constant 0 : index
    %202 = vector.load %arg17[%c0_68, %c0_69] : memref<1x128xf32, #tpu.memory_space<vmem>>, vector<1x128xf32>
    %203 = vector.shape_cast %202 : vector<1x128xf32> to vector<128xf32>
    %204 = vector.shape_cast %203 : vector<128xf32> to vector<1x128xf32>
    %205 = vector.broadcast %204 : vector<1x128xf32> to vector<32x128xf32>
    %206 = arith.addf %201, %205 : vector<32x128xf32>
    %cst_70 = arith.constant 5.000000e-01 : f32
    %207 = vector.broadcast %cst_70 : f32 to vector<32x128xf32>
    %208 = arith.mulf %207, %206 : vector<32x128xf32>
    %cst_71 = arith.constant 0.707106769 : f32
    %209 = vector.broadcast %cst_71 : f32 to vector<32x128xf32>
    %210 = arith.mulf %206, %209 : vector<32x128xf32>
    %cst_72 = arith.constant 0.000000e+00 : f32
    %211 = vector.broadcast %cst_72 : f32 to vector<32x128xf32>
    %212 = arith.cmpf oge, %210, %211 : vector<32x128xf32>
    %cst_73 = arith.constant 1.000000e+00 : f32
    %cst_74 = arith.constant -1.000000e+00 : f32
    %213 = vector.broadcast %cst_73 : f32 to vector<32x128xf32>
    %214 = vector.broadcast %cst_74 : f32 to vector<32x128xf32>
    %215 = arith.select %212, %213, %214 : vector<32x128xi1>, vector<32x128xf32>
    %216 = math.absf %210 : vector<32x128xf32>
    %cst_75 = arith.constant 0.327591091 : f32
    %217 = vector.broadcast %cst_75 : f32 to vector<32x128xf32>
    %218 = arith.mulf %217, %216 : vector<32x128xf32>
    %cst_76 = arith.constant 1.000000e+00 : f32
    %219 = vector.broadcast %cst_76 : f32 to vector<32x128xf32>
    %220 = arith.addf %219, %218 : vector<32x128xf32>
    %221 = tpu.reciprocal %220 {approx = true} : vector<32x128xf32> -> vector<32x128xf32>
    %cst_77 = arith.constant 1.06140542 : f32
    %222 = vector.broadcast %cst_77 : f32 to vector<32x128xf32>
    %223 = arith.mulf %222, %221 : vector<32x128xf32>
    %cst_78 = arith.constant -1.45315206 : f32
    %224 = vector.broadcast %cst_78 : f32 to vector<32x128xf32>
    %225 = arith.addf %223, %224 : vector<32x128xf32>
    %226 = arith.mulf %225, %221 : vector<32x128xf32>
    %cst_79 = arith.constant 1.42141378 : f32
    %227 = vector.broadcast %cst_79 : f32 to vector<32x128xf32>
    %228 = arith.addf %226, %227 : vector<32x128xf32>
    %229 = arith.mulf %228, %221 : vector<32x128xf32>
    %cst_80 = arith.constant -0.284496725 : f32
    %230 = vector.broadcast %cst_80 : f32 to vector<32x128xf32>
    %231 = arith.addf %229, %230 : vector<32x128xf32>
    %232 = arith.mulf %231, %221 : vector<32x128xf32>
    %cst_81 = arith.constant 0.254829586 : f32
    %233 = vector.broadcast %cst_81 : f32 to vector<32x128xf32>
    %234 = arith.addf %232, %233 : vector<32x128xf32>
    %235 = arith.mulf %234, %221 : vector<32x128xf32>
    %cst_82 = arith.constant 0.000000e+00 : f32
    %236 = vector.broadcast %cst_82 : f32 to vector<32x128xf32>
    %237 = arith.subf %236, %216 : vector<32x128xf32>
    %238 = arith.mulf %237, %216 : vector<32x128xf32>
    %239 = math.exp %238 : vector<32x128xf32>
    %240 = arith.mulf %235, %239 : vector<32x128xf32>
    %cst_83 = arith.constant 1.000000e+00 : f32
    %241 = vector.broadcast %cst_83 : f32 to vector<32x128xf32>
    %242 = arith.subf %241, %240 : vector<32x128xf32>
    %243 = arith.mulf %215, %242 : vector<32x128xf32>
    %cst_84 = arith.constant 1.000000e+00 : f32
    %244 = vector.broadcast %cst_84 : f32 to vector<32x128xf32>
    %245 = arith.addf %244, %243 : vector<32x128xf32>
    %246 = arith.mulf %208, %245 : vector<32x128xf32>
    %247 = arith.truncf %246 : vector<32x128xf32> to vector<32x128xbf16>
    %c0_85 = arith.constant 0 : index
    %c0_86 = arith.constant 0 : index
    %248 = vector.load %arg18[%c0_85, %c0_86] : memref<128x32xbf16, #tpu.memory_space<vmem>>, vector<128x32xbf16>
    %cst_87 = arith.constant dense<0.000000e+00> : vector<32x32xf32>
    %249 = tpu.matmul %247, %248, %cst_87 {dimension_numbers = #tpu.dot_dimension_numbers<[1], [0], [0], [1], [0, 0, 1, 1], [], []>} : vector<32x128xbf16>, vector<128x32xbf16>, vector<32x32xf32> -> vector<32x32xf32>
    %c0_88 = arith.constant 0 : index
    %c0_89 = arith.constant 0 : index
    %250 = vector.load %arg19[%c0_88, %c0_89] : memref<1x32xf32, #tpu.memory_space<vmem>>, vector<1x32xf32>
    %251 = vector.shape_cast %250 : vector<1x32xf32> to vector<32xf32>
    %252 = vector.shape_cast %251 : vector<32xf32> to vector<1x32xf32>
    %253 = vector.broadcast %252 : vector<1x32xf32> to vector<32x32xf32>
    %254 = arith.addf %249, %253 : vector<32x32xf32>
    %255 = arith.addf %170, %254 : vector<32x32xf32>
    %256 = arith.truncf %255 : vector<32x32xf32> to vector<32x32xbf16>
    %c0_90 = arith.constant 0 : index
    %c0_91 = arith.constant 0 : index
    %c0_92 = arith.constant 0 : index
    %257 = vector.load %arg20[%c0_90, %c0_91, %c0_92] : memref<1x32x32xbf16, #tpu.memory_space<vmem>>, vector<1x32x32xbf16>
    %258 = vector.shape_cast %257 : vector<1x32x32xbf16> to vector<32x32xbf16>
    %259 = vector.shape_cast %256 : vector<32x32xbf16> to vector<1x32x32xbf16>
    tpu.vector_store %arg20[%c0_90, %c0_91, %c0_92], %259 {strides = array<i32>} : memref<1x32x32xbf16, #tpu.memory_space<vmem>>, vector<1x32x32xbf16>,
    return
  }
  func.func @transform_0(%arg0: i32, %arg1: i32) -> (i32, i32, i32) {
    %c0_i32 = arith.constant 0 : i32
    %c0_i32_0 = arith.constant 0 : i32
    return %arg0, %arg1, %c0_i32 : i32, i32, i32
  }
  func.func @transform_1(%arg0: i32, %arg1: i32) -> (i32, i32) {
    %c0_i32 = arith.constant 0 : i32
    %c0_i32_0 = arith.constant 0 : i32
    %c0_i32_1 = arith.constant 0 : i32
    return %c0_i32, %c0_i32_0 : i32, i32
  }
  func.func @transform_2(%arg0: i32, %arg1: i32) -> (i32, i32) {
    %c0_i32 = arith.constant 0 : i32
    %c0_i32_0 = arith.constant 0 : i32
    %c0_i32_1 = arith.constant 0 : i32
    return %c0_i32, %c0_i32_0 : i32, i32
  }
  func.func @transform_3(%arg0: i32, %arg1: i32) -> (i32, i32) {
    %c0_i32 = arith.constant 0 : i32
    %c0_i32_0 = arith.constant 0 : i32
    %c0_i32_1 = arith.constant 0 : i32
    return %c0_i32, %c0_i32_0 : i32, i32
  }
  func.func @transform_4(%arg0: i32, %arg1: i32) -> (i32, i32) {
    %c0_i32 = arith.constant 0 : i32
    %c0_i32_0 = arith.constant 0 : i32
    %c0_i32_1 = arith.constant 0 : i32
    return %c0_i32, %c0_i32_0 : i32, i32
  }
  func.func @transform_5(%arg0: i32, %arg1: i32) -> (i32, i32) {
    %c0_i32 = arith.constant 0 : i32
    %c0_i32_0 = arith.constant 0 : i32
    %c0_i32_1 = arith.constant 0 : i32
    return %c0_i32, %c0_i32_0 : i32, i32
  }
  func.func @transform_6(%arg0: i32, %arg1: i32) -> (i32, i32) {
    %c0_i32 = arith.constant 0 : i32
    %c0_i32_0 = arith.constant 0 : i32
    %c0_i32_1 = arith.constant 0 : i32
    return %c0_i32, %c0_i32_0 : i32, i32
  }
  func.func @transform_7(%arg0: i32, %arg1: i32) -> (i32, i32) {
    %c0_i32 = arith.constant 0 : i32
    %c0_i32_0 = arith.constant 0 : i32
    %c0_i32_1 = arith.constant 0 : i32
    return %c0_i32, %c0_i32_0 : i32, i32
  }
  func.func @transform_8(%arg0: i32, %arg1: i32) -> (i32, i32) {
    %c0_i32 = arith.constant 0 : i32
    %c0_i32_0 = arith.constant 0 : i32
    %c0_i32_1 = arith.constant 0 : i32
    return %c0_i32, %c0_i32_0 : i32, i32
  }
  func.func @transform_9(%arg0: i32, %arg1: i32) -> (i32, i32, i32) {
    %c0_i32 = arith.constant 0 : i32
    %c0_i32_0 = arith.constant 0 : i32
    %c0_i32_1 = arith.constant 0 : i32
    %c0_i32_2 = arith.constant 0 : i32
    return %c0_i32, %c0_i32_0, %c0_i32_1 : i32, i32, i32
  }
  func.func @transform_10(%arg0: i32, %arg1: i32) -> (i32, i32) {
    %c0_i32 = arith.constant 0 : i32
    %c0_i32_0 = arith.constant 0 : i32
    %c0_i32_1 = arith.constant 0 : i32
    return %c0_i32, %c0_i32_0 : i32, i32
  }
  func.func @transform_11(%arg0: i32, %arg1: i32) -> (i32, i32) {
    %c0_i32 = arith.constant 0 : i32
    %c0_i32_0 = arith.constant 0 : i32
    %c0_i32_1 = arith.constant 0 : i32
    return %c0_i32, %c0_i32_0 : i32, i32
  }
  func.func @transform_12(%arg0: i32, %arg1: i32) -> (i32, i32) {
    %c0_i32 = arith.constant 0 : i32
    %c0_i32_0 = arith.constant 0 : i32
    %c0_i32_1 = arith.constant 0 : i32
    return %c0_i32, %c0_i32_0 : i32, i32
  }
  func.func @transform_13(%arg0: i32, %arg1: i32) -> (i32, i32) {
    %c0_i32 = arith.constant 0 : i32
    %c0_i32_0 = arith.constant 0 : i32
    %c0_i32_1 = arith.constant 0 : i32
    return %c0_i32, %c0_i32_0 : i32, i32
  }
  func.func @transform_14(%arg0: i32, %arg1: i32) -> (i32, i32) {
    %c0_i32 = arith.constant 0 : i32
    %c0_i32_0 = arith.constant 0 : i32
    %c0_i32_1 = arith.constant 0 : i32
    return %c0_i32, %c0_i32_0 : i32, i32
  }
  func.func @transform_15(%arg0: i32, %arg1: i32) -> (i32, i32) {
    %c0_i32 = arith.constant 0 : i32
    %c0_i32_0 = arith.constant 0 : i32
    %c0_i32_1 = arith.constant 0 : i32
    return %c0_i32, %c0_i32_0 : i32, i32
  }
  func.func @transform_16(%arg0: i32, %arg1: i32) -> (i32, i32) {
    %c0_i32 = arith.constant 0 : i32
    %c0_i32_0 = arith.constant 0 : i32
    %c0_i32_1 = arith.constant 0 : i32
    return %c0_i32, %c0_i32_0 : i32, i32
  }
  func.func @transform_17(%arg0: i32, %arg1: i32) -> (i32, i32) {
    %c0_i32 = arith.constant 0 : i32
    %c0_i32_0 = arith.constant 0 : i32
    %c0_i32_1 = arith.constant 0 : i32
    return %c0_i32, %c0_i32_0 : i32, i32
  }
  func.func @transform_18(%arg0: i32, %arg1: i32) -> (i32, i32, i32) {
    %c0_i32 = arith.constant 0 : i32
    %c0_i32_0 = arith.constant 0 : i32
    return %arg0, %arg1, %c0_i32 : i32, i32, i32
  }
}

module attributes {stable_mosaic.version = 11 : i64} {
  func.func @_swin_block_kernel(%arg0: i32, %arg1: i32, %arg2: memref<1x32x32xbf16, #tpu.memory_space<vmem>>, %arg3: memref<1x32xf32, #tpu.memory_space<vmem>>, %arg4: memref<1x32xf32, #tpu.memory_space<vmem>>, %arg5: memref<32x32xbf16, #tpu.memory_space<vmem>>, %arg6: memref<1x32xf32, #tpu.memory_space<vmem>>, %arg7: memref<32x32xbf16, #tpu.memory_space<vmem>>, %arg8: memref<1x32xf32, #tpu.memory_space<vmem>>, %arg9: memref<32x32xbf16, #tpu.memory_space<vmem>>, %arg10: memref<1x32xf32, #tpu.memory_space<vmem>>, %arg11: memref<4x16x16xf32, #tpu.memory_space<vmem>>, %arg12: memref<2x16x16xf32, #tpu.memory_space<vmem>>, %arg13: memref<32x32xbf16, #tpu.memory_space<vmem>>, %arg14: memref<1x32xf32, #tpu.memory_space<vmem>>, %arg15: memref<1x32xf32, #tpu.memory_space<vmem>>, %arg16: memref<1x32xf32, #tpu.memory_space<vmem>>, %arg17: memref<32x128xbf16, #tpu.memory_space<vmem>>, %arg18: memref<1x128xf32, #tpu.memory_space<vmem>>, %arg19: memref<128x32xbf16, #tpu.memory_space<vmem>>, %arg20: memref<1x32xf32, #tpu.memory_space<vmem>>, %arg21: memref<1x32x32xbf16, #tpu.memory_space<vmem>>) attributes {dimension_semantics = [#tpu.dimension_semantics<parallel>, #tpu.dimension_semantics<parallel>], iteration_bounds = array<i64: 2, 2>, scalar_prefetch = 0 : i64, scratch_operands = 0 : i64, tpu.core_type = #tpu.core_type<tc>, window_params = [{transform_indices = @transform_0, window_bounds = array<i64: 1, 32, 32>}, {pipeline_mode = #tpu.pipeline_mode<synchronous>, transform_indices = @transform_1, window_bounds = array<i64: 1, 32>}, {pipeline_mode = #tpu.pipeline_mode<synchronous>, transform_indices = @transform_2, window_bounds = array<i64: 1, 32>}, {pipeline_mode = #tpu.pipeline_mode<synchronous>, transform_indices = @transform_3, window_bounds = array<i64: 32, 32>}, {pipeline_mode = #tpu.pipeline_mode<synchronous>, transform_indices = @transform_4, window_bounds = array<i64: 1, 32>}, {pipeline_mode = #tpu.pipeline_mode<synchronous>, transform_indices = @transform_5, window_bounds = array<i64: 32, 32>}, {pipeline_mode = #tpu.pipeline_mode<synchronous>, transform_indices = @transform_6, window_bounds = array<i64: 1, 32>}, {pipeline_mode = #tpu.pipeline_mode<synchronous>, transform_indices = @transform_7, window_bounds = array<i64: 32, 32>}, {pipeline_mode = #tpu.pipeline_mode<synchronous>, transform_indices = @transform_8, window_bounds = array<i64: 1, 32>}, {pipeline_mode = #tpu.pipeline_mode<synchronous>, transform_indices = @transform_9, window_bounds = array<i64: 4, 16, 16>}, {transform_indices = @transform_10, window_bounds = array<i64: 2, 16, 16>}, {pipeline_mode = #tpu.pipeline_mode<synchronous>, transform_indices = @transform_11, window_bounds = array<i64: 32, 32>}, {pipeline_mode = #tpu.pipeline_mode<synchronous>, transform_indices = @transform_12, window_bounds = array<i64: 1, 32>}, {pipeline_mode = #tpu.pipeline_mode<synchronous>, transform_indices = @transform_13, window_bounds = array<i64: 1, 32>}, {pipeline_mode = #tpu.pipeline_mode<synchronous>, transform_indices = @transform_14, window_bounds = array<i64: 1, 32>}, {pipeline_mode = #tpu.pipeline_mode<synchronous>, transform_indices = @transform_15, window_bounds = array<i64: 32, 128>}, {pipeline_mode = #tpu.pipeline_mode<synchronous>, transform_indices = @transform_16, window_bounds = array<i64: 1, 128>}, {pipeline_mode = #tpu.pipeline_mode<synchronous>, transform_indices = @transform_17, window_bounds = array<i64: 128, 32>}, {pipeline_mode = #tpu.pipeline_mode<synchronous>, transform_indices = @transform_18, window_bounds = array<i64: 1, 32>}, {transform_indices = @transform_19, window_bounds = array<i64: 1, 32, 32>}]} {
    %c0 = arith.constant 0 : index
    %c0_0 = arith.constant 0 : index
    %c0_1 = arith.constant 0 : index
    %0 = vector.load %arg2[%c0, %c0_0, %c0_1] : memref<1x32x32xbf16, #tpu.memory_space<vmem>>, vector<1x32x32xbf16>
    %1 = vector.shape_cast %0 : vector<1x32x32xbf16> to vector<32x32xbf16>
    %2 = arith.extf %1 : vector<32x32xbf16> to vector<32x32xf32>
    %cst = arith.constant dense<0.000000e+00> : vector<32xf32>
    %3 = vector.multi_reduction <add>, %2, %cst [1] : vector<32x32xf32> to vector<32xf32>
    %4 = vector.shape_cast %3 : vector<32xf32> to vector<32x1xf32>
    %cst_2 = arith.constant 3.200000e+01 : f32
    %5 = vector.broadcast %cst_2 : f32 to vector<32x1xf32>
    %6 = arith.divf %4, %5 : vector<32x1xf32>
    %7 = vector.broadcast %6 : vector<32x1xf32> to vector<32x32xf32>
    %8 = arith.subf %2, %7 : vector<32x32xf32>
    %9 = arith.mulf %8, %8 : vector<32x32xf32>
    %cst_3 = arith.constant dense<0.000000e+00> : vector<32xf32>
    %10 = vector.multi_reduction <add>, %9, %cst_3 [1] : vector<32x32xf32> to vector<32xf32>
    %11 = vector.shape_cast %10 : vector<32xf32> to vector<32x1xf32>
    %cst_4 = arith.constant 3.200000e+01 : f32
    %12 = vector.broadcast %cst_4 : f32 to vector<32x1xf32>
    %13 = arith.divf %11, %12 : vector<32x1xf32>
    %14 = vector.broadcast %6 : vector<32x1xf32> to vector<32x32xf32>
    %15 = arith.subf %2, %14 : vector<32x32xf32>
    %cst_5 = arith.constant 9.99999974E-6 : f32
    %16 = vector.broadcast %cst_5 : f32 to vector<32x1xf32>
    %17 = arith.addf %13, %16 : vector<32x1xf32>
    %18 = math.rsqrt %17 : vector<32x1xf32>
    %19 = vector.broadcast %18 : vector<32x1xf32> to vector<32x32xf32>
    %20 = arith.mulf %15, %19 : vector<32x32xf32>
    %c0_6 = arith.constant 0 : index
    %c0_7 = arith.constant 0 : index
    %21 = vector.load %arg3[%c0_6, %c0_7] : memref<1x32xf32, #tpu.memory_space<vmem>>, vector<1x32xf32>
    %22 = vector.shape_cast %21 : vector<1x32xf32> to vector<32xf32>
    %23 = vector.shape_cast %22 : vector<32xf32> to vector<1x32xf32>
    %24 = vector.broadcast %23 : vector<1x32xf32> to vector<32x32xf32>
    %25 = arith.mulf %20, %24 : vector<32x32xf32>
    %c0_8 = arith.constant 0 : index
    %c0_9 = arith.constant 0 : index
    %26 = vector.load %arg4[%c0_8, %c0_9] : memref<1x32xf32, #tpu.memory_space<vmem>>, vector<1x32xf32>
    %27 = vector.shape_cast %26 : vector<1x32xf32> to vector<32xf32>
    %28 = vector.shape_cast %27 : vector<32xf32> to vector<1x32xf32>
    %29 = vector.broadcast %28 : vector<1x32xf32> to vector<32x32xf32>
    %30 = arith.addf %25, %29 : vector<32x32xf32>
    %31 = arith.truncf %30 : vector<32x32xf32> to vector<32x32xbf16>
    %c0_10 = arith.constant 0 : index
    %c0_11 = arith.constant 0 : index
    %32 = vector.load %arg5[%c0_10, %c0_11] : memref<32x32xbf16, #tpu.memory_space<vmem>>, vector<32x32xbf16>
    %cst_12 = arith.constant dense<0.000000e+00> : vector<32x32xf32>
    %33 = tpu.matmul %31, %32, %cst_12 {dimension_numbers = #tpu.dot_dimension_numbers<[1], [0], [0], [1], [0, 0, 1, 1], [], []>} : vector<32x32xbf16>, vector<32x32xbf16>, vector<32x32xf32> -> vector<32x32xf32>
    %c0_13 = arith.constant 0 : index
    %c0_14 = arith.constant 0 : index
    %34 = vector.load %arg6[%c0_13, %c0_14] : memref<1x32xf32, #tpu.memory_space<vmem>>, vector<1x32xf32>
    %35 = vector.shape_cast %34 : vector<1x32xf32> to vector<32xf32>
    %36 = vector.shape_cast %35 : vector<32xf32> to vector<1x32xf32>
    %37 = vector.broadcast %36 : vector<1x32xf32> to vector<32x32xf32>
    %38 = arith.addf %33, %37 : vector<32x32xf32>
    %39 = arith.truncf %38 : vector<32x32xf32> to vector<32x32xbf16>
    %c0_15 = arith.constant 0 : index
    %c0_16 = arith.constant 0 : index
    %40 = vector.load %arg7[%c0_15, %c0_16] : memref<32x32xbf16, #tpu.memory_space<vmem>>, vector<32x32xbf16>
    %cst_17 = arith.constant dense<0.000000e+00> : vector<32x32xf32>
    %41 = tpu.matmul %31, %40, %cst_17 {dimension_numbers = #tpu.dot_dimension_numbers<[1], [0], [0], [1], [0, 0, 1, 1], [], []>} : vector<32x32xbf16>, vector<32x32xbf16>, vector<32x32xf32> -> vector<32x32xf32>
    %c0_18 = arith.constant 0 : index
    %c0_19 = arith.constant 0 : index
    %42 = vector.load %arg8[%c0_18, %c0_19] : memref<1x32xf32, #tpu.memory_space<vmem>>, vector<1x32xf32>
    %43 = vector.shape_cast %42 : vector<1x32xf32> to vector<32xf32>
    %44 = vector.shape_cast %43 : vector<32xf32> to vector<1x32xf32>
    %45 = vector.broadcast %44 : vector<1x32xf32> to vector<32x32xf32>
    %46 = arith.addf %41, %45 : vector<32x32xf32>
    %47 = arith.truncf %46 : vector<32x32xf32> to vector<32x32xbf16>
    %c0_20 = arith.constant 0 : index
    %c0_21 = arith.constant 0 : index
    %48 = vector.load %arg9[%c0_20, %c0_21] : memref<32x32xbf16, #tpu.memory_space<vmem>>, vector<32x32xbf16>
    %cst_22 = arith.constant dense<0.000000e+00> : vector<32x32xf32>
    %49 = tpu.matmul %31, %48, %cst_22 {dimension_numbers = #tpu.dot_dimension_numbers<[1], [0], [0], [1], [0, 0, 1, 1], [], []>} : vector<32x32xbf16>, vector<32x32xbf16>, vector<32x32xf32> -> vector<32x32xf32>
    %c0_23 = arith.constant 0 : index
    %c0_24 = arith.constant 0 : index
    %50 = vector.load %arg10[%c0_23, %c0_24] : memref<1x32xf32, #tpu.memory_space<vmem>>, vector<1x32xf32>
    %51 = vector.shape_cast %50 : vector<1x32xf32> to vector<32xf32>
    %52 = vector.shape_cast %51 : vector<32xf32> to vector<1x32xf32>
    %53 = vector.broadcast %52 : vector<1x32xf32> to vector<32x32xf32>
    %54 = arith.addf %49, %53 : vector<32x32xf32>
    %55 = arith.truncf %54 : vector<32x32xf32> to vector<32x32xbf16>
    %c0_25 = arith.constant 0 : index
    %c0_26 = arith.constant 0 : index
    %c0_27 = arith.constant 0 : index
    %56 = vector.load %arg11[%c0_25, %c0_26, %c0_27] : memref<4x16x16xf32, #tpu.memory_space<vmem>>, vector<4x16x16xf32>
    %c0_28 = arith.constant 0 : index
    %c0_29 = arith.constant 0 : index
    %c0_30 = arith.constant 0 : index
    %57 = vector.load %arg12[%c0_28, %c0_29, %c0_30] : memref<2x16x16xf32, #tpu.memory_space<vmem>>, vector<2x16x16xf32>
    %58 = vector.shape_cast %39 : vector<32x32xbf16> to vector<2x16x32xbf16>
    %59 = vector.shape_cast %47 : vector<32x32xbf16> to vector<2x16x32xbf16>
    %60 = vector.shape_cast %55 : vector<32x32xbf16> to vector<2x16x32xbf16>
    %cst_31 = arith.constant 0.000000e+00 : f32
    %61 = vector.broadcast %cst_31 : f32 to vector<32x32xf32>
    %62 = vector.extract_strided_slice %58 {offsets = [0, 0, 0], sizes = [2, 16, 8], strides = [1, 1, 1]} : vector<2x16x32xbf16> to vector<2x16x8xbf16>
    %63 = vector.extract_strided_slice %59 {offsets = [0, 0, 0], sizes = [2, 16, 8], strides = [1, 1, 1]} : vector<2x16x32xbf16> to vector<2x16x8xbf16>
    "tpu.trace_start"() <{level = 10 : i32, message = "wnd,wmd->wnm"}> : () -> ()
    %cst_32 = arith.constant dense<0.000000e+00> : vector<2x16x16xf32>
    %64 = tpu.matmul %62, %63, %cst_32 {dimension_numbers = #tpu.dot_dimension_numbers<[2], [2], [1], [1], [0, 0, 0, 1, 1, 1], [0], [0]>} : vector<2x16x8xbf16>, vector<2x16x8xbf16>, vector<2x16x16xf32> -> vector<2x16x16xf32>
    "tpu.trace_stop"() : () -> ()
    %65 = vector.extract_strided_slice %56 {offsets = [0, 0, 0], sizes = [1, 16, 16], strides = [1, 1, 1]} : vector<4x16x16xf32> to vector<1x16x16xf32>
    %66 = vector.shape_cast %65 : vector<1x16x16xf32> to vector<16x16xf32>
    %67 = vector.shape_cast %66 : vector<16x16xf32> to vector<1x16x16xf32>
    %68 = vector.broadcast %67 : vector<1x16x16xf32> to vector<2x16x16xf32>
    %69 = arith.addf %64, %68 : vector<2x16x16xf32>
    %70 = arith.addf %69, %57 : vector<2x16x16xf32>
    %cst_33 = arith.constant dense<0xFF800000> : vector<2x16xf32>
    %71 = vector.multi_reduction <maximumf>, %70, %cst_33 [2] : vector<2x16x16xf32> to vector<2x16xf32>
    %72 = vector.shape_cast %71 : vector<2x16xf32> to vector<2x16x1xf32>
    %73 = vector.broadcast %72 : vector<2x16x1xf32> to vector<2x16x16xf32>
    %74 = arith.subf %70, %73 : vector<2x16x16xf32>
    %75 = math.exp %74 : vector<2x16x16xf32>
    %cst_34 = arith.constant dense<0.000000e+00> : vector<2x16xf32>
    %76 = vector.multi_reduction <add>, %75, %cst_34 [2] : vector<2x16x16xf32> to vector<2x16xf32>
    %77 = vector.shape_cast %76 : vector<2x16xf32> to vector<2x16x1xf32>
    %78 = tpu.reciprocal %77 {approx = true} : vector<2x16x1xf32> -> vector<2x16x1xf32>
    %79 = vector.broadcast %78 : vector<2x16x1xf32> to vector<2x16x16xf32>
    %80 = arith.mulf %75, %79 : vector<2x16x16xf32>
    %81 = arith.truncf %80 : vector<2x16x16xf32> to vector<2x16x16xbf16>
    %82 = vector.extract_strided_slice %60 {offsets = [0, 0, 0], sizes = [2, 16, 8], strides = [1, 1, 1]} : vector<2x16x32xbf16> to vector<2x16x8xbf16>
    "tpu.trace_start"() <{level = 10 : i32, message = "wnm,wmd->wnd"}> : () -> ()
    %cst_35 = arith.constant dense<0.000000e+00> : vector<2x16x8xf32>
    %83 = tpu.matmul %81, %82, %cst_35 {dimension_numbers = #tpu.dot_dimension_numbers<[2], [1], [1], [2], [0, 0, 0, 1, 1, 2], [0], [0]>} : vector<2x16x16xbf16>, vector<2x16x8xbf16>, vector<2x16x8xf32> -> vector<2x16x8xf32>
    "tpu.trace_stop"() : () -> ()
    %84 = vector.shape_cast %83 : vector<2x16x8xf32> to vector<32x8xf32>
    %85 = arith.truncf %84 : vector<32x8xf32> to vector<32x8xbf16>
    %c0_36 = arith.constant 0 : index
    %c0_37 = arith.constant 0 : index
    %86 = vector.load %arg13[%c0_36, %c0_37] : memref<32x32xbf16, #tpu.memory_space<vmem>>, vector<8x32xbf16>
    %cst_38 = arith.constant dense<0.000000e+00> : vector<32x32xf32>
    %87 = tpu.matmul %85, %86, %cst_38 {dimension_numbers = #tpu.dot_dimension_numbers<[1], [0], [0], [1], [0, 0, 1, 1], [], []>} : vector<32x8xbf16>, vector<8x32xbf16>, vector<32x32xf32> -> vector<32x32xf32>
    %88 = arith.addf %61, %87 : vector<32x32xf32>
    %89 = vector.extract_strided_slice %58 {offsets = [0, 0, 8], sizes = [2, 16, 8], strides = [1, 1, 1]} : vector<2x16x32xbf16> to vector<2x16x8xbf16>
    %90 = vector.extract_strided_slice %59 {offsets = [0, 0, 8], sizes = [2, 16, 8], strides = [1, 1, 1]} : vector<2x16x32xbf16> to vector<2x16x8xbf16>
    "tpu.trace_start"() <{level = 10 : i32, message = "wnd,wmd->wnm"}> : () -> ()
    %cst_39 = arith.constant dense<0.000000e+00> : vector<2x16x16xf32>
    %91 = tpu.matmul %89, %90, %cst_39 {dimension_numbers = #tpu.dot_dimension_numbers<[2], [2], [1], [1], [0, 0, 0, 1, 1, 1], [0], [0]>} : vector<2x16x8xbf16>, vector<2x16x8xbf16>, vector<2x16x16xf32> -> vector<2x16x16xf32>
    "tpu.trace_stop"() : () -> ()
    %92 = vector.extract_strided_slice %56 {offsets = [1, 0, 0], sizes = [1, 16, 16], strides = [1, 1, 1]} : vector<4x16x16xf32> to vector<1x16x16xf32>
    %93 = vector.shape_cast %92 : vector<1x16x16xf32> to vector<16x16xf32>
    %94 = vector.shape_cast %93 : vector<16x16xf32> to vector<1x16x16xf32>
    %95 = vector.broadcast %94 : vector<1x16x16xf32> to vector<2x16x16xf32>
    %96 = arith.addf %91, %95 : vector<2x16x16xf32>
    %97 = arith.addf %96, %57 : vector<2x16x16xf32>
    %cst_40 = arith.constant dense<0xFF800000> : vector<2x16xf32>
    %98 = vector.multi_reduction <maximumf>, %97, %cst_40 [2] : vector<2x16x16xf32> to vector<2x16xf32>
    %99 = vector.shape_cast %98 : vector<2x16xf32> to vector<2x16x1xf32>
    %100 = vector.broadcast %99 : vector<2x16x1xf32> to vector<2x16x16xf32>
    %101 = arith.subf %97, %100 : vector<2x16x16xf32>
    %102 = math.exp %101 : vector<2x16x16xf32>
    %cst_41 = arith.constant dense<0.000000e+00> : vector<2x16xf32>
    %103 = vector.multi_reduction <add>, %102, %cst_41 [2] : vector<2x16x16xf32> to vector<2x16xf32>
    %104 = vector.shape_cast %103 : vector<2x16xf32> to vector<2x16x1xf32>
    %105 = tpu.reciprocal %104 {approx = true} : vector<2x16x1xf32> -> vector<2x16x1xf32>
    %106 = vector.broadcast %105 : vector<2x16x1xf32> to vector<2x16x16xf32>
    %107 = arith.mulf %102, %106 : vector<2x16x16xf32>
    %108 = arith.truncf %107 : vector<2x16x16xf32> to vector<2x16x16xbf16>
    %109 = vector.extract_strided_slice %60 {offsets = [0, 0, 8], sizes = [2, 16, 8], strides = [1, 1, 1]} : vector<2x16x32xbf16> to vector<2x16x8xbf16>
    "tpu.trace_start"() <{level = 10 : i32, message = "wnm,wmd->wnd"}> : () -> ()
    %cst_42 = arith.constant dense<0.000000e+00> : vector<2x16x8xf32>
    %110 = tpu.matmul %108, %109, %cst_42 {dimension_numbers = #tpu.dot_dimension_numbers<[2], [1], [1], [2], [0, 0, 0, 1, 1, 2], [0], [0]>} : vector<2x16x16xbf16>, vector<2x16x8xbf16>, vector<2x16x8xf32> -> vector<2x16x8xf32>
    "tpu.trace_stop"() : () -> ()
    %111 = vector.shape_cast %110 : vector<2x16x8xf32> to vector<32x8xf32>
    %112 = arith.truncf %111 : vector<32x8xf32> to vector<32x8xbf16>
    %c8 = arith.constant 8 : index
    %c0_43 = arith.constant 0 : index
    %113 = vector.load %arg13[%c8, %c0_43] : memref<32x32xbf16, #tpu.memory_space<vmem>>, vector<8x32xbf16>
    %cst_44 = arith.constant dense<0.000000e+00> : vector<32x32xf32>
    %114 = tpu.matmul %112, %113, %cst_44 {dimension_numbers = #tpu.dot_dimension_numbers<[1], [0], [0], [1], [0, 0, 1, 1], [], []>} : vector<32x8xbf16>, vector<8x32xbf16>, vector<32x32xf32> -> vector<32x32xf32>
    %115 = arith.addf %88, %114 : vector<32x32xf32>
    %116 = vector.extract_strided_slice %58 {offsets = [0, 0, 16], sizes = [2, 16, 8], strides = [1, 1, 1]} : vector<2x16x32xbf16> to vector<2x16x8xbf16>
    %117 = vector.extract_strided_slice %59 {offsets = [0, 0, 16], sizes = [2, 16, 8], strides = [1, 1, 1]} : vector<2x16x32xbf16> to vector<2x16x8xbf16>
    "tpu.trace_start"() <{level = 10 : i32, message = "wnd,wmd->wnm"}> : () -> ()
    %cst_45 = arith.constant dense<0.000000e+00> : vector<2x16x16xf32>
    %118 = tpu.matmul %116, %117, %cst_45 {dimension_numbers = #tpu.dot_dimension_numbers<[2], [2], [1], [1], [0, 0, 0, 1, 1, 1], [0], [0]>} : vector<2x16x8xbf16>, vector<2x16x8xbf16>, vector<2x16x16xf32> -> vector<2x16x16xf32>
    "tpu.trace_stop"() : () -> ()
    %119 = vector.extract_strided_slice %56 {offsets = [2, 0, 0], sizes = [1, 16, 16], strides = [1, 1, 1]} : vector<4x16x16xf32> to vector<1x16x16xf32>
    %120 = vector.shape_cast %119 : vector<1x16x16xf32> to vector<16x16xf32>
    %121 = vector.shape_cast %120 : vector<16x16xf32> to vector<1x16x16xf32>
    %122 = vector.broadcast %121 : vector<1x16x16xf32> to vector<2x16x16xf32>
    %123 = arith.addf %118, %122 : vector<2x16x16xf32>
    %124 = arith.addf %123, %57 : vector<2x16x16xf32>
    %cst_46 = arith.constant dense<0xFF800000> : vector<2x16xf32>
    %125 = vector.multi_reduction <maximumf>, %124, %cst_46 [2] : vector<2x16x16xf32> to vector<2x16xf32>
    %126 = vector.shape_cast %125 : vector<2x16xf32> to vector<2x16x1xf32>
    %127 = vector.broadcast %126 : vector<2x16x1xf32> to vector<2x16x16xf32>
    %128 = arith.subf %124, %127 : vector<2x16x16xf32>
    %129 = math.exp %128 : vector<2x16x16xf32>
    %cst_47 = arith.constant dense<0.000000e+00> : vector<2x16xf32>
    %130 = vector.multi_reduction <add>, %129, %cst_47 [2] : vector<2x16x16xf32> to vector<2x16xf32>
    %131 = vector.shape_cast %130 : vector<2x16xf32> to vector<2x16x1xf32>
    %132 = tpu.reciprocal %131 {approx = true} : vector<2x16x1xf32> -> vector<2x16x1xf32>
    %133 = vector.broadcast %132 : vector<2x16x1xf32> to vector<2x16x16xf32>
    %134 = arith.mulf %129, %133 : vector<2x16x16xf32>
    %135 = arith.truncf %134 : vector<2x16x16xf32> to vector<2x16x16xbf16>
    %136 = vector.extract_strided_slice %60 {offsets = [0, 0, 16], sizes = [2, 16, 8], strides = [1, 1, 1]} : vector<2x16x32xbf16> to vector<2x16x8xbf16>
    "tpu.trace_start"() <{level = 10 : i32, message = "wnm,wmd->wnd"}> : () -> ()
    %cst_48 = arith.constant dense<0.000000e+00> : vector<2x16x8xf32>
    %137 = tpu.matmul %135, %136, %cst_48 {dimension_numbers = #tpu.dot_dimension_numbers<[2], [1], [1], [2], [0, 0, 0, 1, 1, 2], [0], [0]>} : vector<2x16x16xbf16>, vector<2x16x8xbf16>, vector<2x16x8xf32> -> vector<2x16x8xf32>
    "tpu.trace_stop"() : () -> ()
    %138 = vector.shape_cast %137 : vector<2x16x8xf32> to vector<32x8xf32>
    %139 = arith.truncf %138 : vector<32x8xf32> to vector<32x8xbf16>
    %c16 = arith.constant 16 : index
    %c0_49 = arith.constant 0 : index
    %140 = vector.load %arg13[%c16, %c0_49] : memref<32x32xbf16, #tpu.memory_space<vmem>>, vector<8x32xbf16>
    %cst_50 = arith.constant dense<0.000000e+00> : vector<32x32xf32>
    %141 = tpu.matmul %139, %140, %cst_50 {dimension_numbers = #tpu.dot_dimension_numbers<[1], [0], [0], [1], [0, 0, 1, 1], [], []>} : vector<32x8xbf16>, vector<8x32xbf16>, vector<32x32xf32> -> vector<32x32xf32>
    %142 = arith.addf %115, %141 : vector<32x32xf32>
    %143 = vector.extract_strided_slice %58 {offsets = [0, 0, 24], sizes = [2, 16, 8], strides = [1, 1, 1]} : vector<2x16x32xbf16> to vector<2x16x8xbf16>
    %144 = vector.extract_strided_slice %59 {offsets = [0, 0, 24], sizes = [2, 16, 8], strides = [1, 1, 1]} : vector<2x16x32xbf16> to vector<2x16x8xbf16>
    "tpu.trace_start"() <{level = 10 : i32, message = "wnd,wmd->wnm"}> : () -> ()
    %cst_51 = arith.constant dense<0.000000e+00> : vector<2x16x16xf32>
    %145 = tpu.matmul %143, %144, %cst_51 {dimension_numbers = #tpu.dot_dimension_numbers<[2], [2], [1], [1], [0, 0, 0, 1, 1, 1], [0], [0]>} : vector<2x16x8xbf16>, vector<2x16x8xbf16>, vector<2x16x16xf32> -> vector<2x16x16xf32>
    "tpu.trace_stop"() : () -> ()
    %146 = vector.extract_strided_slice %56 {offsets = [3, 0, 0], sizes = [1, 16, 16], strides = [1, 1, 1]} : vector<4x16x16xf32> to vector<1x16x16xf32>
    %147 = vector.shape_cast %146 : vector<1x16x16xf32> to vector<16x16xf32>
    %148 = vector.shape_cast %147 : vector<16x16xf32> to vector<1x16x16xf32>
    %149 = vector.broadcast %148 : vector<1x16x16xf32> to vector<2x16x16xf32>
    %150 = arith.addf %145, %149 : vector<2x16x16xf32>
    %151 = arith.addf %150, %57 : vector<2x16x16xf32>
    %cst_52 = arith.constant dense<0xFF800000> : vector<2x16xf32>
    %152 = vector.multi_reduction <maximumf>, %151, %cst_52 [2] : vector<2x16x16xf32> to vector<2x16xf32>
    %153 = vector.shape_cast %152 : vector<2x16xf32> to vector<2x16x1xf32>
    %154 = vector.broadcast %153 : vector<2x16x1xf32> to vector<2x16x16xf32>
    %155 = arith.subf %151, %154 : vector<2x16x16xf32>
    %156 = math.exp %155 : vector<2x16x16xf32>
    %cst_53 = arith.constant dense<0.000000e+00> : vector<2x16xf32>
    %157 = vector.multi_reduction <add>, %156, %cst_53 [2] : vector<2x16x16xf32> to vector<2x16xf32>
    %158 = vector.shape_cast %157 : vector<2x16xf32> to vector<2x16x1xf32>
    %159 = tpu.reciprocal %158 {approx = true} : vector<2x16x1xf32> -> vector<2x16x1xf32>
    %160 = vector.broadcast %159 : vector<2x16x1xf32> to vector<2x16x16xf32>
    %161 = arith.mulf %156, %160 : vector<2x16x16xf32>
    %162 = arith.truncf %161 : vector<2x16x16xf32> to vector<2x16x16xbf16>
    %163 = vector.extract_strided_slice %60 {offsets = [0, 0, 24], sizes = [2, 16, 8], strides = [1, 1, 1]} : vector<2x16x32xbf16> to vector<2x16x8xbf16>
    "tpu.trace_start"() <{level = 10 : i32, message = "wnm,wmd->wnd"}> : () -> ()
    %cst_54 = arith.constant dense<0.000000e+00> : vector<2x16x8xf32>
    %164 = tpu.matmul %162, %163, %cst_54 {dimension_numbers = #tpu.dot_dimension_numbers<[2], [1], [1], [2], [0, 0, 0, 1, 1, 2], [0], [0]>} : vector<2x16x16xbf16>, vector<2x16x8xbf16>, vector<2x16x8xf32> -> vector<2x16x8xf32>
    "tpu.trace_stop"() : () -> ()
    %165 = vector.shape_cast %164 : vector<2x16x8xf32> to vector<32x8xf32>
    %166 = arith.truncf %165 : vector<32x8xf32> to vector<32x8xbf16>
    %c24 = arith.constant 24 : index
    %c0_55 = arith.constant 0 : index
    %167 = vector.load %arg13[%c24, %c0_55] : memref<32x32xbf16, #tpu.memory_space<vmem>>, vector<8x32xbf16>
    %cst_56 = arith.constant dense<0.000000e+00> : vector<32x32xf32>
    %168 = tpu.matmul %166, %167, %cst_56 {dimension_numbers = #tpu.dot_dimension_numbers<[1], [0], [0], [1], [0, 0, 1, 1], [], []>} : vector<32x8xbf16>, vector<8x32xbf16>, vector<32x32xf32> -> vector<32x32xf32>
    %169 = arith.addf %142, %168 : vector<32x32xf32>
    %170 = arith.addf %2, %169 : vector<32x32xf32>
    %c0_57 = arith.constant 0 : index
    %c0_58 = arith.constant 0 : index
    %171 = vector.load %arg14[%c0_57, %c0_58] : memref<1x32xf32, #tpu.memory_space<vmem>>, vector<1x32xf32>
    %172 = vector.shape_cast %171 : vector<1x32xf32> to vector<32xf32>
    %173 = vector.shape_cast %172 : vector<32xf32> to vector<1x32xf32>
    %174 = vector.broadcast %173 : vector<1x32xf32> to vector<32x32xf32>
    %175 = arith.addf %170, %174 : vector<32x32xf32>
    %cst_59 = arith.constant dense<0.000000e+00> : vector<32xf32>
    %176 = vector.multi_reduction <add>, %175, %cst_59 [1] : vector<32x32xf32> to vector<32xf32>
    %177 = vector.shape_cast %176 : vector<32xf32> to vector<32x1xf32>
    %cst_60 = arith.constant 3.200000e+01 : f32
    %178 = vector.broadcast %cst_60 : f32 to vector<32x1xf32>
    %179 = arith.divf %177, %178 : vector<32x1xf32>
    %180 = vector.broadcast %179 : vector<32x1xf32> to vector<32x32xf32>
    %181 = arith.subf %175, %180 : vector<32x32xf32>
    %182 = arith.mulf %181, %181 : vector<32x32xf32>
    %cst_61 = arith.constant dense<0.000000e+00> : vector<32xf32>
    %183 = vector.multi_reduction <add>, %182, %cst_61 [1] : vector<32x32xf32> to vector<32xf32>
    %184 = vector.shape_cast %183 : vector<32xf32> to vector<32x1xf32>
    %cst_62 = arith.constant 3.200000e+01 : f32
    %185 = vector.broadcast %cst_62 : f32 to vector<32x1xf32>
    %186 = arith.divf %184, %185 : vector<32x1xf32>
    %187 = vector.broadcast %179 : vector<32x1xf32> to vector<32x32xf32>
    %188 = arith.subf %175, %187 : vector<32x32xf32>
    %cst_63 = arith.constant 9.99999974E-6 : f32
    %189 = vector.broadcast %cst_63 : f32 to vector<32x1xf32>
    %190 = arith.addf %186, %189 : vector<32x1xf32>
    %191 = math.rsqrt %190 : vector<32x1xf32>
    %192 = vector.broadcast %191 : vector<32x1xf32> to vector<32x32xf32>
    %193 = arith.mulf %188, %192 : vector<32x32xf32>
    %c0_64 = arith.constant 0 : index
    %c0_65 = arith.constant 0 : index
    %194 = vector.load %arg15[%c0_64, %c0_65] : memref<1x32xf32, #tpu.memory_space<vmem>>, vector<1x32xf32>
    %195 = vector.shape_cast %194 : vector<1x32xf32> to vector<32xf32>
    %196 = vector.shape_cast %195 : vector<32xf32> to vector<1x32xf32>
    %197 = vector.broadcast %196 : vector<1x32xf32> to vector<32x32xf32>
    %198 = arith.mulf %193, %197 : vector<32x32xf32>
    %c0_66 = arith.constant 0 : index
    %c0_67 = arith.constant 0 : index
    %199 = vector.load %arg16[%c0_66, %c0_67] : memref<1x32xf32, #tpu.memory_space<vmem>>, vector<1x32xf32>
    %200 = vector.shape_cast %199 : vector<1x32xf32> to vector<32xf32>
    %201 = vector.shape_cast %200 : vector<32xf32> to vector<1x32xf32>
    %202 = vector.broadcast %201 : vector<1x32xf32> to vector<32x32xf32>
    %203 = arith.addf %198, %202 : vector<32x32xf32>
    %204 = arith.truncf %203 : vector<32x32xf32> to vector<32x32xbf16>
    %c0_68 = arith.constant 0 : index
    %c0_69 = arith.constant 0 : index
    %205 = vector.load %arg17[%c0_68, %c0_69] : memref<32x128xbf16, #tpu.memory_space<vmem>>, vector<32x128xbf16>
    %cst_70 = arith.constant dense<0.000000e+00> : vector<32x128xf32>
    %206 = tpu.matmul %204, %205, %cst_70 {dimension_numbers = #tpu.dot_dimension_numbers<[1], [0], [0], [1], [0, 0, 1, 1], [], []>} : vector<32x32xbf16>, vector<32x128xbf16>, vector<32x128xf32> -> vector<32x128xf32>
    %c0_71 = arith.constant 0 : index
    %c0_72 = arith.constant 0 : index
    %207 = vector.load %arg18[%c0_71, %c0_72] : memref<1x128xf32, #tpu.memory_space<vmem>>, vector<1x128xf32>
    %208 = vector.shape_cast %207 : vector<1x128xf32> to vector<128xf32>
    %209 = vector.shape_cast %208 : vector<128xf32> to vector<1x128xf32>
    %210 = vector.broadcast %209 : vector<1x128xf32> to vector<32x128xf32>
    %211 = arith.addf %206, %210 : vector<32x128xf32>
    %cst_73 = arith.constant 5.000000e-01 : f32
    %212 = vector.broadcast %cst_73 : f32 to vector<32x128xf32>
    %213 = arith.mulf %212, %211 : vector<32x128xf32>
    %cst_74 = arith.constant 0.707106769 : f32
    %214 = vector.broadcast %cst_74 : f32 to vector<32x128xf32>
    %215 = arith.mulf %211, %214 : vector<32x128xf32>
    %cst_75 = arith.constant 0.000000e+00 : f32
    %216 = vector.broadcast %cst_75 : f32 to vector<32x128xf32>
    %217 = arith.cmpf oge, %215, %216 : vector<32x128xf32>
    %cst_76 = arith.constant 1.000000e+00 : f32
    %cst_77 = arith.constant -1.000000e+00 : f32
    %218 = vector.broadcast %cst_76 : f32 to vector<32x128xf32>
    %219 = vector.broadcast %cst_77 : f32 to vector<32x128xf32>
    %220 = arith.select %217, %218, %219 : vector<32x128xi1>, vector<32x128xf32>
    %221 = math.absf %215 : vector<32x128xf32>
    %cst_78 = arith.constant 0.327591091 : f32
    %222 = vector.broadcast %cst_78 : f32 to vector<32x128xf32>
    %223 = arith.mulf %222, %221 : vector<32x128xf32>
    %cst_79 = arith.constant 1.000000e+00 : f32
    %224 = vector.broadcast %cst_79 : f32 to vector<32x128xf32>
    %225 = arith.addf %224, %223 : vector<32x128xf32>
    %226 = tpu.reciprocal %225 {approx = true} : vector<32x128xf32> -> vector<32x128xf32>
    %cst_80 = arith.constant 1.06140542 : f32
    %227 = vector.broadcast %cst_80 : f32 to vector<32x128xf32>
    %228 = arith.mulf %227, %226 : vector<32x128xf32>
    %cst_81 = arith.constant -1.45315206 : f32
    %229 = vector.broadcast %cst_81 : f32 to vector<32x128xf32>
    %230 = arith.addf %228, %229 : vector<32x128xf32>
    %231 = arith.mulf %230, %226 : vector<32x128xf32>
    %cst_82 = arith.constant 1.42141378 : f32
    %232 = vector.broadcast %cst_82 : f32 to vector<32x128xf32>
    %233 = arith.addf %231, %232 : vector<32x128xf32>
    %234 = arith.mulf %233, %226 : vector<32x128xf32>
    %cst_83 = arith.constant -0.284496725 : f32
    %235 = vector.broadcast %cst_83 : f32 to vector<32x128xf32>
    %236 = arith.addf %234, %235 : vector<32x128xf32>
    %237 = arith.mulf %236, %226 : vector<32x128xf32>
    %cst_84 = arith.constant 0.254829586 : f32
    %238 = vector.broadcast %cst_84 : f32 to vector<32x128xf32>
    %239 = arith.addf %237, %238 : vector<32x128xf32>
    %240 = arith.mulf %239, %226 : vector<32x128xf32>
    %cst_85 = arith.constant 0.000000e+00 : f32
    %241 = vector.broadcast %cst_85 : f32 to vector<32x128xf32>
    %242 = arith.subf %241, %221 : vector<32x128xf32>
    %243 = arith.mulf %242, %221 : vector<32x128xf32>
    %244 = math.exp %243 : vector<32x128xf32>
    %245 = arith.mulf %240, %244 : vector<32x128xf32>
    %cst_86 = arith.constant 1.000000e+00 : f32
    %246 = vector.broadcast %cst_86 : f32 to vector<32x128xf32>
    %247 = arith.subf %246, %245 : vector<32x128xf32>
    %248 = arith.mulf %220, %247 : vector<32x128xf32>
    %cst_87 = arith.constant 1.000000e+00 : f32
    %249 = vector.broadcast %cst_87 : f32 to vector<32x128xf32>
    %250 = arith.addf %249, %248 : vector<32x128xf32>
    %251 = arith.mulf %213, %250 : vector<32x128xf32>
    %252 = arith.truncf %251 : vector<32x128xf32> to vector<32x128xbf16>
    %c0_88 = arith.constant 0 : index
    %c0_89 = arith.constant 0 : index
    %253 = vector.load %arg19[%c0_88, %c0_89] : memref<128x32xbf16, #tpu.memory_space<vmem>>, vector<128x32xbf16>
    %cst_90 = arith.constant dense<0.000000e+00> : vector<32x32xf32>
    %254 = tpu.matmul %252, %253, %cst_90 {dimension_numbers = #tpu.dot_dimension_numbers<[1], [0], [0], [1], [0, 0, 1, 1], [], []>} : vector<32x128xbf16>, vector<128x32xbf16>, vector<32x32xf32> -> vector<32x32xf32>
    %c0_91 = arith.constant 0 : index
    %c0_92 = arith.constant 0 : index
    %255 = vector.load %arg20[%c0_91, %c0_92] : memref<1x32xf32, #tpu.memory_space<vmem>>, vector<1x32xf32>
    %256 = vector.shape_cast %255 : vector<1x32xf32> to vector<32xf32>
    %257 = vector.shape_cast %256 : vector<32xf32> to vector<1x32xf32>
    %258 = vector.broadcast %257 : vector<1x32xf32> to vector<32x32xf32>
    %259 = arith.addf %254, %258 : vector<32x32xf32>
    %260 = arith.addf %175, %259 : vector<32x32xf32>
    %261 = arith.truncf %260 : vector<32x32xf32> to vector<32x32xbf16>
    %c0_93 = arith.constant 0 : index
    %c0_94 = arith.constant 0 : index
    %c0_95 = arith.constant 0 : index
    %262 = vector.load %arg21[%c0_93, %c0_94, %c0_95] : memref<1x32x32xbf16, #tpu.memory_space<vmem>>, vector<1x32x32xbf16>
    %263 = vector.shape_cast %262 : vector<1x32x32xbf16> to vector<32x32xbf16>
    %264 = vector.shape_cast %261 : vector<32x32xbf16> to vector<1x32x32xbf16>
    tpu.vector_store %arg21[%c0_93, %c0_94, %c0_95], %264 {strides = array<i32>} : memref<1x32x32xbf16, #tpu.memory_space<vmem>>, vector<1x32x32xbf16>,
    return
  }
  func.func @transform_0(%arg0: i32, %arg1: i32) -> (i32, i32, i32) {
    %c0_i32 = arith.constant 0 : i32
    %c0_i32_0 = arith.constant 0 : i32
    return %arg0, %arg1, %c0_i32 : i32, i32, i32
  }
  func.func @transform_1(%arg0: i32, %arg1: i32) -> (i32, i32) {
    %c0_i32 = arith.constant 0 : i32
    %c0_i32_0 = arith.constant 0 : i32
    %c0_i32_1 = arith.constant 0 : i32
    return %c0_i32, %c0_i32_0 : i32, i32
  }
  func.func @transform_2(%arg0: i32, %arg1: i32) -> (i32, i32) {
    %c0_i32 = arith.constant 0 : i32
    %c0_i32_0 = arith.constant 0 : i32
    %c0_i32_1 = arith.constant 0 : i32
    return %c0_i32, %c0_i32_0 : i32, i32
  }
  func.func @transform_3(%arg0: i32, %arg1: i32) -> (i32, i32) {
    %c0_i32 = arith.constant 0 : i32
    %c0_i32_0 = arith.constant 0 : i32
    %c0_i32_1 = arith.constant 0 : i32
    return %c0_i32, %c0_i32_0 : i32, i32
  }
  func.func @transform_4(%arg0: i32, %arg1: i32) -> (i32, i32) {
    %c0_i32 = arith.constant 0 : i32
    %c0_i32_0 = arith.constant 0 : i32
    %c0_i32_1 = arith.constant 0 : i32
    return %c0_i32, %c0_i32_0 : i32, i32
  }
  func.func @transform_5(%arg0: i32, %arg1: i32) -> (i32, i32) {
    %c0_i32 = arith.constant 0 : i32
    %c0_i32_0 = arith.constant 0 : i32
    %c0_i32_1 = arith.constant 0 : i32
    return %c0_i32, %c0_i32_0 : i32, i32
  }
  func.func @transform_6(%arg0: i32, %arg1: i32) -> (i32, i32) {
    %c0_i32 = arith.constant 0 : i32
    %c0_i32_0 = arith.constant 0 : i32
    %c0_i32_1 = arith.constant 0 : i32
    return %c0_i32, %c0_i32_0 : i32, i32
  }
  func.func @transform_7(%arg0: i32, %arg1: i32) -> (i32, i32) {
    %c0_i32 = arith.constant 0 : i32
    %c0_i32_0 = arith.constant 0 : i32
    %c0_i32_1 = arith.constant 0 : i32
    return %c0_i32, %c0_i32_0 : i32, i32
  }
  func.func @transform_8(%arg0: i32, %arg1: i32) -> (i32, i32) {
    %c0_i32 = arith.constant 0 : i32
    %c0_i32_0 = arith.constant 0 : i32
    %c0_i32_1 = arith.constant 0 : i32
    return %c0_i32, %c0_i32_0 : i32, i32
  }
  func.func @transform_9(%arg0: i32, %arg1: i32) -> (i32, i32, i32) {
    %c0_i32 = arith.constant 0 : i32
    %c0_i32_0 = arith.constant 0 : i32
    %c0_i32_1 = arith.constant 0 : i32
    %c0_i32_2 = arith.constant 0 : i32
    return %c0_i32, %c0_i32_0, %c0_i32_1 : i32, i32, i32
  }
  func.func @transform_10(%arg0: i32, %arg1: i32) -> (i32, i32, i32) {
    %c0_i32 = arith.constant 0 : i32
    %c0_i32_0 = arith.constant 0 : i32
    %c0_i32_1 = arith.constant 0 : i32
    return %arg1, %c0_i32, %c0_i32_0 : i32, i32, i32
  }
  func.func @transform_11(%arg0: i32, %arg1: i32) -> (i32, i32) {
    %c0_i32 = arith.constant 0 : i32
    %c0_i32_0 = arith.constant 0 : i32
    %c0_i32_1 = arith.constant 0 : i32
    return %c0_i32, %c0_i32_0 : i32, i32
  }
  func.func @transform_12(%arg0: i32, %arg1: i32) -> (i32, i32) {
    %c0_i32 = arith.constant 0 : i32
    %c0_i32_0 = arith.constant 0 : i32
    %c0_i32_1 = arith.constant 0 : i32
    return %c0_i32, %c0_i32_0 : i32, i32
  }
  func.func @transform_13(%arg0: i32, %arg1: i32) -> (i32, i32) {
    %c0_i32 = arith.constant 0 : i32
    %c0_i32_0 = arith.constant 0 : i32
    %c0_i32_1 = arith.constant 0 : i32
    return %c0_i32, %c0_i32_0 : i32, i32
  }
  func.func @transform_14(%arg0: i32, %arg1: i32) -> (i32, i32) {
    %c0_i32 = arith.constant 0 : i32
    %c0_i32_0 = arith.constant 0 : i32
    %c0_i32_1 = arith.constant 0 : i32
    return %c0_i32, %c0_i32_0 : i32, i32
  }
  func.func @transform_15(%arg0: i32, %arg1: i32) -> (i32, i32) {
    %c0_i32 = arith.constant 0 : i32
    %c0_i32_0 = arith.constant 0 : i32
    %c0_i32_1 = arith.constant 0 : i32
    return %c0_i32, %c0_i32_0 : i32, i32
  }
  func.func @transform_16(%arg0: i32, %arg1: i32) -> (i32, i32) {
    %c0_i32 = arith.constant 0 : i32
    %c0_i32_0 = arith.constant 0 : i32
    %c0_i32_1 = arith.constant 0 : i32
    return %c0_i32, %c0_i32_0 : i32, i32
  }
  func.func @transform_17(%arg0: i32, %arg1: i32) -> (i32, i32) {
    %c0_i32 = arith.constant 0 : i32
    %c0_i32_0 = arith.constant 0 : i32
    %c0_i32_1 = arith.constant 0 : i32
    return %c0_i32, %c0_i32_0 : i32, i32
  }
  func.func @transform_18(%arg0: i32, %arg1: i32) -> (i32, i32) {
    %c0_i32 = arith.constant 0 : i32
    %c0_i32_0 = arith.constant 0 : i32
    %c0_i32_1 = arith.constant 0 : i32
    return %c0_i32, %c0_i32_0 : i32, i32
  }
  func.func @transform_19(%arg0: i32, %arg1: i32) -> (i32, i32, i32) {
    %c0_i32 = arith.constant 0 : i32
    %c0_i32_0 = arith.constant 0 : i32
    return %arg0, %arg1, %c0_i32 : i32, i32, i32
  }
}

</mosaic_0001>

<bundles_post_ra>
// kernel: basic_layer_forward.2
= control target key start
LH: loop header
LB: loop body
LE: loop exit
PB: predicated region body
PF: predicated region fallthrough
CT: control target
= control target key end

     0   :  { %s5491_s0 = inlined_call_operand.hbm [shape: bf16[2,64,32], index: 0, kind: input, shape index: {}]   ;;  %s5492_s1 = inlined_call_operand.hbm [shape: f32[1,32], index: 1, kind: input, shape index: {}]   ;;  %s5493_s2 = inlined_call_operand.hbm [shape: f32[1,32], index: 2, kind: input, shape index: {}]   ;;  %s5494_s3 = inlined_call_operand.hbm [shape: bf16[32,32], index: 3, kind: input, shape index: {}]   ;;  %s5495_s4 = inlined_call_operand.hbm [shape: f32[1,32], index: 4, kind: input, shape index: {}]   ;;  %s5496_s5 = inlined_call_operand.hbm [shape: bf16[32,32], index: 5, kind: input, shape index: {}]   ;;  %s5497_s6 = inlined_call_operand.hbm [shape: f32[1,32], index: 6, kind: input, shape index: {}]   ;;  %s5498_s7 = inlined_call_operand.hbm [shape: bf16[32,32], index: 7, kind: input, shape index: {}]   ;;  %s5499_s8 = inlined_call_operand.hbm [shape: f32[1,32], index: 8, kind: input, shape index: {}]   ;;  %s5500_s9 = inlined_call_operand.hbm [shape: f32[4,16,16], index: 9, kind: input, shape index: {}]   ;;  %s5501_s10 = inlined_call_operand.hbm [shape: bf16[32,32], index: 10, kind: input, shape index: {}]   ;;  %s5502_s11 = inlined_call_operand.hbm [shape: f32[1,32], index: 11, kind: input, shape index: {}]   ;;  %s5503_s12 = inlined_call_operand.hbm [shape: f32[1,32], index: 12, kind: input, shape index: {}]   ;;  %s5504_s13 = inlined_call_operand.hbm [shape: f32[1,32], index: 13, kind: input, shape index: {}]   ;;  %s5505_s14 = inlined_call_operand.hbm [shape: bf16[32,128], index: 14, kind: input, shape index: {}]   ;;  %s5506_s15 = inlined_call_operand.hbm [shape: f32[1,128], index: 15, kind: input, shape index: {}]   ;;  %s5507_s16 = inlined_call_operand.hbm [shape: bf16[128,32], index: 16, kind: input, shape index: {}]   ;;  %s5508_s17 = inlined_call_operand.hbm [shape: f32[1,32], index: 17, kind: input, shape index: {}]   ;;  %s5509_s18 = inlined_call_operand.hbm [shape: bf16[2,64,32], index: 18, kind: output, shape index: {}]  }
   0x1   :  { %5534 = sst [smem:[#allocation52_spill]] %s5491_s0 }
   0x2   :  { %5535 = sst [smem:[#allocation53_spill]] %s5492_s1 }
   0x3   :  { %5536 = sst [smem:[#allocation54_spill]] %s5493_s2 }
   0x4   :  { %5537 = sst [smem:[#allocation55_spill]] %s5494_s3 }
   0x5   :  { %5538 = sst [smem:[#allocation56_spill]] %s5495_s4 }
   0x6   :  { %5539 = sst [smem:[#allocation57_spill]] %s5496_s5 }
   0x7   :  { %5540 = sst [smem:[#allocation58_spill]] %s5497_s6 }
   0x8   :  { %5541 = sst [smem:[#allocation59_spill]] %s5498_s7 }
   0x9   :  { %5542 = sst [smem:[#allocation60_spill]] %s5499_s8 }
   0xa   :  { %5543 = sst [smem:[#allocation61_spill]] %s5500_s9 }
   0xb   :  { %5544 = sst [smem:[#allocation62_spill]] %s5501_s10 }
   0xc   :  { %5545 = sst [smem:[#allocation63_spill]] %s5508_s17 }
   0xd   :  { %5546 = sst [smem:[#allocation64_spill]] %s5509_s18 }
   0xe   :  { %23 = vsyncpa [#allocation3], 0 }
   0xf   :  { %25 = vsyncpa [#allocation3 + $0x1], 0 }
  0x10   :  { %26 = vsyncpa [#allocation6], 0 }
  0x11   :  { %27 = vsyncpa [#allocation9], 0 }
  0x12   :  { %28 = vsyncpa [#allocation12], 0 }
  0x13   :  { %29 = vsyncpa [#allocation15], 0 }
  0x14   :  { %30 = vsyncpa [#allocation18], 0 }
  0x15   :  { %31 = vsyncpa [#allocation21], 0 }
  0x16   :  { %32 = vsyncpa [#allocation24], 0 }
  0x17   :  { %33 = vsyncpa [#allocation27], 0 }
  0x18   :  { %34 = vsyncpa [#allocation30], 0 }
  0x19   :  { %35 = vsyncpa [#allocation4], 0 }
  0x1a   :  { %37 = vsyncpa [#allocation4 + $0x1], 0  ;;  %s4592_s27 = smov 0   ;;  %s4594_s28 = smov 0  }
  0x1b   :  { %s4596_s29 = smov 0   ;;  %s4598_s30 = smov 0  }
  0x1c   :  { %s4600_s0 = smov 0   ;;  %s4602_s19 = smov 0  }
  0x1d   :  { %s4604_s1 = smov 0   ;;  %s4606_s20 = smov 0  }
  0x1e LB: > { %5547 = sst [smem:[#allocation43_spill]] %s4436_s27  ;;  %s5513_s21 = sadd.s32 4294967295, %s4464_s20   ;;  %s4464_s20 = sphi %s4606_s20, %s43_s20   ;;  %s4460_s1 = sphi %s4604_s1, %s5609_s1   ;;  %s4456_s19 = sphi %s4602_s19, %s5608_s19   ;;  %s4452_s0 = sphi %s4600_s0, %s5607_s0   ;;  %s4448_s30 = sphi %s4598_s30, %s5603_s30   ;;  %s4444_s29 = sphi %s4596_s29, %s5606_s29   ;;  %s4440_s28 = sphi %s4594_s28, %s5602_s28   ;;  %s4436_s27 = sphi %s4592_s27, %s5601_s27  }
  0x1f   : > { %5548 = sst [smem:[#allocation44_spill]] %s4440_s28  ;;  %p3069_p0 = scmp.ge.s32.totalorder %s4464_s20, 1 }
  0x20   : > { %5549 = sst [smem:[#allocation45_spill]] %s4444_s29  ;;  %p4636_p1 = scmp.eq.s32.totalorder %s5513_s21, 0 }
  0x21   : > { %5550 = sst [smem:[#allocation46_spill]] %s4448_s30  ;;  %p473_p2 = scmp.lt.s32.totalorder %s4464_s20, 5 }
  0x22   : > { %5551 = sst [smem:[#allocation47_spill]] %s4452_s0  ;;  %s4466_s23 = smov [#allocation5]  }
  0x23   : > { %5552 = sst [smem:[#allocation48_spill]] %s4456_s19  ;;  %p4641_p3 = pnand %p3069_p0, %p473_p2 }
  0x24   : > { %5553 = sst [smem:[#allocation49_spill]] %s4460_s1  ;;  %s486_s24 = sshll.u32 %s4466_s23, 4  ;;  %s487_s24 = int_to_ptr.vmem [resolvable:$true] %s486_s24 }
  0x25   : > { %s5554_s22 = scalar_select %p4636_p1, 1, 0 }
  0x26   : > { %s5556_s2 = scalar_select %p4641_p3, 1, 0 }
  0x27   : > { %5555 = sst [smem:[#allocation50_spill]] %s5554_s22  ;;  %p3523_p4 = pneg %p4641_p3 }
  0x28   : > { %5557 = sst [smem:[#allocation51_spill]] %s5556_s2  ;;  %s4467_s25 = smov [#allocation8]  }
  0x29   : > { %s507_s26 = sshll.u32 %s4467_s25, 4  ;;  %p4649_p5 = pnand %p3523_p4, %p4636_p1  ;;  %s4653_s26 = int_to_ptr.vmem [resolvable:$true] %s507_s26 }
  0x2a   : > { %s4468_s18 = smov [#allocation11]   ;;  %s5559_s28 = sld [smem:[#allocation53_spill]] }
  0x2b   : > { %s4655_s0 = sshll.u32 %s4468_s18, 4  ;;  %p4665_p7 = pneg %p4649_p5  ;;  %s532_s0 = int_to_ptr.vmem [resolvable:$true] %s4655_s0 }
  0x30   : > { %s5560_s17 = smov %s5559_s28  ;;  %s3824_s23 = scalar_lea.hbm %s5559_s28, 16 }
  0x31   : > { %p3825_p6 = scmp.ne.s32.totalorder %s5560_s17, %s3824_s23  ;;  %p3831_p10 = scmp.lt.u32.totalorder %s3824_s23, %s5560_s17 }
  0x33   : > { %p3827_p8 = pnand %p4665_p7, %p3825_p6 }
  0x35   : > { %p3828_p9 = pneg %p3827_p8 }
  0x37   : > { %p3833_p11 = pnand %p3831_p10, %p3828_p9 }
  0x39   : > { %3836 = shalt.err (!%p3833_p11)
}
  0x3a   : > { %s3837_s27 = scalar_lea.vmem %s487_s24, 16  ;;  %s3844_s28 = scalar_lea.vmem %s487_s24, 32 }
  0x3b   : > { %p3838_p12 = scmp.ne.s32.totalorder %s487_s24, %s3837_s27  ;;  %p3845_p2 = scmp.lt.s32.totalorder %s487_s24, %s487_s24 }
  0x3c   : > { %p3846_p4 = scmp.lt.s32.totalorder %s3844_s28, %s3837_s27 }
  0x3d   : > { %p3840_p13 = pnand %p3838_p12, %p4665_p7 }
  0x3e   : > { %p3847_p3 = por %p3846_p4, %p3845_p2 }
  0x3f   : > { %p3841_p0 = pneg %p3840_p13 }
  0x41   : > { %p3848_p1 = pnand %p3847_p3, %p3841_p0 }
  0x43   : > { %3851 = shalt.err (!%p3848_p1)
}
  0x44   : > { %3526 = dma.hbm_to_vmem [thread:$0]  (!%p4649_p5), %s5560_s17, 16, %s487_s24, [#allocation6]  }
  0x45   : > { %s5562_s3 = sld [smem:[#allocation55_spill]] }
  0x4b   : > { %s3852_s23 = scalar_lea.hbm %s5562_s3, 256 }
  0x4c   : > { %p3853_p6 = scmp.ne.s32.totalorder %s5562_s3, %s3852_s23  ;;  %p3859_p1 = scmp.lt.u32.totalorder %s3852_s23, %s5562_s3 }
  0x4e   : > { %p3855_p8 = pnand %p3853_p6, %p4665_p7 }
  0x50   : > { %p3856_p9 = pneg %p3855_p8 }
  0x52   : > { %p3861_p3 = pnand %p3859_p1, %p3856_p9 }
  0x54   : > { %3864 = shalt.err (!%p3861_p3)
}
  0x55   : > { %s3865_s24 = scalar_lea.vmem %s4653_s26, 256  ;;  %p3873_p13 = scmp.lt.s32.totalorder %s4653_s26, %s4653_s26 }
  0x56   : > { %p3866_p10 = scmp.ne.s32.totalorder %s4653_s26, %s3865_s24  ;;  %p3874_p0 = scmp.lt.s32.totalorder %s3865_s24, %s3865_s24 }
  0x58   : > { %p3868_p11 = pnand %p3866_p10, %p4665_p7  ;;  %p3875_p2 = por %p3874_p0, %p3873_p13 }
  0x5a   : > { %p3869_p12 = pneg %p3868_p11 }
  0x5c   : > { %p3876_p4 = pnand %p3875_p2, %p3869_p12 }
  0x5e   : > { %3879 = shalt.err (!%p3876_p4)
}
  0x5f   : > { %s5527_s1 = smov 64   ;;  %s5529_s29 = smov 4  }
  0x60   : > { %3532 = dma.hbm_to_vmem [thread:$0]  (!%p4649_p5), %s5562_s3, 256, %s4653_s26, [#allocation9], %s5527_s1, %s5527_s1, %s5529_s29  }
  0x61   : > { %s5563_s5 = sld [smem:[#allocation57_spill]] }
  0x67   : > { %s3880_s18 = scalar_lea.hbm %s5563_s5, 256 }
  0x68   : > { %p3881_p6 = scmp.ne.s32.totalorder %s5563_s5, %s3880_s18  ;;  %p3887_p1 = scmp.lt.u32.totalorder %s3880_s18, %s5563_s5 }
  0x6a   : > { %p3883_p8 = pnand %p3881_p6, %p4665_p7 }
  0x6c   : > { %p3884_p9 = pneg %p3883_p8 }
  0x6e   : > { %p3889_p3 = pnand %p3887_p1, %p3884_p9 }
  0x70   : > { %3892 = shalt.err (!%p3889_p3)
}
  0x71   : > { %s3893_s30 = scalar_lea.vmem %s532_s0, 256  ;;  %p3901_p13 = scmp.lt.s32.totalorder %s532_s0, %s532_s0 }
  0x72   : > { %p3894_p10 = scmp.ne.s32.totalorder %s532_s0, %s3893_s30  ;;  %p3902_p0 = scmp.lt.s32.totalorder %s3893_s30, %s3893_s30 }
  0x74   : > { %p3896_p11 = pnand %p3894_p10, %p4665_p7  ;;  %p3903_p2 = por %p3902_p0, %p3901_p13 }
  0x76   : > { %p3897_p12 = pneg %p3896_p11 }
  0x78   : > { %p3904_p4 = pnand %p3903_p2, %p3897_p12 }
  0x7a   : > { %3907 = shalt.err (!%p3904_p4)
}
  0x7b   : > { %3538 = dma.hbm_to_vmem [thread:$0]  (!%p4649_p5), %s5563_s5, 256, %s532_s0, [#allocation12], %s5527_s1, %s5527_s1, %s5529_s29  }
  0x7c   : > { %s4471_s22 = smov [#allocation14]   ;;  %s4472_s23 = smov [#allocation17]  }
  0x7d   : > { %s555_s2 = sshll.u32 %s4471_s22, 4  ;;  %s579_s18 = sshll.u32 %s4472_s23, 4  ;;  %s556_s2 = int_to_ptr.vmem [resolvable:$true] %s555_s2  ;;  %s580_s18 = int_to_ptr.vmem [resolvable:$true] %s579_s18 }
  0x7e   : > { %s5564_s7 = sld [smem:[#allocation59_spill]] }
  0x84   : > { %s3908_s24 = scalar_lea.hbm %s5564_s7, 256 }
  0x85   : > { %p3909_p6 = scmp.ne.s32.totalorder %s5564_s7, %s3908_s24  ;;  %p3915_p1 = scmp.lt.u32.totalorder %s3908_s24, %s5564_s7 }
  0x87   : > { %p3911_p8 = pnand %p3909_p6, %p4665_p7 }
  0x89   : > { %p3912_p9 = pneg %p3911_p8 }
  0x8b   : > { %p3917_p3 = pnand %p3915_p1, %p3912_p9 }
  0x8d   : > { %3920 = shalt.err (!%p3917_p3)
}
  0x8e   : > { %s3921_s0 = scalar_lea.vmem %s556_s2, 256  ;;  %p3929_p13 = scmp.lt.s32.totalorder %s556_s2, %s556_s2 }
  0x8f   : > { %p3922_p10 = scmp.ne.s32.totalorder %s556_s2, %s3921_s0  ;;  %p3930_p0 = scmp.lt.s32.totalorder %s3921_s0, %s3921_s0 }
  0x91   : > { %p3924_p11 = pnand %p3922_p10, %p4665_p7  ;;  %p3931_p2 = por %p3930_p0, %p3929_p13 }
  0x93   : > { %p3925_p12 = pneg %p3924_p11 }
  0x95   : > { %p3932_p4 = pnand %p3931_p2, %p3925_p12 }
  0x97   : > { %3935 = shalt.err (!%p3932_p4)
}
  0x98   : > { %3544 = dma.hbm_to_vmem [thread:$0]  (!%p4649_p5), %s5564_s7, 256, %s556_s2, [#allocation15], %s5527_s1, %s5527_s1, %s5529_s29  }
  0x99   : > { %s5565_s9 = sld [smem:[#allocation61_spill]] }
  0x9f   : > { %s3936_s23 = scalar_lea.hbm %s5565_s9, 1024 }
  0xa0   : > { %p3937_p6 = scmp.ne.s32.totalorder %s5565_s9, %s3936_s23  ;;  %p3943_p1 = scmp.lt.u32.totalorder %s3936_s23, %s5565_s9 }
  0xa2   : > { %p3939_p8 = pnand %p3937_p6, %p4665_p7 }
  0xa4   : > { %p3940_p9 = pneg %p3939_p8 }
  0xa6   : > { %p3945_p3 = pnand %p3943_p1, %p3940_p9 }
  0xa8   : > { %3948 = shalt.err (!%p3945_p3)
}
  0xa9   : > { %s3949_s17 = scalar_lea.vmem %s580_s18, 1024  ;;  %p3957_p13 = scmp.lt.s32.totalorder %s580_s18, %s580_s18 }
  0xaa   : > { %p3950_p10 = scmp.ne.s32.totalorder %s580_s18, %s3949_s17  ;;  %p3958_p0 = scmp.lt.s32.totalorder %s3949_s17, %s3949_s17 }
  0xac   : > { %p3952_p11 = pnand %p3950_p10, %p4665_p7  ;;  %p3959_p2 = por %p3958_p0, %p3957_p13 }
  0xae   : > { %p3953_p12 = pneg %p3952_p11 }
  0xb0   : > { %p3960_p4 = pnand %p3959_p2, %p3953_p12 }
  0xb2   : > { %3963 = shalt.err (!%p3960_p4)
}
  0xb3   : > { %s4473_s2 = smov 128   ;;  %s4474_s0 = smov 8  }
  0xb4   : > { %3550 = dma.hbm_to_vmem [thread:$0]  (!%p4649_p5), %s5565_s9, 1024, %s580_s18, [#allocation18], %s4473_s2, %s4473_s2, %s4474_s0  }
  0xb5   : > { %s4475_s26 = smov [#allocation20]   ;;  %s4476_s23 = smov [#allocation23]  }
  0xb6   : > { %s606_s22 = sshll.u32 %s4475_s26, 4  ;;  %s628_s27 = sshll.u32 %s4476_s23, 4  ;;  %s607_s22 = int_to_ptr.vmem [resolvable:$true] %s606_s22  ;;  %s629_s27 = int_to_ptr.vmem [resolvable:$true] %s628_s27 }
  0xb7   : > { %s3964_s30 = scalar_lea.hbm %s5502_s11, 16 }
  0xb8   : > { %p3965_p6 = scmp.ne.s32.totalorder %s5502_s11, %s3964_s30  ;;  %p3971_p1 = scmp.lt.u32.totalorder %s3964_s30, %s5502_s11 }
  0xba   : > { %p3967_p8 = pnand %p3965_p6, %p4665_p7 }
  0xbc   : > { %p3968_p9 = pneg %p3967_p8 }
  0xbe   : > { %p3973_p3 = pnand %p3971_p1, %p3968_p9 }
  0xc0   : > { %3976 = shalt.err (!%p3973_p3)
}
  0xc1   : > { %s3977_s18 = scalar_lea.vmem %s607_s22, 16  ;;  %s3984_s2 = scalar_lea.vmem %s607_s22, 32 }
  0xc2   : > { %p3978_p10 = scmp.ne.s32.totalorder %s607_s22, %s3977_s18  ;;  %p3985_p13 = scmp.lt.s32.totalorder %s607_s22, %s607_s22 }
  0xc3   : > { %p3986_p0 = scmp.lt.s32.totalorder %s3984_s2, %s3977_s18 }
  0xc4   : > { %p3980_p11 = pnand %p3978_p10, %p4665_p7 }
  0xc5   : > { %p3987_p2 = por %p3986_p0, %p3985_p13 }
  0xc6   : > { %p3981_p12 = pneg %p3980_p11 }
  0xc8   : > { %p3988_p4 = pnand %p3987_p2, %p3981_p12 }
  0xca   : > { %3991 = shalt.err (!%p3988_p4)
}
  0xcb   : > { %3556 = dma.hbm_to_vmem [thread:$0]  (!%p4649_p5), %s5502_s11, 16, %s607_s22, [#allocation21]  }
  0xcc   : > { %s3992_s3 = scalar_lea.hbm %s5504_s13, 16 }
  0xcd   : > { %p3993_p6 = scmp.ne.s32.totalorder %s5504_s13, %s3992_s3  ;;  %p3999_p1 = scmp.lt.u32.totalorder %s3992_s3, %s5504_s13 }
  0xcf   : > { %p3995_p8 = pnand %p3993_p6, %p4665_p7 }
  0xd1   : > { %p3996_p9 = pneg %p3995_p8 }
  0xd3   : > { %p4001_p3 = pnand %p3999_p1, %p3996_p9 }
  0xd5   : > { %4004 = shalt.err (!%p4001_p3)
}
  0xd6   : > { %s4005_s24 = scalar_lea.vmem %s629_s27, 16  ;;  %s4012_s22 = scalar_lea.vmem %s629_s27, 32 }
  0xd7   : > { %p4006_p10 = scmp.ne.s32.totalorder %s629_s27, %s4005_s24  ;;  %p4013_p13 = scmp.lt.s32.totalorder %s629_s27, %s629_s27 }
  0xd8   : > { %p4014_p0 = scmp.lt.s32.totalorder %s4012_s22, %s4005_s24 }
  0xd9   : > { %p4008_p11 = pnand %p4006_p10, %p4665_p7 }
  0xda   : > { %p4015_p2 = por %p4014_p0, %p4013_p13 }
  0xdb   : > { %p4009_p12 = pneg %p4008_p11 }
  0xdd   : > { %p4016_p4 = pnand %p4015_p2, %p4009_p12 }
  0xdf   : > { %4019 = shalt.err (!%p4016_p4)
}
  0xe0   : > { %3562 = dma.hbm_to_vmem [thread:$0]  (!%p4649_p5), %s5504_s13, 16, %s629_s27, [#allocation24]  }
  0xe1   : > { %s4477_s18 = smov [#allocation26]   ;;  %s4478_s1 = smov [#allocation7]  }
  0xe2   : > { %s652_s2 = sshll.u32 %s4477_s18, 4  ;;  %s497_s0 = sshll.u32 %s4478_s1, 4  ;;  %s653_s2 = int_to_ptr.vmem [resolvable:$true] %s652_s2  ;;  %s498_s0 = int_to_ptr.vmem [resolvable:$true] %s497_s0 }
  0xe3   : > { %s4020_s3 = scalar_lea.hbm %s5506_s15, 16 }
  0xe4   : > { %p4021_p6 = scmp.ne.s32.totalorder %s5506_s15, %s4020_s3  ;;  %p4027_p1 = scmp.lt.u32.totalorder %s4020_s3, %s5506_s15 }
  0xe6   : > { %p4023_p8 = pnand %p4021_p6, %p4665_p7 }
  0xe8   : > { %p4024_p9 = pneg %p4023_p8 }
  0xea   : > { %p4029_p3 = pnand %p4027_p1, %p4024_p9 }
  0xec   : > { %4032 = shalt.err (!%p4029_p3)
}
  0xed   : > { %s4033_s27 = scalar_lea.vmem %s653_s2, 16  ;;  %s4040_s24 = scalar_lea.vmem %s653_s2, 32 }
  0xee   : > { %p4034_p10 = scmp.ne.s32.totalorder %s653_s2, %s4033_s27  ;;  %p4041_p13 = scmp.lt.s32.totalorder %s653_s2, %s653_s2 }
  0xef   : > { %p4042_p0 = scmp.lt.s32.totalorder %s4040_s24, %s4033_s27 }
  0xf0   : > { %p4036_p11 = pnand %p4034_p10, %p4665_p7 }
  0xf1   : > { %p4043_p2 = por %p4042_p0, %p4041_p13 }
  0xf2   : > { %p4037_p12 = pneg %p4036_p11 }
  0xf4   : > { %p4044_p4 = pnand %p4043_p2, %p4037_p12 }
  0xf6   : > { %4047 = shalt.err (!%p4044_p4)
}
  0xf7   : > { %3568 = dma.hbm_to_vmem [thread:$0]  (!%p4649_p5), %s5506_s15, 16, %s653_s2, [#allocation27]  }
  0xf8   : > { %s5566_s1 = sld [smem:[#allocation54_spill]] }
  0xfe   : > { %s5567_s5 = smov %s5566_s1  ;;  %s4048_s29 = scalar_lea.hbm %s5566_s1, 16 }
  0xff   : > { %p4049_p6 = scmp.ne.s32.totalorder %s5567_s5, %s4048_s29  ;;  %p4055_p1 = scmp.lt.u32.totalorder %s4048_s29, %s5567_s5 }
 0x101   : > { %p4051_p8 = pnand %p4049_p6, %p4665_p7 }
 0x103   : > { %p4052_p9 = pneg %p4051_p8 }
 0x105   : > { %p4057_p3 = pnand %p4055_p1, %p4052_p9 }
 0x107   : > { %4060 = shalt.err (!%p4057_p3)
}
 0x108   : > { %s4061_s28 = scalar_lea.vmem %s498_s0, 16  ;;  %s4068_s2 = scalar_lea.vmem %s498_s0, 32 }
 0x109   : > { %p4062_p10 = scmp.ne.s32.totalorder %s498_s0, %s4061_s28  ;;  %p4069_p13 = scmp.lt.s32.totalorder %s498_s0, %s498_s0 }
 0x10a   : > { %p4070_p0 = scmp.lt.s32.totalorder %s4068_s2, %s4061_s28 }
 0x10b   : > { %p4064_p11 = pnand %p4062_p10, %p4665_p7 }
 0x10c   : > { %p4071_p2 = por %p4070_p0, %p4069_p13 }
 0x10d   : > { %p4065_p12 = pneg %p4064_p11 }
 0x10f   : > { %p4072_p4 = pnand %p4071_p2, %p4065_p12 }
 0x111   : > { %4075 = shalt.err (!%p4072_p4)
}
 0x112   : > { %3529 = dma.hbm_to_vmem [thread:$0]  (!%p4649_p5), %s5567_s5, 16, %s498_s0, [#allocation6]  }
 0x113   : > { %s4479_s22 = smov [#allocation10]   ;;  %s4480_s17 = smov [#allocation13]  }
 0x114   : > { %s521_s30 = sshll.u32 %s4479_s22, 4  ;;  %s545_s18 = sshll.u32 %s4480_s17, 4  ;;  %s522_s30 = int_to_ptr.vmem [resolvable:$true] %s521_s30  ;;  %s546_s18 = int_to_ptr.vmem [resolvable:$true] %s545_s18 }
 0x115   : > { %s5568_s4 = sld [smem:[#allocation56_spill]] }
 0x11b   : > { %s4076_s3 = scalar_lea.hbm %s5568_s4, 16 }
 0x11c   : > { %p4077_p6 = scmp.ne.s32.totalorder %s5568_s4, %s4076_s3  ;;  %p4083_p1 = scmp.lt.u32.totalorder %s4076_s3, %s5568_s4 }
 0x11e   : > { %p4079_p8 = pnand %p4077_p6, %p4665_p7 }
 0x120   : > { %p4080_p9 = pneg %p4079_p8 }
 0x122   : > { %p4085_p3 = pnand %p4083_p1, %p4080_p9 }
 0x124   : > { %4088 = shalt.err (!%p4085_p3)
}
 0x125   : > { %s4089_s0 = scalar_lea.vmem %s522_s30, 16  ;;  %s4096_s2 = scalar_lea.vmem %s522_s30, 32 }
 0x126   : > { %p4090_p10 = scmp.ne.s32.totalorder %s522_s30, %s4089_s0  ;;  %p4097_p13 = scmp.lt.s32.totalorder %s522_s30, %s522_s30 }
 0x127   : > { %p4098_p0 = scmp.lt.s32.totalorder %s4096_s2, %s4089_s0 }
 0x128   : > { %p4092_p11 = pnand %p4090_p10, %p4665_p7 }
 0x129   : > { %p4099_p2 = por %p4098_p0, %p4097_p13 }
 0x12a   : > { %p4093_p12 = pneg %p4092_p11 }
 0x12c   : > { %p4100_p4 = pnand %p4099_p2, %p4093_p12 }
 0x12e   : > { %4103 = shalt.err (!%p4100_p4)
}
 0x12f   : > { %3535 = dma.hbm_to_vmem [thread:$0]  (!%p4649_p5), %s5568_s4, 16, %s522_s30, [#allocation9]  }
 0x130   : > { %s5569_s6 = sld [smem:[#allocation58_spill]] }
 0x136   : > { %s4104_s1 = scalar_lea.hbm %s5569_s6, 16 }
 0x137   : > { %p4105_p6 = scmp.ne.s32.totalorder %s5569_s6, %s4104_s1  ;;  %p4111_p1 = scmp.lt.u32.totalorder %s4104_s1, %s5569_s6 }
 0x139   : > { %p4107_p8 = pnand %p4105_p6, %p4665_p7 }
 0x13b   : > { %p4108_p9 = pneg %p4107_p8 }
 0x13d   : > { %p4113_p3 = pnand %p4111_p1, %p4108_p9 }
 0x13f   : > { %4116 = shalt.err (!%p4113_p3)
}
 0x140   : > { %s4117_s23 = scalar_lea.vmem %s546_s18, 16  ;;  %s4124_s30 = scalar_lea.vmem %s546_s18, 32 }
 0x141   : > { %p4118_p10 = scmp.ne.s32.totalorder %s546_s18, %s4117_s23  ;;  %p4125_p13 = scmp.lt.s32.totalorder %s546_s18, %s546_s18 }
 0x142   : > { %p4126_p0 = scmp.lt.s32.totalorder %s4124_s30, %s4117_s23 }
 0x143   : > { %p4120_p11 = pnand %p4118_p10, %p4665_p7 }
 0x144   : > { %p4127_p2 = por %p4126_p0, %p4125_p13 }
 0x145   : > { %p4121_p12 = pneg %p4120_p11 }
 0x147   : > { %p4128_p4 = pnand %p4127_p2, %p4121_p12 }
 0x149   : > { %4131 = shalt.err (!%p4128_p4)
}
 0x14a   : > { %3541 = dma.hbm_to_vmem [thread:$0]  (!%p4649_p5), %s5569_s6, 16, %s546_s18, [#allocation12]  }
 0x14b   : > { %s4481_s2 = smov [#allocation16]   ;;  %s4482_s24 = smov [#allocation19]  }
 0x14c   : > { %s569_s27 = sshll.u32 %s4481_s2, 4  ;;  %s592_s22 = sshll.u32 %s4482_s24, 4  ;;  %s570_s27 = int_to_ptr.vmem [resolvable:$true] %s569_s27  ;;  %s593_s22 = int_to_ptr.vmem [resolvable:$true] %s592_s22 }
 0x14d   : > { %s5570_s8 = sld [smem:[#allocation60_spill]] }
 0x153   : > { %s4132_s29 = scalar_lea.hbm %s5570_s8, 16 }
 0x154   : > { %p4133_p6 = scmp.ne.s32.totalorder %s5570_s8, %s4132_s29  ;;  %p4139_p1 = scmp.lt.u32.totalorder %s4132_s29, %s5570_s8 }
 0x156   : > { %p4135_p8 = pnand %p4133_p6, %p4665_p7 }
 0x158   : > { %p4136_p9 = pneg %p4135_p8 }
 0x15a   : > { %p4141_p3 = pnand %p4139_p1, %p4136_p9 }
 0x15c   : > { %4144 = shalt.err (!%p4141_p3)
}
 0x15d   : > { %s4145_s18 = scalar_lea.vmem %s570_s27, 16  ;;  %s4152_s30 = scalar_lea.vmem %s570_s27, 32 }
 0x15e   : > { %p4146_p10 = scmp.ne.s32.totalorder %s570_s27, %s4145_s18  ;;  %p4153_p13 = scmp.lt.s32.totalorder %s570_s27, %s570_s27 }
 0x15f   : > { %p4154_p0 = scmp.lt.s32.totalorder %s4152_s30, %s4145_s18 }
 0x160   : > { %p4148_p11 = pnand %p4146_p10, %p4665_p7 }
 0x161   : > { %p4155_p2 = por %p4154_p0, %p4153_p13 }
 0x162   : > { %p4149_p12 = pneg %p4148_p11 }
 0x164   : > { %p4156_p4 = pnand %p4155_p2, %p4149_p12 }
 0x166   : > { %4159 = shalt.err (!%p4156_p4)
}
 0x167   : > { %3547 = dma.hbm_to_vmem [thread:$0]  (!%p4649_p5), %s5570_s8, 16, %s570_s27, [#allocation15]  }
 0x168   : > { %s5571_s10 = sld [smem:[#allocation62_spill]] }
 0x16e   : > { %s4160_s17 = scalar_lea.hbm %s5571_s10, 256 }
 0x16f   : > { %p4161_p6 = scmp.ne.s32.totalorder %s5571_s10, %s4160_s17  ;;  %p4167_p1 = scmp.lt.u32.totalorder %s4160_s17, %s5571_s10 }
 0x171   : > { %p4163_p8 = pnand %p4161_p6, %p4665_p7 }
 0x173   : > { %p4164_p9 = pneg %p4163_p8 }
 0x175   : > { %p4169_p3 = pnand %p4167_p1, %p4164_p9 }
 0x177   : > { %4172 = shalt.err (!%p4169_p3)
}
 0x178   : > { %s4173_s26 = scalar_lea.vmem %s593_s22, 256  ;;  %p4181_p13 = scmp.lt.s32.totalorder %s593_s22, %s593_s22 }
 0x179   : > { %p4174_p10 = scmp.ne.s32.totalorder %s593_s22, %s4173_s26  ;;  %p4182_p0 = scmp.lt.s32.totalorder %s4173_s26, %s4173_s26 }
 0x17b   : > { %p4176_p11 = pnand %p4174_p10, %p4665_p7  ;;  %p4183_p2 = por %p4182_p0, %p4181_p13 }
 0x17d   : > { %p4177_p12 = pneg %p4176_p11 }
 0x17f   : > { %p4184_p4 = pnand %p4183_p2, %p4177_p12 }
 0x181   : > { %4187 = shalt.err (!%p4184_p4)
}
 0x182   : > { %s5572_s27 = smov 4   ;;  %s5573_s23 = smov 64  }
 0x183   : > { %3553 = dma.hbm_to_vmem [thread:$0]  (!%p4649_p5), %s5571_s10, 256, %s593_s22, [#allocation18], %s5573_s23, %s5573_s23, %s5572_s27  }
 0x184   : > { %s4483_s28 = smov [#allocation22]   ;;  %s4484_s2 = smov [#allocation25]  }
 0x185   : > { %s617_s0 = sshll.u32 %s4483_s28, 4  ;;  %s638_s24 = sshll.u32 %s4484_s2, 4  ;;  %s618_s0 = int_to_ptr.vmem [resolvable:$true] %s617_s0  ;;  %s639_s24 = int_to_ptr.vmem [resolvable:$true] %s638_s24 }
 0x186   : > { %s4188_s29 = scalar_lea.hbm %s5503_s12, 16 }
 0x187   : > { %p4189_p6 = scmp.ne.s32.totalorder %s5503_s12, %s4188_s29  ;;  %p4195_p1 = scmp.lt.u32.totalorder %s4188_s29, %s5503_s12 }
 0x189   : > { %p4191_p8 = pnand %p4189_p6, %p4665_p7 }
 0x18b   : > { %p4192_p9 = pneg %p4191_p8 }
 0x18d   : > { %p4197_p3 = pnand %p4195_p1, %p4192_p9 }
 0x18f   : > { %4200 = shalt.err (!%p4197_p3)
}
 0x190   : > { %s4201_s22 = scalar_lea.vmem %s618_s0, 16  ;;  %s4208_s30 = scalar_lea.vmem %s618_s0, 32 }
 0x191   : > { %p4202_p10 = scmp.ne.s32.totalorder %s618_s0, %s4201_s22  ;;  %p4209_p13 = scmp.lt.s32.totalorder %s618_s0, %s618_s0 }
 0x192   : > { %p4210_p0 = scmp.lt.s32.totalorder %s4208_s30, %s4201_s22 }
 0x193   : > { %p4204_p11 = pnand %p4202_p10, %p4665_p7 }
 0x194   : > { %p4211_p2 = por %p4210_p0, %p4209_p13 }
 0x195   : > { %p4205_p12 = pneg %p4204_p11 }
 0x197   : > { %p4212_p4 = pnand %p4211_p2, %p4205_p12 }
 0x199   : > { %4215 = shalt.err (!%p4212_p4)
}
 0x19a   : > { %3559 = dma.hbm_to_vmem [thread:$0]  (!%p4649_p5), %s5503_s12, 16, %s618_s0, [#allocation21]  }
 0x19b   : > { %s4216_s29 = scalar_lea.hbm %s5505_s14, 256 }
 0x19c   : > { %p4217_p6 = scmp.ne.s32.totalorder %s5505_s14, %s4216_s29  ;;  %p4223_p1 = scmp.lt.u32.totalorder %s4216_s29, %s5505_s14 }
 0x19e   : > { %p4219_p8 = pnand %p4217_p6, %p4665_p7 }
 0x1a0   : > { %p4220_p9 = pneg %p4219_p8 }
 0x1a2   : > { %p4225_p3 = pnand %p4223_p1, %p4220_p9 }
 0x1a4   : > { %4228 = shalt.err (!%p4225_p3)
}
 0x1a5   : > { %s4229_s22 = scalar_lea.vmem %s639_s24, 256  ;;  %p4237_p13 = scmp.lt.s32.totalorder %s639_s24, %s639_s24 }
 0x1a6   : > { %p4230_p10 = scmp.ne.s32.totalorder %s639_s24, %s4229_s22  ;;  %p4238_p0 = scmp.lt.s32.totalorder %s4229_s22, %s4229_s22 }
 0x1a8   : > { %p4232_p11 = pnand %p4230_p10, %p4665_p7  ;;  %p4239_p2 = por %p4238_p0, %p4237_p13 }
 0x1aa   : > { %p4233_p12 = pneg %p4232_p11 }
 0x1ac   : > { %p4240_p4 = pnand %p4239_p2, %p4233_p12 }
 0x1ae   : > { %4243 = shalt.err (!%p4240_p4)
}
 0x1af   : > { %3565 = dma.hbm_to_vmem [thread:$0]  (!%p4649_p5), %s5505_s14, 256, %s639_s24, [#allocation24], %s5573_s23, %s5573_s23, %s5572_s27  }
 0x1b0   : > { %s4485_s28 = smov [#allocation28]   ;;  %s4486_s17 = smov [#allocation29]  }
 0x1b1   : > { %s662_s2 = sshll.u32 %s4485_s28, 4  ;;  %s676_s1 = sshll.u32 %s4486_s17, 4  ;;  %s663_s2 = int_to_ptr.vmem [resolvable:$true] %s662_s2  ;;  %s677_s1 = int_to_ptr.vmem [resolvable:$true] %s676_s1 }
 0x1b2   : > { %s4244_s19 = scalar_lea.hbm %s5507_s16, 1024 }
 0x1b3   : > { %p4245_p6 = scmp.ne.s32.totalorder %s5507_s16, %s4244_s19  ;;  %p4251_p1 = scmp.lt.u32.totalorder %s4244_s19, %s5507_s16 }
 0x1b5   : > { %p4247_p8 = pnand %p4245_p6, %p4665_p7 }
 0x1b7   : > { %p4248_p9 = pneg %p4247_p8 }
 0x1b9   : > { %p4253_p3 = pnand %p4251_p1, %p4248_p9 }
 0x1bb   : > { %4256 = shalt.err (!%p4253_p3)
}
 0x1bc   : > { %s4257_s24 = scalar_lea.vmem %s663_s2, 1024  ;;  %p4265_p13 = scmp.lt.s32.totalorder %s663_s2, %s663_s2 }
 0x1bd   : > { %p4258_p10 = scmp.ne.s32.totalorder %s663_s2, %s4257_s24  ;;  %p4266_p0 = scmp.lt.s32.totalorder %s4257_s24, %s4257_s24 }
 0x1bf   : > { %p4260_p11 = pnand %p4258_p10, %p4665_p7  ;;  %p4267_p2 = por %p4266_p0, %p4265_p13 }
 0x1c1   : > { %p4261_p12 = pneg %p4260_p11 }
 0x1c3   : > { %p4268_p4 = pnand %p4267_p2, %p4261_p12 }
 0x1c5   : > { %4271 = shalt.err (!%p4268_p4)
}
 0x1c6   : > { %3571 = dma.hbm_to_vmem [thread:$0]  (!%p4649_p5), %s5507_s16, 1024, %s663_s2, [#allocation27], %s5573_s23, %s5573_s23, %s5572_s27  }
 0x1c7   : > { %s5574_s3 = sld [smem:[#allocation63_spill]] }
 0x1cd   : > { %s4272_s19 = scalar_lea.hbm %s5574_s3, 16 }
 0x1ce   : > { %p4273_p6 = scmp.ne.s32.totalorder %s5574_s3, %s4272_s19  ;;  %p4279_p1 = scmp.lt.u32.totalorder %s4272_s19, %s5574_s3 }
 0x1d0   : > { %p4275_p8 = pnand %p4273_p6, %p4665_p7 }
 0x1d2   : > { %p4276_p9 = pneg %p4275_p8 }
 0x1d4   : > { %p4281_p3 = pnand %p4279_p1, %p4276_p9 }
 0x1d6   : > { %4284 = shalt.err (!%p4281_p3)
}
 0x1d7   : > { %s4285_s24 = scalar_lea.vmem %s677_s1, 16  ;;  %s4292_s2 = scalar_lea.vmem %s677_s1, 32 }
 0x1d8   : > { %p4286_p10 = scmp.ne.s32.totalorder %s677_s1, %s4285_s24  ;;  %p4293_p13 = scmp.lt.s32.totalorder %s677_s1, %s677_s1 }
 0x1d9   : > { %p4294_p0 = scmp.lt.s32.totalorder %s4292_s2, %s4285_s24 }
 0x1da   : > { %p4288_p11 = pnand %p4286_p10, %p4665_p7 }
 0x1db   : > { %p4295_p2 = por %p4294_p0, %p4293_p13 }
 0x1dc   : > { %p4289_p12 = pneg %p4288_p11 }
 0x1de   : > { %p4296_p4 = pnand %p4295_p2, %p4289_p12 }
 0x1e0   : > { %4299 = shalt.err (!%p4296_p4)
}
 0x1e1   : > { %s5575_s17 = sld [smem:[#allocation48_spill]]  ;;  %s5576_s29 = sld [smem:[#allocation49_spill]] }
 0x1e2   : > { %s5577_s19 = sld [smem:[#allocation45_spill]]  ;;  %s5578_s26 = sld [smem:[#allocation44_spill]] }
 0x1e3   : > { %s5579_s25 = sld [smem:[#allocation43_spill]]  ;;  %s3068_s18 = sadd.s32 4294967294, %s4464_s20  }
 0x1e4   : > { %3574 = dma.hbm_to_vmem [thread:$0]  (!%p4649_p5), %s5574_s3, 16, %s677_s1, [#allocation30]  }
 0x1e5   : > { %s5580_s22 = sld [smem:[#allocation50_spill]]  ;;  %p72_p8 = scmp.eq.s32.totalorder %s4464_s20, 0 }
 0x1e6   : > { %s5582_s1 = sadd.s32 4294967295, %s4464_s20   ;;  %p466_p10 = scmp.eq.s32.totalorder %s3068_s18, 3 }
 0x1e7   : > { %s52_s0 = sadd.s32 1, %s5575_s17  ;;  %s55_s21 = sadd.s32 1, %s5576_s29 }
 0x1e8   : > { %p53_p7 = scmp.ge.s32.totalorder %s52_s0, 2  ;;  %s64_s24 = sadd.s32 1, %s5577_s19 }
 0x1e9   : > { %p71_p6 = scmp.ne.s32.totalorder %s5577_s19, %s5578_s26  ;;  %p77_p1 = scmp.ne.s32.totalorder %s5578_s26, %s5579_s25 }
 0x1ea   : > { %s5611_s0 = smov (%p53_p7, %s52_s0), 0  ;;  %s5613_s21 = smov (!%p53_p7, %s55_s21), %s5576_s29 }
 0x1eb   : > { %s60_s2 = ssub.s32 %s5575_s17, %s5611_s0  ;;  %p5005_p9 = por %p72_p8, %p71_p6 }
 0x1ec   : > { %p57_p5 = scmp.ge.s32.totalorder %s5613_s21, 2  ;;  %p460_p3 = scmp.eq.s32.totalorder %s5582_s1, 3 }
 0x1ed   : > { %p5583_p11 = scmp.ne.s32.totalorder %s5580_s22, 0  ;;  %p5027_p0 = por %p466_p10, %p77_p1 }
 0x1ee   : > { %s5615_s21 = smov (%p57_p5, %s5613_s21), 0  ;;  %p5021_p13 = por %p460_p3, %p71_p6 }
 0x1ef   : > { %p5017_p12 = por %p5583_p11, %p77_p1  ;;  %s59_s4 = ssub.s32 %s5576_s29, %s5615_s21 }
 0x1f0   : > { %s5585_s3 = scalar_select %p5021_p13, 1, 0 }
 0x1f1   : > { %s5586_s5 = scalar_select %p5027_p0, 1, 0 }
 0x1f2   : > { %s61_s26 = sor.u32 %s60_s2, %s59_s4  ;;  %p3600_p2 = scmp.lt.s32.totalorder %s4464_s20, 4 }
 0x1f3   : > { %p62_p4 = scmp.eq.s32.totalorder %s61_s26, 0  ;;  %s687_s25 = sand.u32 1, %s5577_s19  }
 0x1f4   : > { %s3088_s18 = sshll.u32 %s687_s25, 4  ;;  %s3089_s22 = sshll.u32 %s5575_s17, 2 }
 0x1f5   : > { %s5617_s19 = smov (!%p62_p4, %s5577_s19), %s64_s24  ;;  %s3090_s1 = sshll.u32 %s5576_s29, 3 }
 0x1f6   : > { %s691_s6 = scalar_lea.vmem [#allocation2], %s3088_s18  ;;  %s697_s8 = sadd.s32 %s3090_s1, %s3089_s22 }
 0x1f7   : > { %s700_s7 = sshll.u32 %s691_s6, 4  ;;  %s3091_s9 = sshll.u32 %s697_s8, 6  ;;  %s5038_s7 = int_to_ptr.vmem [resolvable:$true] %s700_s7 }
 0x1f8   : > { %p5042_p7 = pnand %p3600_p2, %p5005_p9  ;;  %s5588_s26 = sld [smem:[#allocation52_spill]] }
 0x1f9   : > { %s5051_s6 = scalar_lea.sflag [#allocation3], %s687_s25 }
 0x1fa   : > { %p4302_p8 = pneg %p5042_p7 }
 0x1fe   : > { %s5049_s24 = scalar_lea.hbm %s5588_s26, %s3091_s9  ;;  %s4305_s30 = scalar_lea.hbm %s5588_s26, 1024 }
 0x1ff   : > { %s4300_s17 = scalar_lea.hbm %s5049_s24, 256  ;;  %p4306_p1 = scmp.lt.u32.totalorder %s5049_s24, %s5588_s26 }
 0x200   : > { %p4301_p6 = scmp.ne.s32.totalorder %s5049_s24, %s4300_s17  ;;  %p4307_p3 = scmp.lt.u32.totalorder %s4305_s30, %s4300_s17 }
 0x201   : > { %p4309_p11 = scmp.lt.u32.totalorder %s4300_s17, %s5049_s24 }
 0x202   : > { %p4303_p9 = pnand %p4302_p8, %p4301_p6  ;;  %p4308_p10 = por %p4307_p3, %p4306_p1 }
 0x204   : > { %p4304_p5 = pneg %p4303_p9  ;;  %p4310_p2 = por %p4309_p11, %p4308_p10 }
 0x206   : > { %p4311_p4 = pnand %p4310_p2, %p4304_p5 }
 0x208   : > { %4314 = shalt.err (!%p4311_p4)
}
 0x209   : > { %s4315_s25 = scalar_lea.vmem %s5038_s7, 256  ;;  %s4487_s22 = smov [#allocation2]  }
 0x20a   : > { %p4316_p6 = scmp.ne.s32.totalorder %s5038_s7, %s4315_s25  ;;  %s4320_s1 = sshll.u32 %s4487_s22, 4  ;;  %s4321_s1 = int_to_ptr.vmem [resolvable:$false] %s4320_s1 }
 0x20b   : > { %s4322_s4 = scalar_lea.vmem %s4321_s1, 512  ;;  %p4323_p13 = scmp.lt.s32.totalorder %s5038_s7, %s4321_s1 }
 0x20c   : > { %p4318_p9 = pnand %p4316_p6, %p4302_p8  ;;  %p4324_p1 = scmp.lt.s32.totalorder %s4322_s4, %s4315_s25 }
 0x20e   : > { %p4319_p0 = pneg %p4318_p9  ;;  %p4325_p3 = por %p4324_p1, %p4323_p13 }
 0x210   : > { %p4326_p10 = pnand %p4325_p3, %p4319_p0 }
 0x212   : > { %4329 = shalt.err (!%p4326_p10)
}
 0x213   : > { %3578 = dma.hbm_to_vmem [thread:$0]  (!%p5042_p7), %s5049_s24, 256, %s5038_s7, %s5051_s6, %s5573_s23, %s5573_s23, %s5572_s27  }
 0x214   : > { %s5589_s2 = sld [smem:[#allocation51_spill]] }
 0x21a   : > { %p5590_p8 = scmp.ne.s32.totalorder %s5589_s2, 0 }
 0x21b   : > { %s5591_s17 = sld [smem:[#allocation44_spill]] (!%p5590_p8) }
 0x21c   : > { %712 = sbr.rel (%p5590_p8) target bundleno = 4771 (0x12a3), region = 92 }
 0x221   : > { %s5085_s8 = sand.u32 (!%p5590_p8), 1, %s5591_s17  }
 0x222   : > { %s3093_s29 = sshll.u32 (!%p5590_p8), %s5085_s8, 4  ;;  %s715_s30 = scalar_lea.sflag (!%p5590_p8), [#allocation3], %s5085_s8 }
 0x223   : > { %s718_s10 = scalar_lea.vmem [#allocation2], %s3093_s29 }
 0x224   : > { %4391 = dma.done.wait (%p5017_p12), %s715_s30, 256  }
 0x225   : > { %4393 = vsyncadd (%p5017_p12), %s715_s30, 4294967040  ;;  %s5592_s7 = sld [smem:[#allocation50_spill]] }
 0x22b   : > { %p5593_p13 = scmp.ne.s32.totalorder %s5592_s7, 0 }
 0x22d   : > { %4395 = dma.done.wait (%p5593_p13), [#allocation6], 32  }
 0x22e   : > { %4397 = vsyncadd (%p5593_p13), [#allocation6], 4294967264 }
 0x22f   : > { %4399 = dma.done.wait (%p5593_p13), [#allocation9], 272  }
 0x230   : > { %4401 = vsyncadd (%p5593_p13), [#allocation9], 4294967024 }
 0x231   : > { %4403 = dma.done.wait (%p5593_p13), [#allocation12], 272  }
 0x232   : > { %4405 = vsyncadd (%p5593_p13), [#allocation12], 4294967024 }
 0x233   : > { %4407 = dma.done.wait (%p5593_p13), [#allocation15], 272  }
 0x234   : > { %4409 = vsyncadd (%p5593_p13), [#allocation15], 4294967024 }
 0x235   : > { %4411 = dma.done.wait (%p5593_p13), [#allocation18], 1280  }
 0x236   : > { %4413 = vsyncadd (%p5593_p13), [#allocation18], 4294966016 }
 0x237   : > { %4415 = dma.done.wait (%p5593_p13), [#allocation21], 32  }
 0x238   : > { %4417 = vsyncadd (%p5593_p13), [#allocation21], 4294967264 }
 0x239   : > { %4419 = dma.done.wait (%p5593_p13), [#allocation24], 272  }
 0x23a   : > { %4421 = vsyncadd (%p5593_p13), [#allocation24], 4294967024 }
 0x23b   : > { %4423 = dma.done.wait (%p5593_p13), [#allocation27], 1040  }
 0x23c   : > { %4425 = vsyncadd (%p5593_p13), [#allocation27], 4294966256 }
 0x23d   : > { %4427 = dma.done.wait (%p5593_p13), [#allocation30], 16  }
 0x23e   : > { %4429 = vsyncadd (%p5593_p13), [#allocation30], 4294967280  ;;  %v3185_v0 = vld [vmem:[%s718_s10] sm:$0xff]   ;;  %vm850_vm0 = vcmask 261120   ;;  %v3192_v1 = vld [vmem:[%s718_s10 + $0x8] sm:$0xff]   ;;  %vm4489_vm1 = vmmov 0  }
 0x23f   : > { %v5131_v2 = vunpack.c.l.bf16 %v3185_v0  ;;  %v5133_v3 = vunpack.c.l.bf16 %v3192_v1  ;;  %v5135_v4 = vunpack.c.h.bf16 %v3185_v0  ;;  %v5137_v5 = vunpack.c.h.bf16 %v3192_v1  ;;  %v3712_v30 = vld [vmem:[#allocation8] sm:$0xff]   ;;  %v3713_v31 = vld [vmem:[#allocation8 + $0x8] sm:$0xff]   ;;  %v3714_v32 = vld [vmem:[#allocation11] sm:$0xff]   ;;  %s4490_s27 = smov 120   ;;  %s4491_s23 = smov 112  }
 0x240   : > { %3263 = vmatprep.subr.bf16.mxu1 %v3712_v30  ;;  %v3112_v47 = vld [vmem:[#allocation5] ss:$0 sm:$0xff]  ;;  %v3113_v53 = vld [vmem:[#allocation7] ss:$0 sm:$0xff]  ;;  %vm1164_vm2 = vcmask 64512   ;;  %vm1259_vm3 = vcmask 130048  }
 0x241   : > { %v851_v6 = vsel %vm850_vm0, %v5131_v2, 0.0  ;;  %v857_v7 = vsel %vm850_vm0, %v5133_v3, 0.0  ;;  %v854_v8 = vsel %vm850_vm0, %v5135_v4, 0.0  ;;  %v860_v9 = vsel %vm850_vm0, %v5137_v5, 0.0  ;;  %3264 = vmatpush3.bf16.msra.mxu1 %v3712_v30  ;;  %v3715_v1 = vld [vmem:[#allocation11 + $0x8] sm:$0xff]   ;;  %s4492_s28 = smov 104  }
 0x242   : > { %852 = vadd.xlane.f32.xlu0 %v851_v6  ;;  %858 = vadd.xlane.f32.xlu1 %v857_v7  ;;  %v3716_v6 = vld [vmem:[#allocation14] sm:$0xff]   ;;  %v3717_v7 = vld [vmem:[#allocation14 + $0x8] sm:$0xff]   ;;  %vm1654_vm4 = vcmask 1043456   ;;  %s5594_s24 = sld [smem:[#allocation46_spill]]  ;;  %s5595_s6 = sld [smem:[#allocation47_spill]]  ;;  %vm2794_vm9 = vcmask 257024  }
 0x243   : > { %3265 = vmatprep.subr.bf16.mxu1 %v3713_v31  ;;  %s838_s22 = scalar_lea.vmem [#allocation31], %s3093_s29  ;;  %s5596_s29 = sld [smem:[#allocation64_spill]] }
 0x244   : > { %s2815_s1 = sshll.u32 %s838_s22, 4  ;;  %s2800_s7 = scalar_lea.sflag [#allocation4], %s5085_s8  ;;  %s5431_s1 = int_to_ptr.vmem [resolvable:$true] %s2815_s1 }
 0x245   : > { %3266 = vmatpush3.bf16.msra.mxu1 %v3713_v31  ;;  %p5598_p0 = scmp.ne.s32.totalorder %s5585_s3, 0 }
 0x246   : > { %855 = vadd.xlane.f32.xlu0 %v854_v8  ;;  %861 = vadd.xlane.f32.xlu1 %v860_v9  ;;  %v4488_v8 = vmov 0.0  }
 0x247   : > { %3271 = vmatprep.subr.bf16.mxu1 %v3714_v32  ;;  %3293 = vmatprep.subr.bf16.mxu0 %v4488_v8 }
 0x248   : > { %3295 = vmatprep.mubr.msk.bf16.mxu0 %vm4489_vm1, %v4488_v8  ;;  %s3175_s9 = sshll.u32 %s5594_s24, 2  ;;  %s3176_s18 = sshll.u32 %s5595_s6, 3 }
 0x249   : > { %s2812_s25 = sadd.s32 %s3176_s18, %s3175_s9  ;;  %s5597_s10 = smov %s5596_s29 }
 0x24a   : > { %s3177_s4 = sshll.u32 %s2812_s25, 6 }
 0x24b   : > { %s5437_s30 = scalar_lea.hbm %s5596_s29, %s3177_s4 }
 0x2cf   : > { %v853_v10 = vpop.xlane.xlu0 %852  ;;  %v859_v11 = vpop.xlane.xlu1 %858 }
 0x2d0   : > { %v864_v12 = vmul.f32 0.03125, %v853_v10  ;;  %v866_v13 = vmul.f32 0.03125, %v859_v11  ;;  %v3114_v10 = vld [vmem:[#allocation10] ss:$0 sm:$0xff] }
 0x2d2   : > { %v868_v14 = vsub.f32 %v5131_v2, %v864_v12  ;;  %v870_v15 = vsub.f32 %v5133_v3, %v866_v13 }
 0x2d3   : > { %v856_v16 = vpop.xlane.xlu0 %855  ;;  %v862_v17 = vpop.xlane.xlu1 %861 }
 0x2d4   : > { %v865_v18 = vmul.f32 0.03125, %v856_v16  ;;  %v867_v19 = vmul.f32 0.03125, %v862_v17  ;;  %v872_v20 = vmul.f32 %v868_v14, %v868_v14  ;;  %v874_v21 = vmul.f32 %v870_v15, %v870_v15 }
 0x2d6   : > { %v869_v22 = vsub.f32 %v5135_v4, %v865_v18  ;;  %v871_v23 = vsub.f32 %v5137_v5, %v867_v19  ;;  %v876_v24 = vsel %vm850_vm0, %v872_v20, 0.0  ;;  %v882_v25 = vsel %vm850_vm0, %v874_v21, 0.0  ;;  %v3119_v21 = vld [vmem:[#allocation13] ss:$0 sm:$0xff] }
 0x2d7   : > { %877 = vadd.xlane.f32.xlu0 %v876_v24 }
 0x2d8   : > { %v873_v26 = vmul.f32 %v869_v22, %v869_v22  ;;  %v875_v27 = vmul.f32 %v871_v23, %v871_v23 }
 0x2da   : > { %v879_v28 = vsel %vm850_vm0, %v873_v26, 0.0  ;;  %v885_v29 = vsel %vm850_vm0, %v875_v27, 0.0 }
 0x2db   : > { %883 = vadd.xlane.f32.xlu0 %v882_v25  ;;  %880 = vadd.xlane.f32.xlu1 %v879_v28 }
 0x2df   : > { %886 = vadd.xlane.f32.xlu1 %v885_v29 }
 0x364   : > { %v878_v33 = vpop.xlane.xlu0 %877 }
 0x365   : > { %v888_v34 = vmul.f32 0.03125, %v878_v33  ;;  %v3124_v33 = vld [vmem:[#allocation16] ss:$0 sm:$0xff] }
 0x367   : > { %v892_v35 = vadd.f32 1e-05, %v888_v34 }
 0x368   : > { %v881_v36 = vpop.xlane.xlu1 %880  ;;  %v884_v37 = vpop.xlane.xlu0 %883 }
 0x369   : > { %3728 = vrsqrt.f32 %v892_v35  ;;  %v889_v38 = vmul.f32 0.03125, %v881_v36  ;;  %v890_v39 = vmul.f32 0.03125, %v884_v37 }
 0x36b   : > { %v893_v40 = vadd.f32 1e-05, %v889_v38  ;;  %v894_v41 = vadd.f32 1e-05, %v890_v39 }
 0x36c   : > { %v887_v42 = vpop.xlane.xlu1 %886 }
 0x36d   : > { %3730 = vrsqrt.f32 %v893_v40  ;;  %v891_v43 = vmul.f32 0.03125, %v887_v42 }
 0x36e   : > { %3732 = vrsqrt.f32 %v894_v41 }
 0x36f   : > { %v895_v44 = vadd.f32 1e-05, %v891_v43 }
 0x371   : > { %3734 = vrsqrt.f32 %v895_v44  ;;  %v1156_v44 = vld [vmem:[#allocation17] sm:$0xff] }
 0x373   : > { %v3729_v45 = vpop.eup %3728 }
 0x374   : > { %v900_v46 = vmul.f32 %v3729_v45, %v868_v14 }
 0x376   : > { %v911_v51 = vmul.f32 %v3112_v47, %v900_v46  ;;  %v1157_v46 = vld [vmem:[#allocation17 + $0x8] sm:$0xff] }
 0x377   : > { %v3731_v48 = vpop.eup %3730 }
 0x378   : > { %v3733_v49 = vpop.eup %3732  ;;  %v901_v50 = vmul.f32 %v3731_v48, %v869_v22  ;;  %v922_v57 = vadd.f32 %v3113_v53, %v911_v51 }
 0x379   : > { %v902_v52 = vmul.f32 %v3733_v49, %v870_v15 }
 0x37a   : > { %v912_v54 = vmul.f32 %v3112_v47, %v901_v50 }
 0x37b   : > { %v3735_v55 = vpop.eup %3734  ;;  %v913_v59 = vmul.f32 %v3112_v47, %v902_v52 }
 0x37c   : > { %v903_v56 = vmul.f32 %v3735_v55, %v871_v23  ;;  %v923_v58 = vadd.f32 %v3113_v53, %v912_v54 }
 0x37d   : > { %v924_v62 = vadd.f32 %v3113_v53, %v913_v59 }
 0x37e   : > { %v926_v60 = vpack.c.bf16 %v923_v58, %v922_v57  ;;  %v914_v61 = vmul.f32 %v3112_v47, %v903_v56 }
 0x380   : > { %3267 = vmatprep.mubr.msk.bf16.mxu1 %vm850_vm0, %v926_v60  ;;  %v925_v63 = vadd.f32 %v3113_v53, %v914_v61 }
 0x382   : > { %v927_v0 = vpack.c.bf16 %v925_v63, %v924_v62 }
 0x384   : > { %3268 = vmatmul.mubr.msk.bf16.vlgmr.msra.gmra.mrb[0].mxu1 %vm850_vm0, %v927_v0 }
 0x385   : > { %3272 = vmatpush3.bf16.msra.mxu1 %v3714_v32  ;;  %3275 = vmatprep.mubr.msk.bf16.mxu1 %vm850_vm0, %v926_v60 }
 0x386   : > { %3273 = vmatprep.subr.bf16.mxu1 %v3715_v1 }
 0x389   : > { %3274 = vmatpush3.bf16.msra.mxu1 %v3715_v1 }
 0x38a   : > { %3279 = vmatprep.subr.bf16.mxu1 %v3716_v6 }
 0x38c   : > { %3276 = vmatmul.mubr.msk.bf16.vlgmr.msra.gmra.mrb[4].mxu1 %vm850_vm0, %v927_v0 }
 0x38d   : > { %3280 = vmatpush3.bf16.msra.mxu1 %v3716_v6  ;;  %3283 = vmatprep.mubr.msk.bf16.mxu1 %vm850_vm0, %v926_v60 }
 0x38e   : > { %3281 = vmatprep.subr.bf16.mxu1 %v3717_v7 }
 0x391   : > { %3282 = vmatpush3.bf16.msra.mxu1 %v3717_v7 }
 0x392   : > { %3287 = vmatprep.subr.bf16.mxu1 %v4488_v8 }
 0x394   : > { %3284 = vmatmul.mubr.msk.bf16.vlgmr.msra.gmra.mrb[8].mxu1 %vm850_vm0, %v927_v0 }
 0x395   : > { %3289 = vmatprep.mubr.msk.bf16.mxu1 %vm4489_vm1, %v4488_v8 }
 0x457   : > { %v3269_v9 = vpop.f32.mrb[0].mxu1 }
 0x458   : > { %v991_v11 = vpop.f32.mrb[1].mxu1  ;;  %v1000_v13 = vadd.f32 %v3269_v9, %v3114_v10 }
 0x459   : > { %v3270_v12 = vpop.f32.mrb[2].mxu1  ;;  %v992_v16 = vadd.f32 %v3114_v10, %v991_v11 }
 0x45a   : > { %v1003_v14 = vadd.f32 %v3270_v12, %v3114_v10  ;;  %v994_v15 = vpop.f32.mrb[3].mxu1 }
 0x45b   : > { %v995_v17 = vadd.f32 %v3114_v10, %v994_v15 }
 0x45c   : > { %v5167_v18 = vpack.c.bf16 %v1003_v14, %v1000_v13 }
 0x45d   : > { %v5169_v19 = vpack.c.bf16 %v995_v17, %v992_v16 }
 0x45f   : > { %v3277_v20 = vpop.f32.mrb[4].mxu1 }
 0x460   : > { %v1065_v22 = vpop.f32.mrb[5].mxu1  ;;  %v1074_v24 = vadd.f32 %v3277_v20, %v3119_v21 }
 0x461   : > { %v3278_v23 = vpop.f32.mrb[6].mxu1  ;;  %v1066_v27 = vadd.f32 %v3119_v21, %v1065_v22 }
 0x462   : > { %v1077_v25 = vadd.f32 %v3278_v23, %v3119_v21  ;;  %v1068_v26 = vpop.f32.mrb[7].mxu1 }
 0x463   : > { %v1069_v28 = vadd.f32 %v3119_v21, %v1068_v26 }
 0x464   : > { %v5171_v29 = vpack.c.bf16 %v1077_v25, %v1074_v24 }
 0x465   : > { %v5173_v30 = vpack.c.bf16 %v1069_v28, %v1066_v27 }
 0x466   : > { %v1216_v31 = vsel %vm1164_vm2, %v5171_v29, 0 }
 0x467   : > { %v3285_v32 = vpop.f32.mrb[8].mxu1  ;;  %3294 = vmatpush3.bf16.xpose.msra.mxu0 %v1216_v31  ;;  %v1169_v34 = vsel %vm1164_vm2, %v5173_v30, 0 }
 0x468   : > { %v1139_v35 = vpop.f32.mrb[9].mxu1  ;;  %3288 = vmatpush3.bf16.xpose.msra.mxu1 %v1169_v34  ;;  %3305 = vmatprep.subr.bf16.mxu0 %v4488_v8  ;;  %v1148_v37 = vadd.f32 %v3285_v32, %v3124_v33 }
 0x469   : > { %v3286_v36 = vpop.f32.mrb[10].mxu1  ;;  %3299 = vmatprep.subr.bf16.mxu1 %v4488_v8  ;;  %v1140_v40 = vadd.f32 %v3124_v33, %v1139_v35 }
 0x46a   : > { %v1151_v38 = vadd.f32 %v3286_v36, %v3124_v33  ;;  %v1142_v39 = vpop.f32.mrb[11].mxu1 }
 0x46b   : > { %v1143_v41 = vadd.f32 %v3124_v33, %v1142_v39 }
 0x46c   : > { %v5181_v42 = vpack.c.bf16 %v1151_v38, %v1148_v37 }
 0x46d   : > { %v5183_v43 = vpack.c.bf16 %v1143_v41, %v1140_v40 }
 0x46e   : > { %3296 = vmatmul.mubr.msk.bf16.vlgmr.msra.gmra.mrb[0].mxu0 %vm1164_vm2, %v5167_v18 }
 0x46f   : > { %3290 = vmatmul.mubr.msk.bf16.vlgmr.msra.gmra.mrb[12].mxu1 %vm1164_vm2, %v5169_v19  ;;  %3306 = vmatpush3.bf16.msra.mxu0 %v5181_v42 }
 0x470   : > { %3300 = vmatpush3.bf16.msra.mxu1 %v5183_v43  ;;  %3307 = vmatprep.mubr.msk.bf16.mxu0 %vm4489_vm1, %v4488_v8 }
 0x471   : > { %3317 = vmatprep.subr.bf16.mxu0 %v4488_v8  ;;  %3301 = vmatprep.mubr.msk.bf16.mxu1 %vm4489_vm1, %v4488_v8 }
 0x472   : > { %3311 = vmatprep.subr.bf16.mxu1 %v4488_v8 }
 0x541   : > { %v1252_v45 = vpop.f32.mrb[0].mxu0 }
 0x542   : > { %v1253_v47 = vadd.f32 %v1252_v45, %v1156_v44  ;;  %v1205_v48 = vpop.f32.mrb[12].mxu1  ;;  %v3297_v49 = vpop.f32.mrb[1].mxu0 }
 0x543   : > { %v1206_v50 = vadd.f32 %v1205_v48, %v1156_v44  ;;  %v3291_v51 = vpop.f32.mrb[13].mxu1  ;;  %v1255_v52 = vpop.f32.mrb[2].mxu0 }
 0x544   : > { %v1256_v53 = vadd.f32 %v1255_v52, %v1157_v46  ;;  %v1208_v54 = vpop.f32.mrb[14].mxu1  ;;  %v3298_v55 = vpop.f32.mrb[3].mxu0  ;;  %v1266_v56 = vsel %vm1259_vm3, %v1253_v47, -inf }
 0x545   : > { %v1209_v57 = vadd.f32 %v1208_v54, %v1157_v46  ;;  %1267 = vmax.xlane.f32.xlu0 %v1266_v56  ;;  %v3292_v58 = vpop.f32.mrb[15].mxu1  ;;  %v1260_v12 = vsel %vm1259_vm3, %v1206_v50, -inf  ;;  %v1159_v56 = vld [vmem:[#allocation17 + $0x18] sm:$0xff] }
 0x546   : > { %v1269_v59 = vsel %vm1259_vm3, %v1256_v53, -inf }
 0x547   : > { %1270 = vmax.xlane.f32.xlu1 %v1269_v59  ;;  %v1263_v11 = vsel %vm1259_vm3, %v1209_v57, -inf }
 0x5d2   : > { %v1268_v60 = vpop.xlane.xlu0 %1267 }
 0x5d3   : > { %v1274_v61 = vsub.f32 %v1253_v47, %v1268_v60 }
 0x5d4   : > { %v1271_v62 = vpop.xlane.xlu1 %1270 }
 0x5d5   : > { %v1280_v63 = vmul.f32 1.442695, %v1274_v61  ;;  %v1275_v0 = vsub.f32 %v1256_v53, %v1271_v62  ;;  %v1158_v53 = vld [vmem:[#allocation17 + $0x10] sm:$0xff] }
 0x5d7   : > { %3736 = vpow2.f32 %v1280_v63  ;;  %v1282_v1 = vmul.f32 1.442695, %v1275_v0 }
 0x5d9   : > { %3738 = vpow2.f32 %v1282_v1 }
 0x5e1   : > { %v3737_v6 = vpop.eup %3736 }
 0x5e2   : > { %v1290_v7 = vsel %vm1259_vm3, %v3737_v6, 0.0 }
 0x5e3   : > { %v3739_v9 = vpop.eup %3738  ;;  %1291 = vadd.xlane.f32.xlu0 %v1290_v7 }
 0x5e4   : > { %v1293_v10 = vsel %vm1259_vm3, %v3739_v9, 0.0 }
 0x5e5   : > { %1294 = vadd.xlane.f32.xlu1 %v1293_v10 }
 0x5f6   : > { %1451 = vrot.lane.b32.xlu1 %v5167_v18, %s4490_s27 }
 0x5f9   : > { %1454 = vrot.lane.b32.xlu0 %v5171_v29, %s4490_s27 }
 0x618   : > { %1264 = vmax.xlane.f32.xlu0 %v1263_v11 }
 0x61a   : > { %1261 = vmax.xlane.f32.xlu1 %v1260_v12 }
 0x670   : > { %v1292_v13 = vpop.xlane.xlu0 %1291 }
 0x671   : > { %3740 = vrcp.f32 %v1292_v13 }
 0x672   : > { %v1295_v14 = vpop.xlane.xlu1 %1294 }
 0x673   : > { %3742 = vrcp.f32 %v1295_v14 }
 0x674   : > { %v1455_v21 = vpop.permute.xlu0 %1454 }
 0x675   : > { %v1460_v23 = vsel %vm1164_vm2, %v1455_v21, 0 }
 0x676   : > { %v1452_v24 = vpop.permute.xlu1 %1451 }
 0x67b   : > { %v3741_v15 = vpop.eup %3740 }
 0x67c   : > { %v1302_v17 = vmul.f32 %v3741_v15, %v3737_v6 }
 0x67d   : > { %v3743_v16 = vpop.eup %3742 }
 0x67e   : > { %v1303_v20 = vmul.f32 %v3743_v16, %v3739_v9 }
 0x680   : > { %v1305_v22 = vpack.c.bf16 %v1303_v20, %v1302_v17 }
 0x682   : > { %3308 = vmatmul.mubr.msk.bf16.vlgmr.msra.gmra.mrb[4].mxu0 %vm1259_vm3, %v1305_v22 }
 0x683   : > { %3318 = vmatpush3.bf16.xpose.msra.mxu0 %v1460_v23  ;;  %3319 = vmatprep.mubr.msk.bf16.mxu0 %vm4489_vm1, %v4488_v8 }
 0x684   : > { %3329 = vmatprep.subr.bf16.mxu0 %v4488_v8 }
 0x68a   : > { %3320 = vmatmul.mubr.msk.bf16.vlgmr.msra.gmra.mrb[8].mxu0 %vm1164_vm2, %v1452_v24 }
 0x68b   : > { %3331 = vmatprep.mubr.msk.bf16.mxu0 %vm4489_vm1, %v4488_v8 }
 0x6a5   : > { %v1265_v25 = vpop.xlane.xlu0 %1264 }
 0x6a6   : > { %v1273_v26 = vsub.f32 %v1209_v57, %v1265_v25 }
 0x6a7   : > { %v1262_v27 = vpop.xlane.xlu1 %1261 }
 0x6a8   : > { %v1278_v28 = vmul.f32 1.442695, %v1273_v26  ;;  %v1272_v31 = vsub.f32 %v1206_v50, %v1262_v27 }
 0x6aa   : > { %3744 = vpow2.f32 %v1278_v28  ;;  %v1276_v32 = vmul.f32 1.442695, %v1272_v31 }
 0x6ac   : > { %3746 = vpow2.f32 %v1276_v32 }
 0x6b4   : > { %v3745_v33 = vpop.eup %3744 }
 0x6b5   : > { %v1287_v34 = vsel %vm1259_vm3, %v3745_v33, 0.0 }
 0x6b6   : > { %v3747_v35 = vpop.eup %3746  ;;  %1288 = vadd.xlane.f32.xlu1 %v1287_v34 }
 0x6b7   : > { %v1284_v36 = vsel %vm1259_vm3, %v3747_v35, 0.0 }
 0x6b8   : > { %1285 = vadd.xlane.f32.xlu0 %v1284_v36 }
 0x6c7   : > { %1398 = vrot.lane.b32.xlu1 %v5169_v19, %s4490_s27 }
 0x6ce   : > { %1401 = vrot.lane.b32.xlu0 %v5173_v30, %s4490_s27 }
 0x743   : > { %v1289_v37 = vpop.xlane.xlu1 %1288 }
 0x744   : > { %3748 = vrcp.f32 %v1289_v37 }
 0x745   : > { %v1286_v38 = vpop.xlane.xlu0 %1285 }
 0x746   : > { %3750 = vrcp.f32 %v1286_v38 }
 0x747   : > { %v1399_v54 = vpop.permute.xlu1 %1398 }
 0x749   : > { %v1402_v45 = vpop.permute.xlu0 %1401 }
 0x74a   : > { %v1407_v47 = vsel %vm1164_vm2, %v1402_v45, 0 }
 0x74e   : > { %v3749_v39 = vpop.eup %3748 }
 0x74f   : > { %v1301_v41 = vmul.f32 %v3749_v39, %v3745_v33 }
 0x750   : > { %v3751_v40 = vpop.eup %3750 }
 0x751   : > { %v1300_v44 = vmul.f32 %v3751_v40, %v3747_v35 }
 0x753   : > { %v1304_v46 = vpack.c.bf16 %v1301_v41, %v1300_v44 }
 0x755   : > { %3302 = vmatmul.mubr.msk.bf16.vlgmr.msra.gmra.mrb[16].mxu1 %vm1259_vm3, %v1304_v46  ;;  %v5223_v48 = vpop.f32.mrb[4].mxu0 }
 0x756   : > { %3312 = vmatpush3.bf16.xpose.msra.mxu1 %v1407_v47  ;;  %v3309_v49 = vpop.f32.mrb[5].mxu0  ;;  %3313 = vmatprep.mubr.msk.bf16.mxu1 %vm4489_vm1, %v4488_v8 }
 0x757   : > { %v5227_v50 = vpop.f32.mrb[6].mxu0  ;;  %3323 = vmatprep.subr.bf16.mxu1 %v4488_v8 }
 0x758   : > { %v1395_v51 = vpack.c.bf16 %v5227_v50, %v5223_v48  ;;  %v3310_v52 = vpop.f32.mrb[7].mxu0 }
 0x75d   : > { %3314 = vmatmul.mubr.msk.bf16.vlgmr.msra.gmra.mrb[20].mxu1 %vm1164_vm2, %v1399_v54  ;;  %v1496_v55 = vpop.f32.mrb[8].mxu0 }
 0x75e   : > { %v1497_v57 = vadd.f32 %v1496_v55, %v1158_v53  ;;  %v3321_v58 = vpop.f32.mrb[9].mxu0  ;;  %3325 = vmatprep.mubr.msk.bf16.mxu1 %vm4489_vm1, %v4488_v8 }
 0x75f   : > { %v1499_v59 = vpop.f32.mrb[10].mxu0 }
 0x760   : > { %v1500_v60 = vadd.f32 %v1499_v59, %v1159_v56  ;;  %v3322_v61 = vpop.f32.mrb[11].mxu0  ;;  %v1509_v62 = vsel %vm1259_vm3, %v1497_v57, -inf }
 0x761   : > { %1510 = vmax.xlane.f32.xlu1 %v1509_v62 }
 0x762   : > { %v1512_v63 = vsel %vm1259_vm3, %v1500_v60, -inf }
 0x763   : > { %1513 = vmax.xlane.f32.xlu0 %v1512_v63 }
 0x772   : > { %1767 = vrot.lane.b32.xlu1 %v5173_v30, %s4491_s23 }
 0x7ee   : > { %v1511_v0 = vpop.xlane.xlu1 %1510 }
 0x7ef   : > { %v1517_v1 = vsub.f32 %v1497_v57, %v1511_v0 }
 0x7f0   : > { %v1514_v6 = vpop.xlane.xlu0 %1513 }
 0x7f1   : > { %v1523_v7 = vmul.f32 1.442695, %v1517_v1  ;;  %v1518_v9 = vsub.f32 %v1500_v60, %v1514_v6 }
 0x7f2   : > { %v1768_v32 = vpop.permute.xlu1 %1767 }
 0x7f3   : > { %3752 = vpow2.f32 %v1523_v7  ;;  %v1525_v10 = vmul.f32 1.442695, %v1518_v9  ;;  %v1773_v44 = vsel %vm1164_vm2, %v1768_v32, 0 }
 0x7f5   : > { %3754 = vpow2.f32 %v1525_v10 }
 0x7fd   : > { %v3753_v11 = vpop.eup %3752 }
 0x7fe   : > { %v1533_v12 = vsel %vm1259_vm3, %v3753_v11, 0.0 }
 0x7ff   : > { %v3755_v13 = vpop.eup %3754  ;;  %1534 = vadd.xlane.f32.xlu0 %v1533_v12 }
 0x800   : > { %v1536_v14 = vsel %vm1259_vm3, %v3755_v13, 0.0 }
 0x801   : > { %1537 = vadd.xlane.f32.xlu1 %v1536_v14 }
 0x812   : > { %1765 = vrot.lane.b32.xlu1 %v5169_v19, %s4491_s23 }
 0x815   : > { %1598 = vrot.lane.b32.xlu0 %v5181_v42, %s4490_s27 }
 0x816   : > { %1818 = vrot.lane.b32.xlu1 %v5171_v29, %s4491_s23 }
 0x819   : > { %1816 = vrot.lane.b32.xlu0 %v5167_v18, %s4491_s23 }
 0x828   : > { %v5249_v15 = vpop.f32.mrb[16].mxu1 }
 0x829   : > { %v3303_v16 = vpop.f32.mrb[17].mxu1 }
 0x82a   : > { %v5251_v17 = vpop.f32.mrb[18].mxu1  ;;  %v1160_v16 = vld [vmem:[#allocation17 + $0x20] sm:$0xff] }
 0x82b   : > { %v1394_v20 = vpack.c.bf16 %v5251_v17, %v5249_v15  ;;  %v3304_v21 = vpop.f32.mrb[19].mxu1 }
 0x830   : > { %v1443_v22 = vpop.f32.mrb[20].mxu1 }
 0x831   : > { %v3315_v23 = vpop.f32.mrb[21].mxu1  ;;  %v1444_v27 = vadd.f32 %v1443_v22, %v1158_v53  ;;  %v1161_v22 = vld [vmem:[#allocation17 + $0x28] sm:$0xff] }
 0x832   : > { %v1446_v24 = vpop.f32.mrb[22].mxu1 }
 0x833   : > { %v1447_v25 = vadd.f32 %v1446_v24, %v1159_v56  ;;  %v3316_v26 = vpop.f32.mrb[23].mxu1  ;;  %v1503_v31 = vsel %vm1259_vm3, %v1444_v27, -inf }
 0x835   : > { %v1506_v28 = vsel %vm1259_vm3, %v1447_v25, -inf }
 0x838   : > { %1507 = vmax.xlane.f32.xlu0 %v1506_v28 }
 0x83a   : > { %1504 = vmax.xlane.f32.xlu1 %v1503_v31 }
 0x84b   : > { %1550 = vrot.lane.b32.xlu1 %v5183_v43, %s4490_s27  ;;  %s4330_s27 = scalar_lea.vmem %s5431_s1, 256 }
 0x84c   : > { %p4331_p12 = scmp.ne.s32.totalorder %s5431_s1, %s4330_s27 }
 0x84e   : > { %p4332_p7 = pnand %p4331_p12, %p5598_p0 }
 0x850   : > { %p4333_p5 = pneg %p4332_p7 }
 0x88c   : > { %v1535_v33 = vpop.xlane.xlu0 %1534 }
 0x88d   : > { %3756 = vrcp.f32 %v1535_v33 }
 0x88e   : > { %v1538_v34 = vpop.xlane.xlu1 %1537 }
 0x88f   : > { %3758 = vrcp.f32 %v1538_v34 }
 0x890   : > { %v1599_v35 = vpop.permute.xlu0 %1598 }
 0x891   : > { %3330 = vmatpush3.bf16.msra.mxu0 %v1599_v35 }
 0x892   : > { %3347 = vmatprep.subr.bf16.mxu0 %v4488_v8  ;;  %v1766_v41 = vpop.permute.xlu1 %1765 }
 0x894   : > { %v1817_v47 = vpop.permute.xlu0 %1816 }
 0x896   : > { %v1819_v45 = vpop.permute.xlu1 %1818 }
 0x897   : > { %v3757_v36 = vpop.eup %3756  ;;  %v1824_v46 = vsel %vm1164_vm2, %v1819_v45, 0 }
 0x898   : > { %v1545_v38 = vmul.f32 %v3757_v36, %v3753_v11 }
 0x899   : > { %v3759_v37 = vpop.eup %3758 }
 0x89a   : > { %v1546_v39 = vmul.f32 %v3759_v37, %v3755_v13 }
 0x89c   : > { %v1548_v40 = vpack.c.bf16 %v1546_v39, %v1545_v38 }
 0x89e   : > { %3332 = vmatmul.mubr.msk.bf16.vlgmr.msra.gmra.mrb[12].mxu0 %vm1259_vm3, %v1548_v40  ;;  %v1647_v40 = vld [vmem:[#allocation19 + $0x4] sm:$0xf] }
 0x89f   : > { %3348 = vmatpush3.bf16.xpose.msra.mxu0 %v1773_v44  ;;  %3349 = vmatprep.mubr.msk.bf16.mxu0 %vm4489_vm1, %v4488_v8  ;;  %v1396_v44 = vld [vmem:[#allocation19] sm:$0xf] }
 0x8a0   : > { %3353 = vmatprep.subr.bf16.mxu0 %v4488_v8 }
 0x8a6   : > { %3350 = vmatmul.mubr.msk.bf16.vlgmr.msra.gmra.mrb[16].mxu0 %vm1164_vm2, %v1766_v41  ;;  %v1656_v41 = vsel %vm1654_vm4, %v1647_v40, 0 }
 0x8a7   : > { %3354 = vmatpush3.bf16.xpose.msra.mxu0 %v1824_v46  ;;  %3355 = vmatprep.mubr.msk.bf16.mxu0 %vm4489_vm1, %v4488_v8 }
 0x8a8   : > { %3365 = vmatprep.subr.bf16.mxu0 %v4488_v8 }
 0x8ae   : > { %3356 = vmatmul.mubr.msk.bf16.vlgmr.msra.gmra.mrb[20].mxu0 %vm1164_vm2, %v1817_v47 }
 0x8af   : > { %3367 = vmatprep.mubr.msk.bf16.mxu0 %vm4489_vm1, %v4488_v8 }
 0x8c5   : > { %v1508_v49 = vpop.xlane.xlu0 %1507 }
 0x8c6   : > { %v1516_v52 = vsub.f32 %v1447_v25, %v1508_v49 }
 0x8c7   : > { %v1505_v53 = vpop.xlane.xlu1 %1504 }
 0x8c8   : > { %v1515_v54 = vsub.f32 %v1444_v27, %v1505_v53  ;;  %v1521_v55 = vmul.f32 1.442695, %v1516_v52 }
 0x8ca   : > { %v1519_v56 = vmul.f32 1.442695, %v1515_v54 }
 0x8cb   : > { %v1551_v57 = vpop.permute.xlu1 %1550 }
 0x8cc   : > { %3760 = vpow2.f32 %v1519_v56  ;;  %3324 = vmatpush3.bf16.msra.mxu1 %v1551_v57 }
 0x8cd   : > { %3762 = vpow2.f32 %v1521_v55  ;;  %3447 = vmatprep.subr.msk.bf16.mxu1 %vm1654_vm4, %v1647_v40 }
 0x8d6   : > { %v3761_v58 = vpop.eup %3760 }
 0x8d7   : > { %v1527_v59 = vsel %vm1259_vm3, %v3761_v58, 0.0  ;;  %v3763_v60 = vpop.eup %3762 }
 0x8d8   : > { %1528 = vadd.xlane.f32.xlu0 %v1527_v59  ;;  %v1530_v61 = vsel %vm1259_vm3, %v3763_v60, 0.0 }
 0x8dc   : > { %1531 = vadd.xlane.f32.xlu0 %v1530_v61 }
 0x965   : > { %v1529_v62 = vpop.xlane.xlu0 %1528 }
 0x966   : > { %3764 = vrcp.f32 %v1529_v62 }
 0x969   : > { %v1532_v63 = vpop.xlane.xlu0 %1531 }
 0x96a   : > { %3766 = vrcp.f32 %v1532_v63 }
 0x970   : > { %v3765_v1 = vpop.eup %3764 }
 0x971   : > { %v5275_v0 = vpop.f32.mrb[12].mxu0  ;;  %v1543_v12 = vmul.f32 %v3765_v1, %v3761_v58 }
 0x972   : > { %v3333_v6 = vpop.f32.mrb[13].mxu0 }
 0x973   : > { %v5277_v7 = vpop.f32.mrb[14].mxu0 }
 0x974   : > { %v3767_v9 = vpop.eup %3766  ;;  %v1646_v10 = vpack.c.bf16 %v5277_v7, %v5275_v0  ;;  %v3334_v11 = vpop.f32.mrb[15].mxu0 }
 0x975   : > { %v1544_v13 = vmul.f32 %v3767_v9, %v3763_v60 }
 0x977   : > { %v1547_v14 = vpack.c.bf16 %v1544_v13, %v1543_v12 }
 0x979   : > { %3326 = vmatmul.mubr.msk.bf16.vlgmr.msra.gmra.mrb[24].mxu1 %vm1259_vm3, %v1547_v14  ;;  %v1809_v21 = vpop.f32.mrb[16].mxu0 }
 0x97a   : > { %v1810_v23 = vadd.f32 %v1809_v21, %v1160_v16  ;;  %v3351_v24 = vpop.f32.mrb[17].mxu0  ;;  %3336 = vmatpush3.bf16.msra.mxu1 %v1656_v41 }
 0x97b   : > { %v1812_v25 = vpop.f32.mrb[18].mxu0  ;;  %3448 = vmatprep.subr.msk.bf16.mxu1 %vm1654_vm4, %v1396_v44 }
 0x97c   : > { %v1813_v26 = vadd.f32 %v1812_v25, %v1161_v22  ;;  %v3352_v27 = vpop.f32.mrb[19].mxu0  ;;  %v1867_v28 = vsel %vm1259_vm3, %v1810_v23, -inf }
 0x97d   : > { %1868 = vmax.xlane.f32.xlu0 %v1867_v28 }
 0x97e   : > { %v1870_v31 = vsel %vm1259_vm3, %v1813_v26, -inf }
 0x981   : > { %v1860_v32 = vpop.f32.mrb[20].mxu0  ;;  %1871 = vmax.xlane.f32.xlu0 %v1870_v31 }
 0x982   : > { %v1861_v33 = vadd.f32 %v1860_v32, %v1160_v16  ;;  %v3357_v34 = vpop.f32.mrb[21].mxu0  ;;  %v2009_v32 = vld [vmem:[#allocation19 + $0x8] sm:$0xf] }
 0x983   : > { %v1863_v35 = vpop.f32.mrb[22].mxu0 }
 0x984   : > { %v1864_v36 = vadd.f32 %v1863_v35, %v1161_v22  ;;  %v3358_v37 = vpop.f32.mrb[23].mxu0  ;;  %v1873_v38 = vsel %vm1259_vm3, %v1861_v33, -inf  ;;  %v1714_v22 = vsel %vm1654_vm4, %v1396_v44, 0 }
 0x985   : > { %1874 = vmax.xlane.f32.xlu0 %v1873_v38 }
 0x986   : > { %v1876_v39 = vsel %vm1259_vm3, %v1864_v36, -inf }
 0x989   : > { %1877 = vmax.xlane.f32.xlu0 %v1876_v39 }
 0xa0a   : > { %v1869_v45 = vpop.xlane.xlu0 %1868 }
 0xa0b   : > { %v1879_v46 = vsub.f32 %v1810_v23, %v1869_v45 }
 0xa0d   : > { %v1883_v47 = vmul.f32 1.442695, %v1879_v46 }
 0xa0e   : > { %v1872_v49 = vpop.xlane.xlu0 %1871 }
 0xa0f   : > { %3768 = vpow2.f32 %v1883_v47  ;;  %v1880_v52 = vsub.f32 %v1813_v26, %v1872_v49  ;;  %v1162_v47 = vld [vmem:[#allocation17 + $0x30] sm:$0xff] }
 0xa11   : > { %v1885_v53 = vmul.f32 1.442695, %v1880_v52  ;;  %v1163_v52 = vld [vmem:[#allocation17 + $0x38] sm:$0xff] }
 0xa12   : > { %v1875_v54 = vpop.xlane.xlu0 %1874 }
 0xa13   : > { %3770 = vpow2.f32 %v1885_v53  ;;  %v1881_v55 = vsub.f32 %v1861_v33, %v1875_v54  ;;  %v2017_v33 = vsel %vm1654_vm4, %v2009_v32, 0 }
 0xa15   : > { %v1887_v56 = vmul.f32 1.442695, %v1881_v55 }
 0xa16   : > { %v1878_v57 = vpop.xlane.xlu0 %1877 }
 0xa17   : > { %3772 = vpow2.f32 %v1887_v56  ;;  %v1882_v58 = vsub.f32 %v1864_v36, %v1878_v57 }
 0xa19   : > { %v3769_v59 = vpop.eup %3768  ;;  %v1889_v60 = vmul.f32 1.442695, %v1882_v58 }
 0xa1a   : > { %v1891_v61 = vsel %vm1259_vm3, %v3769_v59, 0.0 }
 0xa1b   : > { %3774 = vpow2.f32 %v1889_v60  ;;  %1892 = vadd.xlane.f32.xlu1 %v1891_v61 }
 0xa1d   : > { %v3771_v62 = vpop.eup %3770 }
 0xa1e   : > { %v1894_v63 = vsel %vm1259_vm3, %v3771_v62, 0.0 }
 0xa1f   : > { %1895 = vadd.xlane.f32.xlu0 %v1894_v63 }
 0xa21   : > { %v3773_v1 = vpop.eup %3772 }
 0xa22   : > { %v1897_v6 = vsel %vm1259_vm3, %v3773_v1, 0.0 }
 0xa23   : > { %1898 = vadd.xlane.f32.xlu0 %v1897_v6 }
 0xa25   : > { %v3775_v9 = vpop.eup %3774 }
 0xa26   : > { %v1900_v11 = vsel %vm1259_vm3, %v3775_v9, 0.0 }
 0xa27   : > { %1901 = vadd.xlane.f32.xlu0 %v1900_v11 }
 0xa2c   : > { %1960 = vrot.lane.b32.xlu1 %v5181_v42, %s4491_s23 }
 0xa3d   : > { %1913 = vrot.lane.b32.xlu0 %v5183_v43, %s4491_s23  ;;  %s4494_s23 = smov [#allocation31]  }
 0xa41   : > { %2074 = vrot.lane.b32.xlu0 %v5173_v30, %s4492_s28 }
 0xa45   : > { %2125 = vrot.lane.b32.xlu0 %v5171_v29, %s4492_s28 }
 0xa49   : > { %2072 = vrot.lane.b32.xlu0 %v5169_v19, %s4492_s28 }
 0xa4c   : > { %v1590_v12 = vpop.f32.mrb[24].mxu1 }
 0xa4d   : > { %2123 = vrot.lane.b32.xlu0 %v5167_v18, %s4492_s28  ;;  %v3327_v13 = vpop.f32.mrb[25].mxu1 }
 0xa4e   : > { %v1593_v14 = vpop.f32.mrb[26].mxu1 }
 0xa4f   : > { %v1645_v16 = vpack.c.bf16 %v1593_v14, %v1590_v12  ;;  %v3328_v21 = vpop.f32.mrb[27].mxu1 }
 0xa51   : > { %3337 = vmatprep.mubr.msk.bf16.mxu1 %vm1164_vm2, %v1645_v16 }
 0xa52   : > { %3338 = vmatmul.mubr.msk.bf16.vlgmr.msra.gmra.mrb[28].mxu1 %vm1164_vm2, %v1646_v10 }
 0xa53   : > { %3343 = vmatprep.mubr.msk.bf16.mxu1 %vm1164_vm2, %v1394_v20  ;;  %3342 = vmatpush3.bf16.msra.mxu1 %v1714_v22 }
 0xa54   : > { %3359 = vmatprep.subr.bf16.mxu1 %v4488_v8 }
 0xa5e   : > { %3344 = vmatmul.mubr.msk.bf16.vlgmr.msra.gmra.mrb[28].mxu1 %vm1164_vm2, %v1395_v51 }
 0xa5f   : > { %3361 = vmatprep.mubr.msk.bf16.mxu1 %vm4489_vm1, %v4488_v8 }
 0xaa8   : > { %v1893_v18 = vpop.xlane.xlu1 %1892 }
 0xaa9   : > { %3776 = vrcp.f32 %v1893_v18 }
 0xaac   : > { %v1961_v19 = vpop.permute.xlu1 %1960  ;;  %v1896_v29 = vpop.xlane.xlu0 %1895 }
 0xaad   : > { %3778 = vrcp.f32 %v1896_v29  ;;  %3366 = vmatpush3.bf16.msra.mxu0 %v1961_v19 }
 0xaae   : > { %3377 = vmatprep.subr.bf16.mxu0 %v4488_v8 }
 0xab0   : > { %v1899_v30 = vpop.xlane.xlu0 %1898 }
 0xab1   : > { %3780 = vrcp.f32 %v1899_v30 }
 0xab3   : > { %v3777_v17 = vpop.eup %3776 }
 0xab4   : > { %v1902_v15 = vpop.xlane.xlu0 %1901  ;;  %v1907_v48 = vmul.f32 %v3777_v17, %v3769_v59 }
 0xab5   : > { %3782 = vrcp.f32 %v1902_v15 }
 0xab7   : > { %v3779_v20 = vpop.eup %3778 }
 0xab8   : > { %v1908_v50 = vmul.f32 %v3779_v20, %v3771_v62  ;;  %v1914_v51 = vpop.permute.xlu0 %1913 }
 0xab9   : > { %3360 = vmatpush3.bf16.msra.mxu1 %v1914_v51 }
 0xaba   : > { %v1911_v0 = vpack.c.bf16 %v1908_v50, %v1907_v48  ;;  %3449 = vmatprep.subr.msk.bf16.mxu1 %vm1654_vm4, %v2009_v32 }
 0xabb   : > { %v3781_v7 = vpop.eup %3780 }
 0xabc   : > { %3362 = vmatmul.mubr.msk.bf16.vlgmr.msra.gmra.mrb[32].mxu1 %vm1259_vm3, %v1911_v0  ;;  %v2075_v23 = vpop.permute.xlu0 %2074  ;;  %v1909_v24 = vmul.f32 %v3781_v7, %v3773_v1 }
 0xabd   : > { %v2080_v27 = vsel %vm1164_vm2, %v2075_v23, 0  ;;  %3372 = vmatpush3.bf16.msra.mxu1 %v2017_v33 }
 0xabe   : > { %3383 = vmatprep.subr.bf16.mxu1 %v4488_v8 }
 0xabf   : > { %v3783_v10 = vpop.eup %3782 }
 0xac0   : > { %v1910_v25 = vmul.f32 %v3783_v10, %v3775_v9  ;;  %v2126_v28 = vpop.permute.xlu0 %2125 }
 0xac1   : > { %v2131_v46 = vsel %vm1164_vm2, %v2126_v28, 0 }
 0xac2   : > { %v1912_v26 = vpack.c.bf16 %v1910_v25, %v1909_v24 }
 0xac4   : > { %3368 = vmatmul.mubr.msk.bf16.vlgmr.msra.gmra.mrb[24].mxu0 %vm1259_vm3, %v1912_v26  ;;  %v2073_v31 = vpop.permute.xlu0 %2072 }
 0xac5   : > { %3378 = vmatpush3.bf16.xpose.msra.mxu0 %v2080_v27  ;;  %3379 = vmatprep.mubr.msk.bf16.mxu0 %vm4489_vm1, %v4488_v8 }
 0xac6   : > { %3389 = vmatprep.subr.bf16.mxu0 %v4488_v8 }
 0xac8   : > { %v2124_v59 = vpop.permute.xlu0 %2123 }
 0xacc   : > { %3380 = vmatmul.mubr.msk.bf16.vlgmr.msra.gmra.mrb[28].mxu0 %vm1164_vm2, %v2073_v31 }
 0xacd   : > { %3391 = vmatprep.mubr.msk.bf16.mxu0 %vm4489_vm1, %v4488_v8 }
 0xb8f   : > { %v1953_v34 = vpop.f32.mrb[32].mxu1 }
 0xb90   : > { %v3363_v35 = vpop.f32.mrb[33].mxu1 }
 0xb91   : > { %v1956_v36 = vpop.f32.mrb[34].mxu1 }
 0xb92   : > { %v2007_v37 = vpack.c.bf16 %v1956_v36, %v1953_v34  ;;  %v3364_v38 = vpop.f32.mrb[35].mxu1 }
 0xb94   : > { %3373 = vmatprep.mubr.msk.bf16.mxu1 %vm1164_vm2, %v2007_v37 }
 0xb97   : > { %v2000_v39 = vpop.f32.mrb[24].mxu0 }
 0xb98   : > { %v3369_v40 = vpop.f32.mrb[25].mxu0 }
 0xb99   : > { %v2003_v41 = vpop.f32.mrb[26].mxu0  ;;  %v2316_v40 = vld [vmem:[#allocation19 + $0xc] sm:$0xf] }
 0xb9a   : > { %v2008_v44 = vpack.c.bf16 %v2003_v41, %v2000_v39  ;;  %v3370_v45 = vpop.f32.mrb[27].mxu0  ;;  %v2324_v41 = vsel %vm1654_vm4, %v2316_v40, 0 }
 0xb9c   : > { %3374 = vmatmul.mubr.msk.bf16.vlgmr.msra.gmra.mrb[28].mxu1 %vm1164_vm2, %v2008_v44 }
 0xb9d   : > { %3384 = vmatpush3.bf16.xpose.msra.mxu1 %v2131_v46  ;;  %3385 = vmatprep.mubr.msk.bf16.mxu1 %vm4489_vm1, %v4488_v8 }
 0xb9e   : > { %3395 = vmatprep.subr.bf16.mxu1 %v4488_v8 }
 0xb9f   : > { %v2116_v49 = vpop.f32.mrb[28].mxu0 }
 0xba0   : > { %v2117_v53 = vadd.f32 %v2116_v49, %v1162_v47  ;;  %v3381_v54 = vpop.f32.mrb[29].mxu0 }
 0xba1   : > { %v2119_v55 = vpop.f32.mrb[30].mxu0 }
 0xba2   : > { %v2120_v56 = vadd.f32 %v2119_v55, %v1163_v52  ;;  %v3382_v57 = vpop.f32.mrb[31].mxu0  ;;  %v2174_v58 = vsel %vm1259_vm3, %v2117_v53, -inf }
 0xba3   : > { %2175 = vmax.xlane.f32.xlu0 %v2174_v58  ;;  %v3153_v58 = vld [vmem:[#allocation20] ss:$0 sm:$0xff] }
 0xba4   : > { %3386 = vmatmul.mubr.msk.bf16.vlgmr.msra.gmra.mrb[36].mxu1 %vm1164_vm2, %v2124_v59  ;;  %v2177_v60 = vsel %vm1259_vm3, %v2120_v56, -inf }
 0xba5   : > { %2178 = vmax.xlane.f32.xlu1 %v2177_v60  ;;  %3397 = vmatprep.mubr.msk.bf16.mxu1 %vm4489_vm1, %v4488_v8 }
 0xc30   : > { %v2176_v61 = vpop.xlane.xlu0 %2175 }
 0xc31   : > { %v2186_v62 = vsub.f32 %v2117_v53, %v2176_v61 }
 0xc32   : > { %v2179_v9 = vpop.xlane.xlu1 %2178 }
 0xc33   : > { %v2190_v63 = vmul.f32 1.442695, %v2186_v62  ;;  %v2187_v11 = vsub.f32 %v2120_v56, %v2179_v9 }
 0xc35   : > { %3784 = vpow2.f32 %v2190_v63  ;;  %v2192_v12 = vmul.f32 1.442695, %v2187_v11 }
 0xc37   : > { %3786 = vpow2.f32 %v2192_v12 }
 0xc3f   : > { %v3785_v1 = vpop.eup %3784 }
 0xc40   : > { %v2198_v6 = vsel %vm1259_vm3, %v3785_v1, 0.0 }
 0xc41   : > { %2199 = vadd.xlane.f32.xlu1 %v2198_v6  ;;  %v3787_v29 = vpop.eup %3786 }
 0xc42   : > { %v2201_v30 = vsel %vm1259_vm3, %v3787_v29, 0.0 }
 0xc77   : > { %v2167_v13 = vpop.f32.mrb[36].mxu1 }
 0xc78   : > { %v2168_v14 = vadd.f32 %v2167_v13, %v1162_v47  ;;  %v3387_v16 = vpop.f32.mrb[37].mxu1 }
 0xc79   : > { %v2170_v21 = vpop.f32.mrb[38].mxu1 }
 0xc7a   : > { %v2171_v22 = vadd.f32 %v2170_v21, %v1163_v52  ;;  %v3388_v18 = vpop.f32.mrb[39].mxu1  ;;  %v2180_v8 = vsel %vm1259_vm3, %v2168_v14, -inf }
 0xc7b   : > { %2181 = vmax.xlane.f32.xlu0 %v2180_v8 }
 0xc7c   : > { %v2183_v19 = vsel %vm1259_vm3, %v2171_v22, -inf }
 0xc7f   : > { %2184 = vmax.xlane.f32.xlu0 %v2183_v19 }
 0xc83   : > { %2202 = vadd.xlane.f32.xlu0 %v2201_v30 }
 0xcce   : > { %v2200_v25 = vpop.xlane.xlu1 %2199 }
 0xd08   : > { %v2182_v15 = vpop.xlane.xlu0 %2181 }
 0xd09   : > { %v2188_v17 = vsub.f32 %v2168_v14, %v2182_v15 }
 0xd0b   : > { %v2194_v20 = vmul.f32 1.442695, %v2188_v17 }
 0xd0c   : > { %v2185_v48 = vpop.xlane.xlu0 %2184 }
 0xd0d   : > { %3788 = vpow2.f32 %v2194_v20  ;;  %v2189_v50 = vsub.f32 %v2171_v22, %v2185_v48 }
 0xd0f   : > { %v2196_v51 = vmul.f32 1.442695, %v2189_v50 }
 0xd10   : > { %v2203_v24 = vpop.xlane.xlu0 %2202 }
 0xd11   : > { %3790 = vpow2.f32 %v2196_v51 }
 0xd12   : > { %3792 = vrcp.f32 %v2203_v24 }
 0xd13   : > { %3794 = vrcp.f32 %v2200_v25  ;;  %v3718_v25 = vld [vmem:[#allocation25] sm:$0xff]  }
 0xd17   : > { %v3789_v0 = vpop.eup %3788 }
 0xd18   : > { %v2204_v7 = vsel %vm1259_vm3, %v3789_v0, 0.0 }
 0xd19   : > { %2205 = vadd.xlane.f32.xlu1 %v2204_v7 }
 0xd1b   : > { %v3791_v10 = vpop.eup %3790 }
 0xd1c   : > { %v2207_v23 = vsel %vm1259_vm3, %v3791_v10, 0.0  ;;  %v3793_v26 = vpop.eup %3792 }
 0xd1d   : > { %2208 = vadd.xlane.f32.xlu0 %v2207_v23  ;;  %v3795_v28 = vpop.eup %3794  ;;  %v2215_v31 = vmul.f32 %v3793_v26, %v3787_v29  ;;  %v3719_v26 = vld [vmem:[#allocation25 + $0x8] sm:$0xff]  }
 0xd1e   : > { %v2214_v32 = vmul.f32 %v3795_v28, %v3785_v1 }
 0xd20   : > { %v2218_v35 = vpack.c.bf16 %v2215_v31, %v2214_v32 }
 0xd2a   : > { %2220 = vrot.lane.b32.xlu1 %v5183_v43, %s4492_s28 }
 0xd33   : > { %2267 = vrot.lane.b32.xlu0 %v5181_v42, %s4492_s28  ;;  %s4334_s28 = sshll.u32 %s4494_s23, 4  ;;  %s4335_s28 = int_to_ptr.vmem [resolvable:$false] %s4334_s28 }
 0xd34   : > { %s4336_s24 = scalar_lea.vmem %s4335_s28, 512  ;;  %p4337_p11 = scmp.lt.s32.totalorder %s5431_s1, %s4335_s28 }
 0xd35   : > { %p4338_p2 = scmp.lt.s32.totalorder %s4336_s24, %s4330_s27 }
 0xd37   : > { %p4339_p4 = por %p4338_p2, %p4337_p11 }
 0xd39   : > { %p4340_p6 = pnand %p4339_p4, %p4333_p5 }
 0xda6   : > { %v2206_v27 = vpop.xlane.xlu1 %2205 }
 0xda7   : > { %3796 = vrcp.f32 %v2206_v27 }
 0xdaa   : > { %v2221_v33 = vpop.permute.xlu1 %2220  ;;  %v2209_v34 = vpop.xlane.xlu0 %2208 }
 0xdab   : > { %3798 = vrcp.f32 %v2209_v34  ;;  %3390 = vmatpush3.bf16.msra.mxu0 %v2221_v33 }
 0xdac   : > { %3407 = vmatprep.subr.bf16.mxu0 %v3718_v25 }
 0xdae   : > { %3392 = vmatmul.mubr.msk.bf16.vlgmr.msra.gmra.mrb[32].mxu0 %vm1259_vm3, %v2218_v35  ;;  %v2268_v43 = vpop.permute.xlu0 %2267 }
 0xdaf   : > { %3396 = vmatpush3.bf16.msra.mxu1 %v2268_v43  ;;  %3408 = vmatpush3.bf16.msra.mxu0 %v3718_v25 }
 0xdb0   : > { %3450 = vmatprep.subr.msk.bf16.mxu1 %vm1654_vm4, %v2316_v40  ;;  %3409 = vmatprep.subr.bf16.mxu0 %v3719_v26  ;;  %v3154_v40 = vld [vmem:[#allocation22] ss:$0 sm:$0xff] }
 0xdb1   : > { %v3797_v42 = vpop.eup %3796 }
 0xdb2   : > { %v2216_v37 = vmul.f32 %v3797_v42, %v3789_v0 }
 0xdb3   : > { %3410 = vmatpush3.bf16.msra.mxu0 %v3719_v26 }
 0xdb5   : > { %v3799_v36 = vpop.eup %3798 }
 0xdb6   : > { %v2217_v38 = vmul.f32 %v3799_v36, %v3791_v10 }
 0xdb8   : > { %v2219_v39 = vpack.c.bf16 %v2217_v38, %v2216_v37 }
 0xdba   : > { %3398 = vmatmul.mubr.msk.bf16.vlgmr.msra.gmra.mrb[40].mxu1 %vm1259_vm3, %v2219_v39 }
 0xdbb   : > { %3402 = vmatpush3.bf16.msra.mxu1 %v2324_v41 }
 0xe81   : > { %v2260_v44 = vpop.f32.mrb[32].mxu0 }
 0xe82   : > { %v3393_v45 = vpop.f32.mrb[33].mxu0 }
 0xe83   : > { %v2263_v46 = vpop.f32.mrb[34].mxu0 }
 0xe84   : > { %v2314_v47 = vpack.c.bf16 %v2263_v46, %v2260_v44  ;;  %v3394_v49 = vpop.f32.mrb[35].mxu0 }
 0xe85   : > { %v3155_v49 = vld [vmem:[#allocation23] ss:$0 sm:$0xff] }
 0xe86   : > { %3403 = vmatprep.mubr.msk.bf16.mxu1 %vm1164_vm2, %v2314_v47 }
 0xe8d   : > { %v2307_v52 = vpop.f32.mrb[40].mxu1 }
 0xe8e   : > { %v3399_v53 = vpop.f32.mrb[41].mxu1 }
 0xe8f   : > { %v2310_v54 = vpop.f32.mrb[42].mxu1 }
 0xe90   : > { %v2315_v55 = vpack.c.bf16 %v2310_v54, %v2307_v52  ;;  %v3400_v56 = vpop.f32.mrb[43].mxu1 }
 0xe92   : > { %3404 = vmatmul.mubr.msk.bf16.vlgmr.msra.gmra.mrb[28].mxu1 %vm1164_vm2, %v2315_v55 }
 0xf65   : > { %v3405_v57 = vpop.f32.mrb[28].mxu1 }
 0xf66   : > { %v2360_v59 = vpop.f32.mrb[29].mxu1  ;;  %v2381_v60 = vadd.f32 %v3405_v57, %v5133_v3 }
 0xf67   : > { %v2379_v61 = vadd.f32 %v5131_v2, %v2360_v59  ;;  %v3406_v62 = vpop.f32.mrb[30].mxu1 }
 0xf68   : > { %v2363_v63 = vpop.f32.mrb[31].mxu1  ;;  %v2382_v6 = vadd.f32 %v3406_v62, %v5137_v5  ;;  %v5368_v11 = vadd.f32 %v3153_v58, %v2381_v60 }
 0xf69   : > { %v5364_v1 = vadd.f32 %v3153_v58, %v2379_v61  ;;  %v2380_v9 = vadd.f32 %v5135_v4, %v2363_v63 }
 0xf6a   : > { %v5374_v14 = vadd.f32 %v3153_v58, %v2382_v6  ;;  %v2400_v3 = vsel %vm850_vm0, %v5368_v11, 0.0  ;;  %v3720_v6 = vld [vmem:[#allocation28] sm:$0xff]  }
 0xf6b   : > { %v5370_v12 = vadd.f32 %v3153_v58, %v2380_v9  ;;  %v2394_v13 = vsel %vm850_vm0, %v5364_v1, 0.0  ;;  %3415 = vmatprep.subr.bf16.mxu0 %v3720_v6  ;;  %v3721_v9 = vld [vmem:[#allocation28 + $0x8] sm:$0xff]  }
 0xf6c   : > { %2395 = vadd.xlane.f32.xlu1 %v2394_v13  ;;  %v2403_v4 = vsel %vm850_vm0, %v5374_v14, 0.0  ;;  %v3722_v13 = vld [vmem:[#allocation28 + $0x10] sm:$0xff]  }
 0xf6d   : > { %v2397_v2 = vsel %vm850_vm0, %v5370_v12, 0.0 }
 0xf6e   : > { %2398 = vadd.xlane.f32.xlu0 %v2397_v2  ;;  %v3723_v2 = vld [vmem:[#allocation28 + $0x18] sm:$0xff]  }
 0xf70   : > { %2401 = vadd.xlane.f32.xlu1 %v2400_v3  ;;  %v3724_v3 = vld [vmem:[#allocation28 + $0x20] sm:$0xff]  }
 0xf72   : > { %2404 = vadd.xlane.f32.xlu0 %v2403_v4  ;;  %v3725_v4 = vld [vmem:[#allocation28 + $0x28] sm:$0xff]  }
 0xff9   : > { %v2396_v5 = vpop.xlane.xlu1 %2395 }
 0xffa   : > { %v2406_v16 = vmul.f32 0.03125, %v2396_v5  ;;  %v3726_v5 = vld [vmem:[#allocation28 + $0x30] sm:$0xff]  }
 0xffb   : > { %v2399_v21 = vpop.xlane.xlu0 %2398 }
 0xffc   : > { %v2410_v22 = vsub.f32 %v5364_v1, %v2406_v16  ;;  %v2407_v18 = vmul.f32 0.03125, %v2399_v21  ;;  %v3727_v16 = vld [vmem:[#allocation28 + $0x38] sm:$0xff]  }
 0xffd   : > { %v2402_v8 = vpop.xlane.xlu1 %2401  ;;  %v3156_v21 = vld [vmem:[#allocation26] ss:$0 sm:$0xff] }
 0xffe   : > { %v2411_v19 = vsub.f32 %v5370_v12, %v2407_v18  ;;  %v2408_v29 = vmul.f32 0.03125, %v2402_v8  ;;  %v2414_v30 = vmul.f32 %v2410_v22, %v2410_v22 }
 0xfff   : > { %v2405_v15 = vpop.xlane.xlu0 %2404 }
0x1000   : > { %v2412_v17 = vsub.f32 %v5368_v11, %v2408_v29  ;;  %v2409_v20 = vmul.f32 0.03125, %v2405_v15  ;;  %v2418_v48 = vsel %vm850_vm0, %v2414_v30, 0.0  ;;  %v2415_v50 = vmul.f32 %v2411_v19, %v2411_v19 }
0x1001   : > { %2419 = vadd.xlane.f32.xlu1 %v2418_v48 }
0x1002   : > { %v2413_v51 = vsub.f32 %v5374_v14, %v2409_v20  ;;  %v2421_v0 = vsel %vm850_vm0, %v2415_v50, 0.0  ;;  %v2416_v7 = vmul.f32 %v2412_v17, %v2412_v17 }
0x1003   : > { %2422 = vadd.xlane.f32.xlu0 %v2421_v0 }
0x1004   : > { %v2424_v10 = vsel %vm850_vm0, %v2416_v7, 0.0  ;;  %v2417_v23 = vmul.f32 %v2413_v51, %v2413_v51 }
0x1005   : > { %2425 = vadd.xlane.f32.xlu1 %v2424_v10 }
0x1006   : > { %v2427_v24 = vsel %vm850_vm0, %v2417_v23, 0.0 }
0x1007   : > { %2428 = vadd.xlane.f32.xlu0 %v2427_v24 }
0x108e   : > { %v2420_v27 = vpop.xlane.xlu1 %2419 }
0x108f   : > { %v2430_v28 = vmul.f32 0.03125, %v2420_v27 }
0x1090   : > { %v2423_v31 = vpop.xlane.xlu0 %2422 }
0x1091   : > { %v2434_v32 = vadd.f32 1e-05, %v2430_v28  ;;  %v2431_v33 = vmul.f32 0.03125, %v2423_v31 }
0x1092   : > { %v2426_v34 = vpop.xlane.xlu1 %2425 }
0x1093   : > { %3800 = vrsqrt.f32 %v2434_v32  ;;  %v2435_v35 = vadd.f32 1e-05, %v2431_v33  ;;  %v2432_v43 = vmul.f32 0.03125, %v2426_v34 }
0x1094   : > { %v2429_v42 = vpop.xlane.xlu0 %2428 }
0x1095   : > { %3802 = vrsqrt.f32 %v2435_v35  ;;  %v2436_v36 = vadd.f32 1e-05, %v2432_v43  ;;  %v2433_v37 = vmul.f32 0.03125, %v2429_v42 }
0x1097   : > { %3804 = vrsqrt.f32 %v2436_v36  ;;  %v2437_v38 = vadd.f32 1e-05, %v2433_v37 }
0x1099   : > { %3806 = vrsqrt.f32 %v2437_v38 }
0x109d   : > { %v3801_v39 = vpop.eup %3800 }
0x109e   : > { %v2442_v41 = vmul.f32 %v3801_v39, %v2410_v22 }
0x109f   : > { %v3803_v44 = vpop.eup %3802 }
0x10a0   : > { %v2443_v45 = vmul.f32 %v3803_v44, %v2411_v19  ;;  %v2453_v46 = vmul.f32 %v3154_v40, %v2442_v41 }
0x10a1   : > { %v3805_v47 = vpop.eup %3804 }
0x10a2   : > { %v2444_v52 = vmul.f32 %v3805_v47, %v2412_v17  ;;  %v2454_v53 = vmul.f32 %v3154_v40, %v2443_v45  ;;  %v2464_v57 = vadd.f32 %v3155_v49, %v2453_v46 }
0x10a3   : > { %v3807_v54 = vpop.eup %3806 }
0x10a4   : > { %v2455_v55 = vmul.f32 %v3154_v40, %v2444_v52  ;;  %v2445_v56 = vmul.f32 %v3807_v54, %v2413_v51  ;;  %v2465_v58 = vadd.f32 %v3155_v49, %v2454_v53 }
0x10a6   : > { %v2456_v59 = vmul.f32 %v3154_v40, %v2445_v56  ;;  %v2468_v60 = vpack.c.bf16 %v2465_v58, %v2464_v57  ;;  %v2466_v61 = vadd.f32 %v3155_v49, %v2455_v55 }
0x10a8   : > { %3411 = vmatprep.mubr.msk.bf16.mxu0 %vm850_vm0, %v2468_v60  ;;  %v2467_v62 = vadd.f32 %v3155_v49, %v2456_v59 }
0x10aa   : > { %v2469_v63 = vpack.c.bf16 %v2467_v62, %v2466_v61 }
0x10ac   : > { %3412 = vmatmul.mubr.msk.bf16.vlgmr.msra.gmra.mrb[36].mxu0 %vm850_vm0, %v2469_v63 }
0x10ad   : > { %3416 = vmatpush3.bf16.msra.mxu0 %v3720_v6 }
0x10ae   : > { %3417 = vmatprep.subr.bf16.mxu0 %v3721_v9 }
0x10b1   : > { %3418 = vmatpush3.bf16.msra.mxu0 %v3721_v9 }
0x10b2   : > { %3419 = vmatprep.subr.bf16.mxu0 %v3722_v13 }
0x10b5   : > { %3420 = vmatpush3.bf16.msra.mxu0 %v3722_v13 }
0x10b6   : > { %3421 = vmatprep.subr.bf16.mxu0 %v3723_v2 }
0x10b9   : > { %3422 = vmatpush3.bf16.msra.mxu0 %v3723_v2 }
0x10ba   : > { %3423 = vmatprep.subr.bf16.mxu0 %v3724_v3 }
0x10bd   : > { %3424 = vmatpush3.bf16.msra.mxu0 %v3724_v3 }
0x10be   : > { %3425 = vmatprep.subr.bf16.mxu0 %v3725_v4 }
0x10c1   : > { %3426 = vmatpush3.bf16.msra.mxu0 %v3725_v4 }
0x10c2   : > { %3427 = vmatprep.subr.bf16.mxu0 %v3726_v5 }
0x10c5   : > { %3428 = vmatpush3.bf16.msra.mxu0 %v3726_v5 }
0x10c6   : > { %3429 = vmatprep.subr.bf16.mxu0 %v3727_v16 }
0x10c9   : > { %3430 = vmatpush3.bf16.msra.mxu0 %v3727_v16 }
0x117f   : > { %v3413_v22 = vpop.f32.mrb[36].mxu0 }
0x1180   : > { %v5392_v18 = vadd.f32 %v3413_v22, %v3156_v21  ;;  %v2533_v8 = vpop.f32.mrb[37].mxu0 }
0x1181   : > { %v5394_v19 = vadd.f32 %v3156_v21, %v2533_v8  ;;  %v3414_v29 = vpop.f32.mrb[38].mxu0 }
0x1182   : > { %v5397_v30 = vmul.f32 0.70710677, %v5392_v18  ;;  %v5399_v15 = vadd.f32 %v3414_v29, %v3156_v21  ;;  %v2536_v17 = vpop.f32.mrb[39].mxu0 }
0x1183   : > { %v5402_v20 = vmul.f32 0.70710677, %v5394_v19  ;;  %v5408_v51 = vadd.f32 %v3156_v21, %v2536_v17 }
0x1184   : > { %v2566_v48 = vand.u32 2147483647, %v5397_v30  ;;  %v5406_v50 = vmul.f32 0.70710677, %v5399_v15  ;;  %vm2558_vm5 = vcmp.ge.f32.partialorder %v5397_v30, 0.0 }
0x1185   : > { %v2564_v0 = vand.u32 2147483647, %v5402_v20  ;;  %v5413_v25 = vmul.f32 0.70710677, %v5408_v51  ;;  %vm2556_vm6 = vcmp.ge.f32.partialorder %v5402_v20, 0.0 }
0x1186   : > { %v2570_v7 = vmul.f32 0.3275911, %v2566_v48  ;;  %v2567_v23 = vand.u32 2147483647, %v5406_v50  ;;  %v2618_v34 = vsub.f32 0.0, %v2566_v48  ;;  %vm2559_vm7 = vcmp.ge.f32.partialorder %v5406_v50, 0.0 }
0x1187   : > { %v2568_v10 = vmul.f32 0.3275911, %v2564_v0  ;;  %v2565_v28 = vand.u32 2147483647, %v5413_v25  ;;  %v2616_v35 = vsub.f32 0.0, %v2564_v0  ;;  %vm2557_vm8 = vcmp.ge.f32.partialorder %v5413_v25, 0.0 }
0x1188   : > { %v2574_v24 = vadd.f32 1.0, %v2570_v7  ;;  %v2571_v27 = vmul.f32 0.3275911, %v2567_v23  ;;  %v2622_v42 = vmul.f32 %v2618_v34, %v2566_v48  ;;  %v2619_v36 = vsub.f32 0.0, %v2567_v23 }
0x1189   : > { %v2572_v26 = vadd.f32 1.0, %v2568_v10  ;;  %v2569_v32 = vmul.f32 0.3275911, %v2565_v28  ;;  %v2620_v39 = vmul.f32 %v2616_v35, %v2564_v0  ;;  %v2617_v41 = vsub.f32 0.0, %v2565_v28 }
0x118a   : > { %3808 = vrcp.f32 %v2574_v24  ;;  %v2575_v31 = vadd.f32 1.0, %v2571_v27  ;;  %v2628_v46 = vmul.f32 1.442695, %v2622_v42  ;;  %v2623_v49 = vmul.f32 %v2619_v36, %v2567_v23 }
0x118b   : > { %3810 = vrcp.f32 %v2572_v26  ;;  %v2573_v33 = vadd.f32 1.0, %v2569_v32  ;;  %v2624_v53 = vmul.f32 1.442695, %v2620_v39  ;;  %v2621_v57 = vmul.f32 %v2617_v41, %v2565_v28 }
0x118c   : > { %3812 = vrcp.f32 %v2575_v31  ;;  %v2630_v62 = vmul.f32 1.442695, %v2623_v49  ;;  %v4493_v39 = vmov -1.0   ;;  %v2551_v50 = vmul.f32 0.5, %v5399_v15 }
0x118d   : > { %3814 = vrcp.f32 %v2573_v33  ;;  %v2626_v2 = vmul.f32 1.442695, %v2621_v57  ;;  %v2560_v30 = vsel %vm2556_vm6, 1.0, %v4493_v39  ;;  %v2561_v57 = vsel %vm2557_vm8, 1.0, %v4493_v39 }
0x118e   : > { %3816 = vpow2.f32 %v2628_v46  ;;  %v2549_v25 = vmul.f32 0.5, %v5408_v51 }
0x118f   : > { %3818 = vpow2.f32 %v2624_v53  ;;  %v2563_v53 = vsel %vm2559_vm7, 1.0, %v4493_v39 }
0x1190   : > { %3820 = vpow2.f32 %v2630_v62 }
0x1191   : > { %3822 = vpow2.f32 %v2626_v2  ;;  %v3161_v2 = vld [vmem:[#allocation29] ss:$0 sm:$0xff] }
0x1194   : > { %v3809_v43 = vpop.eup %3808 }
0x1195   : > { %v3811_v37 = vpop.eup %3810  ;;  %v2582_v38 = vmul.f32 1.0614054, %v3809_v43 }
0x1196   : > { %v2580_v40 = vmul.f32 1.0614054, %v3811_v37  ;;  %v3813_v45 = vpop.eup %3812 }
0x1197   : > { %v2586_v44 = vadd.f32 -1.4531521, %v2582_v38  ;;  %v2583_v54 = vmul.f32 1.0614054, %v3813_v45  ;;  %v3815_v55 = vpop.eup %3814 }
0x1198   : > { %v2584_v47 = vadd.f32 -1.4531521, %v2580_v40  ;;  %v2581_v60 = vmul.f32 1.0614054, %v3815_v55  ;;  %v3817_v26 = vpop.eup %3816  ;;  %v2562_v40 = vsel %vm2558_vm5, 1.0, %v4493_v39 }
0x1199   : > { %v2590_v52 = vmul.f32 %v3809_v43, %v2586_v44  ;;  %v2587_v59 = vadd.f32 -1.4531521, %v2583_v54  ;;  %v3819_v28 = vpop.eup %3818 }
0x119a   : > { %v2588_v56 = vmul.f32 %v3811_v37, %v2584_v47  ;;  %v2585_v9 = vadd.f32 -1.4531521, %v2581_v60  ;;  %v3821_v38 = vpop.eup %3820  ;;  %v2548_v60 = vmul.f32 0.5, %v5394_v19 }
0x119b   : > { %v2594_v58 = vadd.f32 1.4214138, %v2590_v52  ;;  %v2591_v6 = vmul.f32 %v3813_v45, %v2587_v59  ;;  %v3823_v46 = vpop.eup %3822 }
0x119c   : > { %v2592_v61 = vadd.f32 1.4214138, %v2588_v56  ;;  %v2589_v5 = vmul.f32 %v3815_v55, %v2585_v9  ;;  %v2550_v56 = vmul.f32 0.5, %v5392_v18 }
0x119d   : > { %v2598_v63 = vmul.f32 %v3809_v43, %v2594_v58  ;;  %v2595_v4 = vadd.f32 1.4214138, %v2591_v6 }
0x119e   : > { %v2596_v13 = vmul.f32 %v3811_v37, %v2592_v61  ;;  %v2593_v8 = vadd.f32 1.4214138, %v2589_v5 }
0x119f   : > { %v2602_v3 = vadd.f32 -0.28449672, %v2598_v63  ;;  %v2599_v22 = vmul.f32 %v3813_v45, %v2595_v4 }
0x11a0   : > { %v2600_v16 = vadd.f32 -0.28449672, %v2596_v13  ;;  %v2597_v0 = vmul.f32 %v3815_v55, %v2593_v8 }
0x11a1   : > { %v2606_v21 = vmul.f32 %v3809_v43, %v2602_v3  ;;  %v2603_v48 = vadd.f32 -0.28449672, %v2599_v22 }
0x11a2   : > { %v2604_v29 = vmul.f32 %v3811_v37, %v2600_v16  ;;  %v2601_v24 = vadd.f32 -0.28449672, %v2597_v0 }
0x11a3   : > { %v2610_v17 = vadd.f32 0.2548296, %v2606_v21  ;;  %v2607_v23 = vmul.f32 %v3813_v45, %v2603_v48 }
0x11a4   : > { %v2608_v7 = vadd.f32 0.2548296, %v2604_v29  ;;  %v2605_v33 = vmul.f32 %v3815_v55, %v2601_v24 }
0x11a5   : > { %v2614_v10 = vmul.f32 %v3809_v43, %v2610_v17  ;;  %v2611_v32 = vadd.f32 0.2548296, %v2607_v23 }
0x11a6   : > { %v2612_v27 = vmul.f32 %v3811_v37, %v2608_v7  ;;  %v2609_v36 = vadd.f32 0.2548296, %v2605_v33 }
0x11a7   : > { %v2634_v31 = vmul.f32 %v3817_v26, %v2614_v10  ;;  %v2615_v42 = vmul.f32 %v3813_v45, %v2611_v32 }
0x11a8   : > { %v2632_v34 = vmul.f32 %v3819_v28, %v2612_v27  ;;  %v2613_v44 = vmul.f32 %v3815_v55, %v2609_v36 }
0x11a9   : > { %v2638_v35 = vsub.f32 1.0, %v2634_v31  ;;  %v2635_v37 = vmul.f32 %v3821_v38, %v2615_v42 }
0x11aa   : > { %v2636_v43 = vsub.f32 1.0, %v2632_v34  ;;  %v2633_v52 = vmul.f32 %v3823_v46, %v2613_v44 }
0x11ab   : > { %v2642_v41 = vmul.f32 %v2638_v35, %v2562_v40  ;;  %v2639_v49 = vsub.f32 1.0, %v2635_v37 }
0x11ac   : > { %v2640_v47 = vmul.f32 %v2636_v43, %v2560_v30  ;;  %v2637_v54 = vsub.f32 1.0, %v2633_v52 }
0x11ad   : > { %v2646_v20 = vadd.f32 1.0, %v2642_v41  ;;  %v2643_v45 = vmul.f32 %v2639_v49, %v2563_v53 }
0x11ae   : > { %v2644_v58 = vadd.f32 1.0, %v2640_v47  ;;  %v2641_v59 = vmul.f32 %v2637_v54, %v2561_v57 }
0x11af   : > { %v2647_v55 = vadd.f32 1.0, %v2643_v45  ;;  %v2650_v61 = vmul.f32 %v2646_v20, %v2550_v56 }
0x11b0   : > { %v2645_v63 = vadd.f32 1.0, %v2641_v59  ;;  %v2648_v6 = vmul.f32 %v2644_v58, %v2548_v60 }
0x11b1   : > { %v2651_v62 = vmul.f32 %v2647_v55, %v2551_v50 }
0x11b2   : > { %v2649_v13 = vmul.f32 %v2645_v63, %v2549_v25 }
0x11b3   : > { %v2653_v9 = vpack.c.bf16 %v2651_v62, %v2650_v61 }
0x11b4   : > { %v2652_v18 = vpack.c.bf16 %v2649_v13, %v2648_v6 }
0x11b6   : > { %3431 = vmatprep.mubr.bf16.mxu0 %v2652_v18 }
0x11b7   : > { %3432 = vmatmul.mubr.bf16.vlgmr.msra.gmra.mrb[40].mxu0 %v2653_v9 }
0x128a   : > { %v3433_v15 = vpop.f32.mrb[40].mxu0 }
0x128b   : > { %v2768_v3 = vadd.f32 %v3433_v15, %v3161_v2  ;;  %v2759_v4 = vpop.f32.mrb[41].mxu0 }
0x128c   : > { %v2760_v5 = vadd.f32 %v3161_v2, %v2759_v4  ;;  %v3434_v19 = vpop.f32.mrb[42].mxu0 }
0x128d   : > { %v2776_v16 = vadd.f32 %v2768_v3, %v5368_v11  ;;  %v2771_v51 = vadd.f32 %v3434_v19, %v3161_v2  ;;  %v2762_v21 = vpop.f32.mrb[43].mxu0 }
0x128e   : > { %v2774_v22 = vadd.f32 %v2760_v5, %v5364_v1  ;;  %v2763_v8 = vadd.f32 %v3161_v2, %v2762_v21 }
0x128f   : > { %v3182_v29 = vpack.c.bf16 %v2776_v16, %v2776_v16  ;;  %v2777_v17 = vadd.f32 %v2771_v51, %v5374_v14 }
0x1290   : > { %v3180_v11 = vpack.c.bf16 %v2774_v22, %v2774_v22  ;;  %v2775_v48 = vadd.f32 %v2763_v8, %v5370_v12 }
0x1291   : > { %2797 = vst.msk [vmem:[%s838_s22 + $0x8] sm:$0xf] %vm2794_vm9, %v3182_v29  ;;  %v3183_v0 = vpack.c.bf16 %v2777_v17, %v2777_v17 }
0x1292   : > { %2795 = vst.msk [vmem:[%s838_s22] sm:$0xf] %vm2794_vm9, %v3180_v11  ;;  %v3181_v7 = vpack.c.bf16 %v2775_v48, %v2775_v48 }
0x1293   : > { %2798 = vst.msk [vmem:[%s838_s22 + $0xc] sm:$0xf] %vm2794_vm9, %v3183_v0 }
0x1294   : > { %2796 = vst.msk [vmem:[%s838_s22 + $0x4] sm:$0xf] %vm2794_vm9, %v3181_v7 }
0x1295   : > { %4343 = shalt.err (!%p4340_p6)
}
0x1296   : > { %s4344_s6 = scalar_lea.hbm %s5437_s30, 256  ;;  %s4348_s25 = scalar_lea.hbm %s5597_s10, 1024 }
0x1297   : > { %p4345_p9 = scmp.ne.s32.totalorder %s5437_s30, %s4344_s6  ;;  %p4349_p10 = scmp.lt.u32.totalorder %s5437_s30, %s5597_s10 }
0x1298   : > { %p4350_p8 = scmp.lt.u32.totalorder %s4348_s25, %s4344_s6  ;;  %p4352_p12 = scmp.lt.u32.totalorder %s4344_s6, %s5437_s30 }
0x1299   : > { %p4346_p1 = pnand %p4345_p9, %p5598_p0 }
0x129a   : > { %p4351_p13 = por %p4350_p8, %p4349_p10 }
0x129b   : > { %p4347_p3 = pneg %p4346_p1 }
0x129c   : > { %p4353_p7 = por %p4352_p12, %p4351_p13 }
0x129e   : > { %p4354_p5 = pnand %p4353_p7, %p4347_p3 }
0x12a0   : > { %4357 = shalt.err (!%p4354_p5)
}
0x12a1   : > { %s4495_s2 = smov 64   ;;  %s4496_s17 = smov 4  }
0x12a2   : > { %3521 = dma.vmem_to_hbm [thread:$0]  (%p5598_p0), %s5431_s1, 256, %s5437_s30, %s2800_s7, %s4495_s2, %s4495_s2, %s4496_s17  }
0x12a3 PF: > { %s5599_s29 = sld [smem:[#allocation43_spill]]  ;;  %p3618_p11 = scmp.ge.s32.totalorder %s4464_s20, 2 }
0x12a4   : > { %p5600_p2 = scmp.ne.s32.totalorder %s5586_s5, 0 }
0x12a6   : > { %p3580_p4 = pnand %p3618_p11, %p5600_p2 }
0x12a9   : > { %s2830_s27 = sand.u32 1, %s5599_s29  }
0x12aa   : > { %s2831_s23 = scalar_lea.sflag [#allocation4], %s2830_s27 }
0x12ab   : > { %4431 = dma.done.wait (!%p3580_p4), %s2831_s23, 256  }
0x12ac   : > { %4433 = vsyncadd (!%p3580_p4), %s2831_s23, 4294967040  ;;  %s43_s20 = sadd.s32 1, %s4464_s20   ;;  %s5601_s27 = sld [smem:[#allocation44_spill]] }
0x12ad   : > { %p40_p6 = scmp.ge.s32.totalorder %s43_s20, 6   ;;  %s5602_s28 = sld [smem:[#allocation45_spill]] }
0x12ae   : > { %s5603_s30 = sld [smem:[#allocation48_spill]]  ;;  %s5604_s3 = sld [smem:[#allocation49_spill]] }
0x12af   : > { %s5605_s8 = smov %s5611_s0  ;;  %s5606_s29 = smov %s5617_s19 }
0x12b0   : > { %s5608_s19 = smov %s5605_s8  ;;  %s5609_s1 = smov %s5615_s21 }
0x12b1   :  { %42 = sbr.rel (!%p40_p6) target bundleno = 30 (0x1e), region = 205 }
0x12b4   : > { %s5607_s0 = smov %s5604_s3 }
0x12b8   :  { %2836 = vsyncpa [#allocation3], 1 }
0x12b9   :  { %2838 = vsyncpa [#allocation3 + $0x1], 1 }
0x12ba   :  { %2839 = vsyncpa [#allocation6], 1 }
0x12bb   :  { %2840 = vsyncpa [#allocation9], 1 }
0x12bc   :  { %2841 = vsyncpa [#allocation12], 1 }
0x12bd   :  { %2842 = vsyncpa [#allocation15], 1 }
0x12be   :  { %2843 = vsyncpa [#allocation18], 1 }
0x12bf   :  { %2844 = vsyncpa [#allocation21], 1 }
0x12c0   :  { %2845 = vsyncpa [#allocation24], 1 }
0x12c1   :  { %2846 = vsyncpa [#allocation27], 1 }
0x12c2   :  { %2847 = vsyncpa [#allocation30], 1 }
0x12c3   :  { %2848 = vsyncpa [#allocation4], 1 }
0x12c4   :  { %2850 = vsyncpa [#allocation4 + $0x1], 1 }

// kernel: basic_layer_forward.3
= control target key start
LH: loop header
LB: loop body
LE: loop exit
PB: predicated region body
PF: predicated region fallthrough
CT: control target
= control target key end

     0   :  { %s5860_s0 = inlined_call_operand.hbm [shape: bf16[2,64,32], index: 0, kind: input, shape index: {}]   ;;  %s5861_s1 = inlined_call_operand.hbm [shape: f32[1,32], index: 1, kind: input, shape index: {}]   ;;  %s5862_s2 = inlined_call_operand.hbm [shape: f32[1,32], index: 2, kind: input, shape index: {}]   ;;  %s5863_s3 = inlined_call_operand.hbm [shape: bf16[32,32], index: 3, kind: input, shape index: {}]   ;;  %s5864_s4 = inlined_call_operand.hbm [shape: f32[1,32], index: 4, kind: input, shape index: {}]   ;;  %s5865_s5 = inlined_call_operand.hbm [shape: bf16[32,32], index: 5, kind: input, shape index: {}]   ;;  %s5866_s6 = inlined_call_operand.hbm [shape: f32[1,32], index: 6, kind: input, shape index: {}]   ;;  %s5867_s7 = inlined_call_operand.hbm [shape: bf16[32,32], index: 7, kind: input, shape index: {}]   ;;  %s5868_s8 = inlined_call_operand.hbm [shape: f32[1,32], index: 8, kind: input, shape index: {}]   ;;  %s5869_s9 = inlined_call_operand.hbm [shape: f32[4,16,16], index: 9, kind: input, shape index: {}]   ;;  %s5870_s10 = inlined_call_operand.hbm [shape: f32[4,16,16], index: 10, kind: input, shape index: {}]   ;;  %s5871_s11 = inlined_call_operand.hbm [shape: bf16[32,32], index: 11, kind: input, shape index: {}]   ;;  %s5872_s12 = inlined_call_operand.hbm [shape: f32[1,32], index: 12, kind: input, shape index: {}]   ;;  %s5873_s13 = inlined_call_operand.hbm [shape: f32[1,32], index: 13, kind: input, shape index: {}]   ;;  %s5874_s14 = inlined_call_operand.hbm [shape: f32[1,32], index: 14, kind: input, shape index: {}]   ;;  %s5875_s15 = inlined_call_operand.hbm [shape: bf16[32,128], index: 15, kind: input, shape index: {}]   ;;  %s5876_s16 = inlined_call_operand.hbm [shape: f32[1,128], index: 16, kind: input, shape index: {}]   ;;  %s5877_s17 = inlined_call_operand.hbm [shape: bf16[128,32], index: 17, kind: input, shape index: {}]   ;;  %s5878_s18 = inlined_call_operand.hbm [shape: f32[1,32], index: 18, kind: input, shape index: {}]   ;;  %s5879_s19 = inlined_call_operand.hbm [shape: bf16[2,64,32], index: 19, kind: output, shape index: {}]  }
   0x1   :  { %5921 = sst [smem:[#allocation55_spill]] %s5860_s0 }
   0x2   :  { %5922 = sst [smem:[#allocation56_spill]] %s5861_s1 }
   0x3   :  { %5923 = sst [smem:[#allocation57_spill]] %s5862_s2 }
   0x4   :  { %5924 = sst [smem:[#allocation58_spill]] %s5863_s3 }
   0x5   :  { %5925 = sst [smem:[#allocation59_spill]] %s5864_s4 }
   0x6   :  { %5926 = sst [smem:[#allocation60_spill]] %s5865_s5 }
   0x7   :  { %5927 = sst [smem:[#allocation61_spill]] %s5866_s6 }
   0x8   :  { %5928 = sst [smem:[#allocation62_spill]] %s5867_s7 }
   0x9   :  { %5929 = sst [smem:[#allocation63_spill]] %s5868_s8 }
   0xa   :  { %5930 = sst [smem:[#allocation64_spill]] %s5869_s9 }
   0xb   :  { %5931 = sst [smem:[#allocation65_spill]] %s5870_s10 }
   0xc   :  { %5932 = sst [smem:[#allocation66_spill]] %s5871_s11 }
   0xd   :  { %5933 = sst [smem:[#allocation67_spill]] %s5872_s12 }
   0xe   :  { %5934 = sst [smem:[#allocation68_spill]] %s5873_s13 }
   0xf   :  { %5935 = sst [smem:[#allocation69_spill]] %s5874_s14 }
  0x10   :  { %5936 = sst [smem:[#allocation70_spill]] %s5875_s15 }
  0x11   :  { %5937 = sst [smem:[#allocation71_spill]] %s5876_s16 }
  0x12   :  { %5938 = sst [smem:[#allocation72_spill]] %s5877_s17 }
  0x13   :  { %5939 = sst [smem:[#allocation73_spill]] %s5878_s18 }
  0x14   :  { %5940 = sst [smem:[#allocation74_spill]] %s5879_s19 }
  0x15   :  { %24 = vsyncpa [#allocation3], 0 }
  0x16   :  { %26 = vsyncpa [#allocation3 + $0x1], 0 }
  0x17   :  { %27 = vsyncpa [#allocation6], 0 }
  0x18   :  { %28 = vsyncpa [#allocation9], 0 }
  0x19   :  { %29 = vsyncpa [#allocation12], 0 }
  0x1a   :  { %30 = vsyncpa [#allocation15], 0 }
  0x1b   :  { %31 = vsyncpa [#allocation18], 0 }
  0x1c   :  { %32 = vsyncpa [#allocation26], 0 }
  0x1d   :  { %33 = vsyncpa [#allocation29], 0 }
  0x1e   :  { %34 = vsyncpa [#allocation4], 0 }
  0x1f   :  { %36 = vsyncpa [#allocation4 + $0x1], 0  ;;  %s4806_s0 = smov 0   ;;  %s4808_s30 = smov 0  }
  0x20   :  { %s4810_s20 = smov 0   ;;  %s4812_s21 = smov 0  }
  0x21   :  { %s4814_s1 = smov 0   ;;  %s4816_s22 = smov 0  }
  0x22   :  { %s4818_s2 = smov 0   ;;  %s4820_s23 = smov 0  }
  0x23   :  { %s4822_s24 = smov 0   ;;  %s4824_s25 = smov 0  }
  0x24   :  { %s4826_s3 = smov 0  }
  0x25 LB: > { %5941 = sst [smem:[#allocation46_spill]] %s4632_s0  ;;  %s4862_s26 = sadd.s32 4294967295, %s4672_s3   ;;  %s4672_s3 = sphi %s4826_s3, %s42_s3   ;;  %s4668_s25 = sphi %s4824_s25, %s6029_s25   ;;  %s4664_s24 = sphi %s4822_s24, %s6035_s24   ;;  %s4660_s23 = sphi %s4820_s23, %s6027_s23   ;;  %s4656_s2 = sphi %s4818_s2, %s6034_s2   ;;  %s4652_s22 = sphi %s4816_s22, %s6033_s22   ;;  %s4648_s1 = sphi %s4814_s1, %s6032_s1   ;;  %s4644_s21 = sphi %s4812_s21, %s6031_s21   ;;  %s4640_s20 = sphi %s4810_s20, %s6030_s20   ;;  %s4636_s30 = sphi %s4808_s30, %s6026_s30   ;;  %s4632_s0 = sphi %s4806_s0, %s6025_s0  }
  0x26   : > { %5942 = sst [smem:[#allocation47_spill]] %s4636_s30  ;;  %p3171_p0 = scmp.ge.s32.totalorder %s4672_s3, 1 }
  0x27   : > { %5943 = sst [smem:[#allocation48_spill]] %s4640_s20  ;;  %p5892_p1 = scmp.eq.s32.totalorder %s4862_s26, 0 }
  0x28   : > { %5944 = sst [smem:[#allocation49_spill]] %s4656_s2  ;;  %p498_p2 = scmp.lt.s32.totalorder %s4672_s3, 5 }
  0x29   : > { %5945 = sst [smem:[#allocation50_spill]] %s4660_s23  ;;  %s4674_s28 = smov [#allocation5]  }
  0x2a   : > { %5946 = sst [smem:[#allocation51_spill]] %s4668_s25  ;;  %p4867_p3 = pnand %p3171_p0, %p498_p2 }
  0x2b   : > { %s511_s29 = sshll.u32 %s4674_s28, 4  ;;  %s4675_s19 = smov [#allocation8]   ;;  %s512_s29 = int_to_ptr.vmem [resolvable:$true] %s511_s29 }
  0x2c   : > { %s5947_s27 = scalar_select %p4867_p3, 1, 0 }
  0x2d   : > { %p3634_p4 = pneg %p4867_p3  ;;  %s532_s23 = sshll.u32 %s4675_s19, 4  ;;  %s4879_s23 = int_to_ptr.vmem [resolvable:$true] %s532_s23 }
  0x2e   : > { %5948 = sst [smem:[#allocation52_spill]] %s5947_s27  ;;  %s4676_s10 = smov [#allocation11]  }
  0x2f   : > { %p4875_p5 = pnand %p3634_p4, %p5892_p1  ;;  %s4881_s0 = sshll.u32 %s4676_s10, 4  ;;  %s557_s0 = int_to_ptr.vmem [resolvable:$true] %s4881_s0 }
  0x30   : > { %s5950_s18 = sld [smem:[#allocation56_spill]] }
  0x31   : > { %s5949_s2 = scalar_select %p4875_p5, 1, 0 }
  0x32   : > { %p4891_p7 = pneg %p4875_p5 }
  0x36   : > { %s3962_s28 = scalar_lea.hbm %s5950_s18, 16 }
  0x37   : > { %p3963_p6 = scmp.ne.s32.totalorder %s5950_s18, %s3962_s28  ;;  %p3969_p10 = scmp.lt.u32.totalorder %s3962_s28, %s5950_s18 }
  0x39   : > { %p3965_p8 = pnand %p4891_p7, %p3963_p6 }
  0x3b   : > { %p3966_p9 = pneg %p3965_p8 }
  0x3d   : > { %p3971_p11 = pnand %p3969_p10, %p3966_p9 }
  0x3f   : > { %3974 = shalt.err (!%p3971_p11)
}
  0x40   : > { %s3975_s30 = scalar_lea.vmem %s512_s29, 16  ;;  %s3982_s17 = scalar_lea.vmem %s512_s29, 32 }
  0x41   : > { %p3976_p12 = scmp.ne.s32.totalorder %s512_s29, %s3975_s30  ;;  %p3983_p2 = scmp.lt.s32.totalorder %s512_s29, %s512_s29 }
  0x42   : > { %p3984_p4 = scmp.lt.s32.totalorder %s3982_s17, %s3975_s30 }
  0x43   : > { %p3978_p13 = pnand %p3976_p12, %p4891_p7 }
  0x44   : > { %p3985_p1 = por %p3984_p4, %p3983_p2 }
  0x45   : > { %p3979_p0 = pneg %p3978_p13 }
  0x47   : > { %p3986_p3 = pnand %p3985_p1, %p3979_p0 }
  0x49   : > { %3989 = shalt.err (!%p3986_p3)
}
  0x4a   : > { %3637 = dma.hbm_to_vmem [thread:$0]  (!%p4875_p5), %s5950_s18, 16, %s512_s29, [#allocation6]  }
  0x4b   : > { %s5952_s10 = sld [smem:[#allocation58_spill]] }
  0x51   : > { %s3990_s14 = scalar_lea.hbm %s5952_s10, 256 }
  0x52   : > { %p3991_p6 = scmp.ne.s32.totalorder %s5952_s10, %s3990_s14  ;;  %p3997_p1 = scmp.lt.u32.totalorder %s3990_s14, %s5952_s10 }
  0x54   : > { %p3993_p8 = pnand %p3991_p6, %p4891_p7 }
  0x56   : > { %p3994_p9 = pneg %p3993_p8 }
  0x58   : > { %p3999_p3 = pnand %p3997_p1, %p3994_p9 }
  0x5a   : > { %4002 = shalt.err (!%p3999_p3)
}
  0x5b   : > { %s4003_s29 = scalar_lea.vmem %s4879_s23, 256  ;;  %p4011_p13 = scmp.lt.s32.totalorder %s4879_s23, %s4879_s23 }
  0x5c   : > { %p4004_p10 = scmp.ne.s32.totalorder %s4879_s23, %s4003_s29  ;;  %p4012_p0 = scmp.lt.s32.totalorder %s4003_s29, %s4003_s29 }
  0x5e   : > { %p4006_p11 = pnand %p4004_p10, %p4891_p7  ;;  %p4013_p2 = por %p4012_p0, %p4011_p13 }
  0x60   : > { %p4007_p12 = pneg %p4006_p11 }
  0x62   : > { %p4014_p4 = pnand %p4013_p2, %p4007_p12 }
  0x64   : > { %4017 = shalt.err (!%p4014_p4)
}
  0x65   : > { %s5900_s12 = smov 64   ;;  %s5902_s13 = smov 4  }
  0x66   : > { %3643 = dma.hbm_to_vmem [thread:$0]  (!%p4875_p5), %s5952_s10, 256, %s4879_s23, [#allocation9], %s5900_s12, %s5900_s12, %s5902_s13  }
  0x67   : > { %s5953_s5 = sld [smem:[#allocation60_spill]] }
  0x6d   : > { %s4018_s28 = scalar_lea.hbm %s5953_s5, 256 }
  0x6e   : > { %p4019_p6 = scmp.ne.s32.totalorder %s5953_s5, %s4018_s28  ;;  %p4025_p1 = scmp.lt.u32.totalorder %s4018_s28, %s5953_s5 }
  0x70   : > { %p4021_p8 = pnand %p4019_p6, %p4891_p7 }
  0x72   : > { %p4022_p9 = pneg %p4021_p8 }
  0x74   : > { %p4027_p3 = pnand %p4025_p1, %p4022_p9 }
  0x76   : > { %4030 = shalt.err (!%p4027_p3)
}
  0x77   : > { %s4031_s14 = scalar_lea.vmem %s557_s0, 256  ;;  %p4039_p13 = scmp.lt.s32.totalorder %s557_s0, %s557_s0 }
  0x78   : > { %p4032_p10 = scmp.ne.s32.totalorder %s557_s0, %s4031_s14  ;;  %p4040_p0 = scmp.lt.s32.totalorder %s4031_s14, %s4031_s14 }
  0x7a   : > { %p4034_p11 = pnand %p4032_p10, %p4891_p7  ;;  %p4041_p2 = por %p4040_p0, %p4039_p13 }
  0x7c   : > { %p4035_p12 = pneg %p4034_p11 }
  0x7e   : > { %p4042_p4 = pnand %p4041_p2, %p4035_p12 }
  0x80   : > { %4045 = shalt.err (!%p4042_p4)
}
  0x81   : > { %3649 = dma.hbm_to_vmem [thread:$0]  (!%p4875_p5), %s5953_s5, 256, %s557_s0, [#allocation12], %s5900_s12, %s5900_s12, %s5902_s13  }
  0x82   : > { %s4679_s20 = smov [#allocation14]   ;;  %s4680_s15 = smov [#allocation7]  }
  0x83   : > { %s580_s27 = sshll.u32 %s4679_s20, 4  ;;  %s522_s28 = sshll.u32 %s4680_s15, 4  ;;  %s581_s27 = int_to_ptr.vmem [resolvable:$true] %s580_s27  ;;  %s523_s28 = int_to_ptr.vmem [resolvable:$true] %s522_s28 }
  0x84   : > { %s5954_s7 = sld [smem:[#allocation62_spill]] }
  0x8a   : > { %s4046_s29 = scalar_lea.hbm %s5954_s7, 256 }
  0x8b   : > { %p4047_p6 = scmp.ne.s32.totalorder %s5954_s7, %s4046_s29  ;;  %p4053_p1 = scmp.lt.u32.totalorder %s4046_s29, %s5954_s7 }
  0x8d   : > { %p4049_p8 = pnand %p4047_p6, %p4891_p7 }
  0x8f   : > { %p4050_p9 = pneg %p4049_p8 }
  0x91   : > { %p4055_p3 = pnand %p4053_p1, %p4050_p9 }
  0x93   : > { %4058 = shalt.err (!%p4055_p3)
}
  0x94   : > { %s4059_s0 = scalar_lea.vmem %s581_s27, 256  ;;  %p4067_p13 = scmp.lt.s32.totalorder %s581_s27, %s581_s27 }
  0x95   : > { %p4060_p10 = scmp.ne.s32.totalorder %s581_s27, %s4059_s0  ;;  %p4068_p0 = scmp.lt.s32.totalorder %s4059_s0, %s4059_s0 }
  0x97   : > { %p4062_p11 = pnand %p4060_p10, %p4891_p7  ;;  %p4069_p2 = por %p4068_p0, %p4067_p13 }
  0x99   : > { %p4063_p12 = pneg %p4062_p11 }
  0x9b   : > { %p4070_p4 = pnand %p4069_p2, %p4063_p12 }
  0x9d   : > { %4073 = shalt.err (!%p4070_p4)
}
  0x9e   : > { %3655 = dma.hbm_to_vmem [thread:$0]  (!%p4875_p5), %s5954_s7, 256, %s581_s27, [#allocation15], %s5900_s12, %s5900_s12, %s5902_s13  }
  0x9f   : > { %s5955_s15 = sld [smem:[#allocation57_spill]] }
  0xa5   : > { %s4074_s30 = scalar_lea.hbm %s5955_s15, 16 }
  0xa6   : > { %p4075_p6 = scmp.ne.s32.totalorder %s5955_s15, %s4074_s30  ;;  %p4081_p1 = scmp.lt.u32.totalorder %s4074_s30, %s5955_s15 }
  0xa8   : > { %p4077_p8 = pnand %p4075_p6, %p4891_p7 }
  0xaa   : > { %p4078_p9 = pneg %p4077_p8 }
  0xac   : > { %p4083_p3 = pnand %p4081_p1, %p4078_p9 }
  0xae   : > { %4086 = shalt.err (!%p4083_p3)
}
  0xaf   : > { %s4087_s0 = scalar_lea.vmem %s523_s28, 16  ;;  %s4094_s27 = scalar_lea.vmem %s523_s28, 32 }
  0xb0   : > { %p4088_p10 = scmp.ne.s32.totalorder %s523_s28, %s4087_s0  ;;  %p4095_p13 = scmp.lt.s32.totalorder %s523_s28, %s523_s28 }
  0xb1   : > { %p4096_p0 = scmp.lt.s32.totalorder %s4094_s27, %s4087_s0 }
  0xb2   : > { %p4090_p11 = pnand %p4088_p10, %p4891_p7 }
  0xb3   : > { %p4097_p2 = por %p4096_p0, %p4095_p13 }
  0xb4   : > { %p4091_p12 = pneg %p4090_p11 }
  0xb6   : > { %p4098_p4 = pnand %p4097_p2, %p4091_p12 }
  0xb8   : > { %4101 = shalt.err (!%p4098_p4)
}
  0xb9   : > { %3640 = dma.hbm_to_vmem [thread:$0]  (!%p4875_p5), %s5955_s15, 16, %s523_s28, [#allocation6]  }
  0xba   : > { %s4681_s23 = smov [#allocation10]   ;;  %s4682_s30 = smov [#allocation13]  }
  0xbb   : > { %s546_s20 = sshll.u32 %s4681_s23, 4  ;;  %s570_s17 = sshll.u32 %s4682_s30, 4  ;;  %s547_s20 = int_to_ptr.vmem [resolvable:$true] %s546_s20  ;;  %s571_s17 = int_to_ptr.vmem [resolvable:$true] %s570_s17 }
  0xbc   : > { %s5956_s4 = sld [smem:[#allocation59_spill]] }
  0xc2   : > { %s4102_s18 = scalar_lea.hbm %s5956_s4, 16 }
  0xc3   : > { %p4103_p6 = scmp.ne.s32.totalorder %s5956_s4, %s4102_s18  ;;  %p4109_p1 = scmp.lt.u32.totalorder %s4102_s18, %s5956_s4 }
  0xc5   : > { %p4105_p8 = pnand %p4103_p6, %p4891_p7 }
  0xc7   : > { %p4106_p9 = pneg %p4105_p8 }
  0xc9   : > { %p4111_p3 = pnand %p4109_p1, %p4106_p9 }
  0xcb   : > { %4114 = shalt.err (!%p4111_p3)
}
  0xcc   : > { %s4115_s28 = scalar_lea.vmem %s547_s20, 16  ;;  %s4122_s10 = scalar_lea.vmem %s547_s20, 32 }
  0xcd   : > { %p4116_p10 = scmp.ne.s32.totalorder %s547_s20, %s4115_s28  ;;  %p4123_p13 = scmp.lt.s32.totalorder %s547_s20, %s547_s20 }
  0xce   : > { %p4124_p0 = scmp.lt.s32.totalorder %s4122_s10, %s4115_s28 }
  0xcf   : > { %p4118_p11 = pnand %p4116_p10, %p4891_p7 }
  0xd0   : > { %p4125_p2 = por %p4124_p0, %p4123_p13 }
  0xd1   : > { %p4119_p12 = pneg %p4118_p11 }
  0xd3   : > { %p4126_p4 = pnand %p4125_p2, %p4119_p12 }
  0xd5   : > { %4129 = shalt.err (!%p4126_p4)
}
  0xd6   : > { %3646 = dma.hbm_to_vmem [thread:$0]  (!%p4875_p5), %s5956_s4, 16, %s547_s20, [#allocation9]  }
  0xd7   : > { %s5957_s6 = sld [smem:[#allocation61_spill]] }
  0xdd   : > { %s4130_s14 = scalar_lea.hbm %s5957_s6, 16 }
  0xde   : > { %p4131_p6 = scmp.ne.s32.totalorder %s5957_s6, %s4130_s14  ;;  %p4137_p1 = scmp.lt.u32.totalorder %s4130_s14, %s5957_s6 }
  0xe0   : > { %p4133_p8 = pnand %p4131_p6, %p4891_p7 }
  0xe2   : > { %p4134_p9 = pneg %p4133_p8 }
  0xe4   : > { %p4139_p3 = pnand %p4137_p1, %p4134_p9 }
  0xe6   : > { %4142 = shalt.err (!%p4139_p3)
}
  0xe7   : > { %s4143_s28 = scalar_lea.vmem %s571_s17, 16  ;;  %s4150_s20 = scalar_lea.vmem %s571_s17, 32 }
  0xe8   : > { %p4144_p10 = scmp.ne.s32.totalorder %s571_s17, %s4143_s28  ;;  %p4151_p13 = scmp.lt.s32.totalorder %s571_s17, %s571_s17 }
  0xe9   : > { %p4152_p0 = scmp.lt.s32.totalorder %s4150_s20, %s4143_s28 }
  0xea   : > { %p4146_p11 = pnand %p4144_p10, %p4891_p7 }
  0xeb   : > { %p4153_p2 = por %p4152_p0, %p4151_p13 }
  0xec   : > { %p4147_p12 = pneg %p4146_p11 }
  0xee   : > { %p4154_p4 = pnand %p4153_p2, %p4147_p12 }
  0xf0   : > { %4157 = shalt.err (!%p4154_p4)
}
  0xf1   : > { %3652 = dma.hbm_to_vmem [thread:$0]  (!%p4875_p5), %s5957_s6, 16, %s571_s17, [#allocation12]  }
  0xf2   : > { %s4683_s30 = smov [#allocation16]   ;;  %s4684_s29 = smov [#allocation17]  }
  0xf3   : > { %s594_s12 = sshll.u32 %s4683_s30, 4  ;;  %s604_s14 = sshll.u32 %s4684_s29, 4  ;;  %s595_s12 = int_to_ptr.vmem [resolvable:$true] %s594_s12  ;;  %s605_s14 = int_to_ptr.vmem [resolvable:$true] %s604_s14 }
  0xf4   : > { %s5958_s8 = sld [smem:[#allocation63_spill]] }
  0xfa   : > { %s4158_s27 = scalar_lea.hbm %s5958_s8, 16 }
  0xfb   : > { %p4159_p6 = scmp.ne.s32.totalorder %s5958_s8, %s4158_s27  ;;  %p4165_p1 = scmp.lt.u32.totalorder %s4158_s27, %s5958_s8 }
  0xfd   : > { %p4161_p8 = pnand %p4159_p6, %p4891_p7 }
  0xff   : > { %p4162_p9 = pneg %p4161_p8 }
 0x101   : > { %p4167_p3 = pnand %p4165_p1, %p4162_p9 }
 0x103   : > { %4170 = shalt.err (!%p4167_p3)
}
 0x104   : > { %s4171_s17 = scalar_lea.vmem %s595_s12, 16  ;;  %s4178_s23 = scalar_lea.vmem %s595_s12, 32 }
 0x105   : > { %p4172_p10 = scmp.ne.s32.totalorder %s595_s12, %s4171_s17  ;;  %p4179_p13 = scmp.lt.s32.totalorder %s595_s12, %s595_s12 }
 0x106   : > { %p4180_p0 = scmp.lt.s32.totalorder %s4178_s23, %s4171_s17 }
 0x107   : > { %p4174_p11 = pnand %p4172_p10, %p4891_p7 }
 0x108   : > { %p4181_p2 = por %p4180_p0, %p4179_p13 }
 0x109   : > { %p4175_p12 = pneg %p4174_p11 }
 0x10b   : > { %p4182_p4 = pnand %p4181_p2, %p4175_p12 }
 0x10d   : > { %4185 = shalt.err (!%p4182_p4)
}
 0x10e   : > { %3658 = dma.hbm_to_vmem [thread:$0]  (!%p4875_p5), %s5958_s8, 16, %s595_s12, [#allocation15]  }
 0x10f   : > { %s5959_s9 = sld [smem:[#allocation64_spill]] }
 0x115   : > { %s4186_s27 = scalar_lea.hbm %s5959_s9, 1024 }
 0x116   : > { %p4187_p6 = scmp.ne.s32.totalorder %s5959_s9, %s4186_s27  ;;  %p4193_p1 = scmp.lt.u32.totalorder %s4186_s27, %s5959_s9 }
 0x118   : > { %p4189_p8 = pnand %p4187_p6, %p4891_p7 }
 0x11a   : > { %p4190_p9 = pneg %p4189_p8 }
 0x11c   : > { %p4195_p3 = pnand %p4193_p1, %p4190_p9 }
 0x11e   : > { %4198 = shalt.err (!%p4195_p3)
}
 0x11f   : > { %s4199_s17 = scalar_lea.vmem %s605_s14, 1024  ;;  %p4207_p13 = scmp.lt.s32.totalorder %s605_s14, %s605_s14 }
 0x120   : > { %p4200_p10 = scmp.ne.s32.totalorder %s605_s14, %s4199_s17  ;;  %p4208_p0 = scmp.lt.s32.totalorder %s4199_s17, %s4199_s17 }
 0x122   : > { %p4202_p11 = pnand %p4200_p10, %p4891_p7  ;;  %p4209_p2 = por %p4208_p0, %p4207_p13 }
 0x124   : > { %p4203_p12 = pneg %p4202_p11 }
 0x126   : > { %p4210_p4 = pnand %p4209_p2, %p4203_p12 }
 0x128   : > { %4213 = shalt.err (!%p4210_p4)
}
 0x129   : > { %s5904_s12 = smov 128   ;;  %s5905_s23 = smov 8  }
 0x12a   : > { %3661 = dma.hbm_to_vmem [thread:$0]  (!%p4875_p5), %s5959_s9, 1024, %s605_s14, [#allocation18], %s5904_s12, %s5904_s12, %s5905_s23  }
 0x12b   : > { %s4687_s18 = smov [#allocation25]   ;;  %s5960_s16 = sld [smem:[#allocation71_spill]] }
 0x12c   : > { %s677_s0 = sshll.u32 %s4687_s18, 4  ;;  %s678_s0 = int_to_ptr.vmem [resolvable:$true] %s677_s0 }
 0x131   : > { %s4214_s28 = scalar_lea.hbm %s5960_s16, 16 }
 0x132   : > { %p4215_p6 = scmp.ne.s32.totalorder %s5960_s16, %s4214_s28  ;;  %p4221_p1 = scmp.lt.u32.totalorder %s4214_s28, %s5960_s16 }
 0x134   : > { %p4217_p8 = pnand %p4215_p6, %p4891_p7 }
 0x136   : > { %p4218_p9 = pneg %p4217_p8 }
 0x138   : > { %p4223_p3 = pnand %p4221_p1, %p4218_p9 }
 0x13a   : > { %4226 = shalt.err (!%p4223_p3)
}
 0x13b   : > { %s4227_s14 = scalar_lea.vmem %s678_s0, 16  ;;  %s4234_s30 = scalar_lea.vmem %s678_s0, 32 }
 0x13c   : > { %p4228_p10 = scmp.ne.s32.totalorder %s678_s0, %s4227_s14  ;;  %p4235_p13 = scmp.lt.s32.totalorder %s678_s0, %s678_s0 }
 0x13d   : > { %p4236_p0 = scmp.lt.s32.totalorder %s4234_s30, %s4227_s14 }
 0x13e   : > { %p4230_p11 = pnand %p4228_p10, %p4891_p7 }
 0x13f   : > { %p4237_p2 = por %p4236_p0, %p4235_p13 }
 0x140   : > { %p4231_p12 = pneg %p4230_p11 }
 0x142   : > { %p4238_p4 = pnand %p4237_p2, %p4231_p12 }
 0x144   : > { %4241 = shalt.err (!%p4238_p4)
}
 0x145   : > { %3679 = dma.hbm_to_vmem [thread:$0]  (!%p4875_p5), %s5960_s16, 16, %s678_s0, [#allocation26]  }
 0x146   : > { %s3170_s13 = sadd.s32 4294967294, %s4672_s3   ;;  %s51_s27 = sadd.s32 1, %s4664_s24 }
 0x147   : > { %p52_p6 = scmp.ge.s32.totalorder %s51_s27, 2  ;;  %s54_s11 = sadd.s32 1, %s4668_s25 }
 0x148   : > { %s63_s28 = sadd.s32 1, %s4652_s22  ;;  %p70_p8 = scmp.ne.s32.totalorder %s4652_s22, %s4648_s1 }
 0x149   : > { %s6037_s27 = smov (%p52_p6, %s51_s27), 0  ;;  %s6039_s11 = smov (!%p52_p6, %s54_s11), %s4668_s25 }
 0x14a   : > { %5961 = sst [smem:[#allocation53_spill]] %s6037_s27  ;;  %s5098_s20 = ssub.s32 %s4664_s24, %s6037_s27 }
 0x14b   : > { %p5908_p9 = scmp.eq.s32.totalorder %s4672_s3, 0  ;;  %p56_p1 = scmp.ge.s32.totalorder %s6039_s11, 2 }
 0x14c   : > { %p76_p3 = scmp.ne.s32.totalorder %s4648_s1, %s4644_s21  ;;  %p5964_p12 = scmp.eq.s32.totalorder %s4862_s26, 0 }
 0x14d   : > { %p5108_p10 = por %p5908_p9, %p70_p8  ;;  %s6041_s11 = smov (%p56_p1, %s6039_s11), 0 }
 0x14e   : > { %5963 = sst [smem:[#allocation54_spill]] %s6041_s11  ;;  %p5117_p13 = por %p5964_p12, %p76_p3 }
 0x14f   : > { %p485_p0 = scmp.eq.s32.totalorder %s4862_s26, 3  ;;  %s58_s17 = ssub.s32 %s4668_s25, %s6041_s11 }
 0x150   : > { %s5965_s10 = scalar_select %p5117_p13, 1, 0 }
 0x151   : > { %p491_p2 = scmp.eq.s32.totalorder %s3170_s13, 3  ;;  %s60_s14 = sor.u32 %s5098_s20, %s58_s17 }
 0x152   : > { %p5128_p4 = por %p485_p0, %p70_p8  ;;  %p61_p6 = scmp.eq.s32.totalorder %s60_s14, 0 }
 0x153   : > { %p5132_p1 = por %p491_p2, %p76_p3  ;;  %p5907_p12 = scmp.lt.s32.totalorder %s4672_s3, 4 }
 0x154   : > { %s5966_s30 = scalar_select %p5128_p4, 1, 0 }
 0x155   : > { %s5967_s29 = scalar_select %p5132_p1, 1, 0 }
 0x156   : > { %s712_s18 = sand.u32 1, %s4672_s3   ;;  %s714_s23 = sand.u32 1, %s4652_s22  }
 0x157   : > { %s5139_s12 = scalar_select %p61_p6, %s4652_s22, %s63_s28  }
 0x158   : > { %s3190_s4 = sshll.u32 %s714_s23, 4  ;;  %s3191_s13 = sshll.u32 %s4664_s24, 2 }
 0x159   : > { %s3192_s17 = sshll.u32 %s4668_s25, 3  ;;  %s716_s6 = scalar_lea.vmem [#allocation2], %s3190_s4 }
 0x15a   : > { %s722_s5 = sadd.s32 %s3192_s17, %s3191_s13  ;;  %s725_s7 = sshll.u32 %s716_s6, 4  ;;  %s5144_s7 = int_to_ptr.vmem [resolvable:$true] %s725_s7 }
 0x15b   : > { %s3193_s8 = sshll.u32 %s722_s5, 6  ;;  %s5968_s15 = sld [smem:[#allocation55_spill]] }
 0x15c   : > { %p5155_p8 = pnand %p5907_p12, %p5108_p10  ;;  %s4688_s4 = smov [#allocation20]  }
 0x15d   : > { %s5159_s5 = sshll.u32 %s4688_s4, 4  ;;  %s5161_s6 = scalar_lea.sflag [#allocation3], %s712_s18  ;;  %s618_s5 = int_to_ptr.vmem [resolvable:$true] %s5159_s5 }
 0x15e   : > { %p4244_p0 = pneg %p5155_p8 }
 0x161   : > { %s5149_s16 = scalar_lea.hbm %s5968_s15, %s3193_s8  ;;  %s4247_s0 = scalar_lea.hbm %s5968_s15, 1024 }
 0x162   : > { %s4242_s9 = scalar_lea.hbm %s5149_s16, 256  ;;  %p4248_p10 = scmp.lt.u32.totalorder %s5149_s16, %s5968_s15 }
 0x163   : > { %p4243_p3 = scmp.ne.s32.totalorder %s5149_s16, %s4242_s9  ;;  %p4249_p12 = scmp.lt.u32.totalorder %s4247_s0, %s4242_s9 }
 0x164   : > { %p4251_p11 = scmp.lt.u32.totalorder %s4242_s9, %s5149_s16 }
 0x165   : > { %p4245_p2 = pnand %p4244_p0, %p4243_p3  ;;  %p4250_p9 = por %p4249_p12, %p4248_p10 }
 0x167   : > { %p4246_p6 = pneg %p4245_p2  ;;  %p4252_p1 = por %p4251_p11, %p4250_p9 }
 0x169   : > { %p4253_p4 = pnand %p4252_p1, %p4246_p6 }
 0x16b   : > { %4256 = shalt.err (!%p4253_p4)
}
 0x16c   : > { %s4257_s18 = scalar_lea.vmem %s5144_s7, 256  ;;  %s4689_s14 = smov [#allocation2]  }
 0x16d   : > { %p4258_p3 = scmp.ne.s32.totalorder %s5144_s7, %s4257_s18  ;;  %s4262_s4 = sshll.u32 %s4689_s14, 4  ;;  %s4263_s4 = int_to_ptr.vmem [resolvable:$false] %s4262_s4 }
 0x16e   : > { %s4264_s8 = scalar_lea.vmem %s4263_s4, 512  ;;  %p4265_p5 = scmp.lt.s32.totalorder %s5144_s7, %s4263_s4 }
 0x16f   : > { %p4260_p2 = pnand %p4258_p3, %p4244_p0  ;;  %p4266_p12 = scmp.lt.s32.totalorder %s4264_s8, %s4257_s18 }
 0x171   : > { %p4261_p13 = pneg %p4260_p2  ;;  %p4267_p10 = por %p4266_p12, %p4265_p5 }
 0x173   : > { %p4268_p9 = pnand %p4267_p10, %p4261_p13 }
 0x175   : > { %4271 = shalt.err (!%p4268_p9)
}
 0x176   : > { %s5970_s9 = smov 4   ;;  %s5971_s28 = smov 64  }
 0x177   : > { %3689 = dma.hbm_to_vmem [thread:$0]  (!%p5155_p8), %s5149_s16, 256, %s5144_s7, %s5161_s6, %s5971_s28, %s5971_s28, %s5970_s9  }
 0x178   : > { %s4690_s0 = smov [#allocation21]   ;;  %s5972_s18 = sld [smem:[#allocation66_spill]] }
 0x179   : > { %s631_s13 = sshll.u32 %s4690_s0, 4  ;;  %s632_s13 = int_to_ptr.vmem [resolvable:$true] %s631_s13 }
 0x17e   : > { %s4272_s4 = scalar_lea.hbm %s5972_s18, 256 }
 0x17f   : > { %p4273_p5 = scmp.ne.s32.totalorder %s5972_s18, %s4272_s4  ;;  %p4279_p4 = scmp.lt.u32.totalorder %s4272_s4, %s5972_s18 }
 0x181   : > { %p4275_p11 = pnand %p4273_p5, %p4891_p7 }
 0x183   : > { %p4276_p13 = pneg %p4275_p11 }
 0x185   : > { %p4281_p1 = pnand %p4279_p4, %p4276_p13 }
 0x187   : > { %4284 = shalt.err (!%p4281_p1)
}
 0x188   : > { %s4285_s7 = scalar_lea.vmem %s618_s5, 256  ;;  %p4293_p3 = scmp.lt.s32.totalorder %s618_s5, %s618_s5 }
 0x189   : > { %p4286_p8 = scmp.ne.s32.totalorder %s618_s5, %s4285_s7  ;;  %p4294_p2 = scmp.lt.s32.totalorder %s4285_s7, %s4285_s7 }
 0x18b   : > { %p4288_p0 = pnand %p4286_p8, %p4891_p7  ;;  %p4295_p12 = por %p4294_p2, %p4293_p3 }
 0x18d   : > { %p4289_p6 = pneg %p4288_p0 }
 0x18f   : > { %p4296_p10 = pnand %p4295_p12, %p4289_p6 }
 0x191   : > { %4299 = shalt.err (!%p4296_p10)
}
 0x192   : > { %p5973_p9 = scmp.ne.s32.totalorder %s5949_s2, 0  ;;  %s5974_s17 = sld [smem:[#allocation67_spill]] }
 0x194   : > { %3664 = dma.hbm_to_vmem [thread:$0]  (!%p5973_p9), %s5972_s18, 256, %s618_s5, [#allocation6], %s5971_s28, %s5971_s28, %s5970_s9  }
 0x198   : > { %s4300_s14 = scalar_lea.hbm %s5974_s17, 16 }
 0x199   : > { %p4301_p5 = scmp.ne.s32.totalorder %s5974_s17, %s4300_s14  ;;  %p4307_p4 = scmp.lt.u32.totalorder %s4300_s14, %s5974_s17 }
 0x19b   : > { %p4303_p11 = pnand %p4301_p5, %p4891_p7 }
 0x19d   : > { %p4304_p13 = pneg %p4303_p11 }
 0x19f   : > { %p4309_p1 = pnand %p4307_p4, %p4304_p13 }
 0x1a1   : > { %4312 = shalt.err (!%p4309_p1)
}
 0x1a2   : > { %s4313_s16 = scalar_lea.vmem %s632_s13, 16  ;;  %s4320_s5 = scalar_lea.vmem %s632_s13, 32 }
 0x1a3   : > { %p4314_p8 = scmp.ne.s32.totalorder %s632_s13, %s4313_s16  ;;  %p4321_p3 = scmp.lt.s32.totalorder %s632_s13, %s632_s13 }
 0x1a4   : > { %p4322_p2 = scmp.lt.s32.totalorder %s4320_s5, %s4313_s16 }
 0x1a5   : > { %p4316_p0 = pnand %p4314_p8, %p4891_p7 }
 0x1a6   : > { %p4323_p12 = por %p4322_p2, %p4321_p3 }
 0x1a7   : > { %p4317_p6 = pneg %p4316_p0 }
 0x1a9   : > { %p4324_p10 = pnand %p4323_p12, %p4317_p6 }
 0x1ab   : > { %4327 = shalt.err (!%p4324_p10)
}
 0x1ac   : > { %3667 = dma.hbm_to_vmem [thread:$0]  (!%p5973_p9), %s5974_s17, 16, %s632_s13, [#allocation9]  }
 0x1ad   : > { %s4691_s0 = smov [#allocation22]   ;;  %s4692_s4 = smov [#allocation23]  }
 0x1ae   : > { %s642_s14 = sshll.u32 %s4691_s0, 4  ;;  %s653_s8 = sshll.u32 %s4692_s4, 4  ;;  %s643_s14 = int_to_ptr.vmem [resolvable:$true] %s642_s14  ;;  %s654_s8 = int_to_ptr.vmem [resolvable:$true] %s653_s8 }
 0x1af   : > { %s5975_s18 = sld [smem:[#allocation68_spill]] }
 0x1b5   : > { %s4328_s27 = scalar_lea.hbm %s5975_s18, 16 }
 0x1b6   : > { %p4329_p5 = scmp.ne.s32.totalorder %s5975_s18, %s4328_s27  ;;  %p4335_p4 = scmp.lt.u32.totalorder %s4328_s27, %s5975_s18 }
 0x1b8   : > { %p4331_p11 = pnand %p4329_p5, %p4891_p7 }
 0x1ba   : > { %p4332_p13 = pneg %p4331_p11 }
 0x1bc   : > { %p4337_p1 = pnand %p4335_p4, %p4332_p13 }
 0x1be   : > { %4340 = shalt.err (!%p4337_p1)
}
 0x1bf   : > { %s4341_s13 = scalar_lea.vmem %s643_s14, 16  ;;  %s4348_s11 = scalar_lea.vmem %s643_s14, 32 }
 0x1c0   : > { %p4342_p8 = scmp.ne.s32.totalorder %s643_s14, %s4341_s13  ;;  %p4349_p3 = scmp.lt.s32.totalorder %s643_s14, %s643_s14 }
 0x1c1   : > { %p4350_p2 = scmp.lt.s32.totalorder %s4348_s11, %s4341_s13 }
 0x1c2   : > { %p4344_p0 = pnand %p4342_p8, %p4891_p7 }
 0x1c3   : > { %p4351_p12 = por %p4350_p2, %p4349_p3 }
 0x1c4   : > { %p4345_p6 = pneg %p4344_p0 }
 0x1c6   : > { %p4352_p10 = pnand %p4351_p12, %p4345_p6 }
 0x1c8   : > { %4355 = shalt.err (!%p4352_p10)
}
 0x1c9   : > { %3670 = dma.hbm_to_vmem [thread:$0]  (!%p5973_p9), %s5975_s18, 16, %s643_s14, [#allocation12]  }
 0x1ca   : > { %s5976_s23 = sld [smem:[#allocation69_spill]] }
 0x1d0   : > { %s5977_s7 = smov %s5976_s23  ;;  %s4356_s16 = scalar_lea.hbm %s5976_s23, 16 }
 0x1d1   : > { %p4357_p5 = scmp.ne.s32.totalorder %s5977_s7, %s4356_s16  ;;  %p4363_p4 = scmp.lt.u32.totalorder %s4356_s16, %s5977_s7 }
 0x1d3   : > { %p4359_p11 = pnand %p4357_p5, %p4891_p7 }
 0x1d5   : > { %p4360_p13 = pneg %p4359_p11 }
 0x1d7   : > { %p4365_p1 = pnand %p4363_p4, %p4360_p13 }
 0x1d9   : > { %4368 = shalt.err (!%p4365_p1)
}
 0x1da   : > { %s4369_s0 = scalar_lea.vmem %s654_s8, 16  ;;  %s4376_s14 = scalar_lea.vmem %s654_s8, 32 }
 0x1db   : > { %p4370_p8 = scmp.ne.s32.totalorder %s654_s8, %s4369_s0  ;;  %p4377_p3 = scmp.lt.s32.totalorder %s654_s8, %s654_s8 }
 0x1dc   : > { %p4378_p2 = scmp.lt.s32.totalorder %s4376_s14, %s4369_s0 }
 0x1dd   : > { %p4372_p0 = pnand %p4370_p8, %p4891_p7 }
 0x1de   : > { %p4379_p12 = por %p4378_p2, %p4377_p3 }
 0x1df   : > { %p4373_p6 = pneg %p4372_p0 }
 0x1e1   : > { %p4380_p10 = pnand %p4379_p12, %p4373_p6 }
 0x1e3   : > { %4383 = shalt.err (!%p4380_p10)
}
 0x1e4   : > { %3673 = dma.hbm_to_vmem [thread:$0]  (!%p5973_p9), %s5977_s7, 16, %s654_s8, [#allocation15]  }
 0x1e5   : > { %s4693_s27 = smov [#allocation24]   ;;  %s4694_s16 = smov [#allocation27]  }
 0x1e6   : > { %s663_s23 = sshll.u32 %s4693_s27, 4  ;;  %s687_s5 = sshll.u32 %s4694_s16, 4  ;;  %s664_s23 = int_to_ptr.vmem [resolvable:$true] %s663_s23  ;;  %s688_s5 = int_to_ptr.vmem [resolvable:$true] %s687_s5 }
 0x1e7   : > { %s5978_s11 = sld [smem:[#allocation70_spill]] }
 0x1ed   : > { %s4384_s17 = scalar_lea.hbm %s5978_s11, 256 }
 0x1ee   : > { %p4385_p5 = scmp.ne.s32.totalorder %s5978_s11, %s4384_s17  ;;  %p4391_p4 = scmp.lt.u32.totalorder %s4384_s17, %s5978_s11 }
 0x1f0   : > { %p4387_p11 = pnand %p4385_p5, %p4891_p7 }
 0x1f2   : > { %p4388_p13 = pneg %p4387_p11 }
 0x1f4   : > { %p4393_p1 = pnand %p4391_p4, %p4388_p13 }
 0x1f6   : > { %4396 = shalt.err (!%p4393_p1)
}
 0x1f7   : > { %s4397_s8 = scalar_lea.vmem %s664_s23, 256  ;;  %p4405_p3 = scmp.lt.s32.totalorder %s664_s23, %s664_s23 }
 0x1f8   : > { %p4398_p8 = scmp.ne.s32.totalorder %s664_s23, %s4397_s8  ;;  %p4406_p2 = scmp.lt.s32.totalorder %s4397_s8, %s4397_s8 }
 0x1fa   : > { %p4400_p0 = pnand %p4398_p8, %p4891_p7  ;;  %p4407_p12 = por %p4406_p2, %p4405_p3 }
 0x1fc   : > { %p4401_p6 = pneg %p4400_p0 }
 0x1fe   : > { %p4408_p10 = pnand %p4407_p12, %p4401_p6 }
 0x200   : > { %4411 = shalt.err (!%p4408_p10)
}
 0x201   : > { %3676 = dma.hbm_to_vmem [thread:$0]  (!%p5973_p9), %s5978_s11, 256, %s664_s23, [#allocation18], %s5971_s28, %s5971_s28, %s5970_s9  }
 0x202   : > { %s5979_s16 = sld [smem:[#allocation72_spill]] }
 0x208   : > { %s4412_s15 = scalar_lea.hbm %s5979_s16, 1024 }
 0x209   : > { %p4413_p5 = scmp.ne.s32.totalorder %s5979_s16, %s4412_s15  ;;  %p4419_p4 = scmp.lt.u32.totalorder %s4412_s15, %s5979_s16 }
 0x20b   : > { %p4415_p11 = pnand %p4413_p5, %p4891_p7 }
 0x20d   : > { %p4416_p13 = pneg %p4415_p11 }
 0x20f   : > { %p4421_p1 = pnand %p4419_p4, %p4416_p13 }
 0x211   : > { %4424 = shalt.err (!%p4421_p1)
}
 0x212   : > { %s4425_s8 = scalar_lea.vmem %s688_s5, 1024  ;;  %p4433_p3 = scmp.lt.s32.totalorder %s688_s5, %s688_s5 }
 0x213   : > { %p4426_p8 = scmp.ne.s32.totalorder %s688_s5, %s4425_s8  ;;  %p4434_p2 = scmp.lt.s32.totalorder %s4425_s8, %s4425_s8 }
 0x215   : > { %p4428_p0 = pnand %p4426_p8, %p4891_p7  ;;  %p4435_p12 = por %p4434_p2, %p4433_p3 }
 0x217   : > { %p4429_p6 = pneg %p4428_p0 }
 0x219   : > { %p4436_p10 = pnand %p4435_p12, %p4429_p6 }
 0x21b   : > { %4439 = shalt.err (!%p4436_p10)
}
 0x21c   : > { %3682 = dma.hbm_to_vmem [thread:$0]  (!%p5973_p9), %s5979_s16, 1024, %s688_s5, [#allocation26], %s5971_s28, %s5971_s28, %s5970_s9  }
 0x21d   : > { %s4695_s17 = smov [#allocation28]   ;;  %s5980_s13 = sld [smem:[#allocation73_spill]] }
 0x21e   : > { %s701_s25 = sshll.u32 %s4695_s17, 4  ;;  %s702_s25 = int_to_ptr.vmem [resolvable:$true] %s701_s25 }
 0x223   : > { %s4440_s0 = scalar_lea.hbm %s5980_s13, 16 }
 0x224   : > { %p4441_p5 = scmp.ne.s32.totalorder %s5980_s13, %s4440_s0  ;;  %p4447_p4 = scmp.lt.u32.totalorder %s4440_s0, %s5980_s13 }
 0x226   : > { %p4443_p11 = pnand %p4441_p5, %p4891_p7 }
 0x228   : > { %p4444_p13 = pneg %p4443_p11 }
 0x22a   : > { %p4449_p1 = pnand %p4447_p4, %p4444_p13 }
 0x22c   : > { %4452 = shalt.err (!%p4449_p1)
}
 0x22d   : > { %s4453_s9 = scalar_lea.vmem %s702_s25, 16  ;;  %s4460_s28 = scalar_lea.vmem %s702_s25, 32 }
 0x22e   : > { %p4454_p8 = scmp.ne.s32.totalorder %s702_s25, %s4453_s9  ;;  %p4461_p3 = scmp.lt.s32.totalorder %s702_s25, %s702_s25 }
 0x22f   : > { %p4462_p2 = scmp.lt.s32.totalorder %s4460_s28, %s4453_s9 }
 0x230   : > { %p4456_p0 = pnand %p4454_p8, %p4891_p7 }
 0x231   : > { %p4463_p12 = por %p4462_p2, %p4461_p3 }
 0x232   : > { %p4457_p6 = pneg %p4456_p0 }
 0x234   : > { %p4464_p10 = pnand %p4463_p12, %p4457_p6 }
 0x236   : > { %4467 = shalt.err (!%p4464_p10)
}
 0x237   : > { %s5981_s7 = sld [smem:[#allocation48_spill]]  ;;  %s5982_s18 = sld [smem:[#allocation47_spill]] }
 0x238   : > { %s5983_s19 = sld [smem:[#allocation46_spill]]  ;;  %p5984_p5 = scmp.eq.s32.totalorder %s5098_s20, 0 }
 0x239   : > { %3685 = dma.hbm_to_vmem [thread:$0]  (!%p5973_p9), %s5980_s13, 16, %s702_s25, [#allocation29]  }
 0x23a   : > { %p5985_p11 = scmp.eq.s32.totalorder %s4672_s3, 0  ;;  %s3288_s15 = sshll.u32 %s4664_s24, 9 }
 0x23b   : > { %p5986_p1 = scmp.eq.s32.totalorder %s4862_s26, 0  ;;  %s5988_s9 = sld [smem:[#allocation65_spill]] }
 0x23c   : > { %p5989_p9 = scmp.lt.s32.totalorder %s4672_s3, 4 }
 0x23d   : > { %s278_s17 = sadd.s32 1, %s5981_s7  ;;  %p285_p7 = scmp.ne.s32.totalorder %s5981_s7, %s5982_s18 }
 0x23e   : > { %s5334_s2 = scalar_select %p5984_p5, %s5981_s7, %s278_s17  }
 0x23f   : > { %p287_p13 = por %p285_p7, %p5985_p11  ;;  %p291_p4 = scmp.ne.s32.totalorder %s5982_s18, %s5983_s19 }
 0x240   : > { %s737_s27 = sand.u32 1, %s5981_s7  }
 0x241   : > { %p5344_p8 = por %p291_p4, %p5986_p1  ;;  %s3194_s14 = sshll.u32 %s737_s27, 5 }
 0x242   : > { %s5351_s25 = scalar_lea.hbm %s5988_s9, %s3288_s15  ;;  %s739_s20 = scalar_lea.vmem [#allocation19], %s3194_s14 }
 0x243   : > { %s747_s28 = sshll.u32 %s739_s20, 4  ;;  %p5355_p0 = pnand %p5989_p9, %p287_p13  ;;  %s5359_s28 = int_to_ptr.vmem [resolvable:$true] %s747_s28 }
 0x244   : > { %s4468_s23 = scalar_lea.hbm %s5351_s25, 512  ;;  %s4473_s19 = scalar_lea.hbm %s5988_s9, 1024 }
 0x245   : > { %p4469_p6 = scmp.ne.s32.totalorder %s5351_s25, %s4468_s23  ;;  %p4470_p3 = pneg %p5355_p0 }
 0x246   : > { %p4474_p10 = scmp.lt.u32.totalorder %s5351_s25, %s5988_s9  ;;  %p4475_p7 = scmp.lt.u32.totalorder %s4473_s19, %s4468_s23 }
 0x247   : > { %p4471_p2 = pnand %p4470_p3, %p4469_p6  ;;  %p4477_p11 = scmp.lt.u32.totalorder %s4468_s23, %s5351_s25 }
 0x248   : > { %p4476_p5 = por %p4475_p7, %p4474_p10 }
 0x249   : > { %p4472_p12 = pneg %p4471_p2 }
 0x24a   : > { %p4478_p13 = por %p4477_p11, %p4476_p5 }
 0x24c   : > { %p4479_p4 = pnand %p4478_p13, %p4472_p12 }
 0x24e   : > { %4482 = shalt.err (!%p4479_p4)
}
 0x24f   : > { %s4483_s15 = scalar_lea.vmem %s5359_s28, 512  ;;  %s4696_s14 = smov [#allocation19]  }
 0x250   : > { %p4484_p1 = scmp.ne.s32.totalorder %s5359_s28, %s4483_s15  ;;  %s4488_s4 = sshll.u32 %s4696_s14, 4  ;;  %s4489_s4 = int_to_ptr.vmem [resolvable:$false] %s4488_s4 }
 0x251   : > { %s4490_s8 = scalar_lea.vmem %s4489_s4, 1024  ;;  %p4491_p2 = scmp.lt.s32.totalorder %s5359_s28, %s4489_s4 }
 0x252   : > { %p4486_p9 = pnand %p4484_p1, %p4470_p3  ;;  %p4492_p10 = scmp.lt.s32.totalorder %s4490_s8, %s4483_s15 }
 0x254   : > { %p4487_p6 = pneg %p4486_p9  ;;  %p4493_p7 = por %p4492_p10, %p4491_p2 }
 0x256   : > { %p4494_p5 = pnand %p4493_p7, %p4487_p6 }
 0x258   : > { %4497 = shalt.err (!%p4494_p5)
}
 0x259   : > { %s5991_s20 = smov 8   ;;  %s5992_s23 = smov 128  }
 0x25a   : > { %3692 = dma.hbm_to_vmem [thread:$0]  (!%p5355_p0), %s5351_s25, 512, %s5359_s28, %s5161_s6, %s5992_s23, %s5992_s23, %s5991_s20  }
 0x25b   : > { %s5993_s7 = sld [smem:[#allocation52_spill]] }
 0x261   : > { %p5994_p3 = scmp.ne.s32.totalorder %s5993_s7, 0 }
 0x262   : > { %s761_s18 = sand.u32 (!%p5994_p3), 1, %s4862_s26   ;;  %s763_s19 = sand.u32 (!%p5994_p3), 1, %s4648_s1  }
 0x263   : > { %759 = sbr.rel (%p5994_p3) target bundleno = 4870 (0x1306), region = 96  ;;  %s5396_s17 = sshll.u32 (!%p5994_p3), %s763_s19, 4 }
 0x264   : > { %s762_s5 = scalar_lea.sflag (!%p5994_p3), [#allocation3], %s761_s18  ;;  %s765_s27 = scalar_lea.vmem (!%p5994_p3), [#allocation2], %s5396_s17 }
 0x265   : > { %p5995_p12 = scmp.ne.s32.totalorder (!%p5994_p3), %s5965_s10, 0 }
 0x26a   : > { %4571 = dma.done.wait (%p5995_p12), %s762_s5, 256  }
 0x26b   : > { %4573 = vsyncadd (%p5995_p12), %s762_s5, 4294967040  ;;  %p5996_p0 = scmp.eq.s32.totalorder %s4862_s26, 0 }
 0x26d   : > { %4575 = dma.done.wait (%p5996_p0), [#allocation6], 32   ;;  %p5997_p11 = pmov %p5996_p0 }
 0x26e   : > { %p5998_p13 = pmov %p5996_p0 }
 0x26f   : > { %4577 = vsyncadd (%p5997_p11), [#allocation6], 4294967264 }
 0x270   : > { %4579 = dma.done.wait (%p5998_p13), [#allocation9], 272   ;;  %p5999_p4 = pmov %p5996_p0 }
 0x271   : > { %p6000_p1 = pmov %p5996_p0 }
 0x272   : > { %4581 = vsyncadd (%p5999_p4), [#allocation9], 4294967024 }
 0x273   : > { %4583 = dma.done.wait (%p6000_p1), [#allocation12], 272   ;;  %p6001_p9 = pmov %p5996_p0 }
 0x274   : > { %p6002_p6 = pmov %p5996_p0 }
 0x275   : > { %4585 = vsyncadd (%p6001_p9), [#allocation12], 4294967024 }
 0x276   : > { %4587 = dma.done.wait (%p6002_p6), [#allocation15], 272   ;;  %p6003_p2 = pmov %p5996_p0 }
 0x277   : > { %p6004_p10 = pmov %p5996_p0 }
 0x278   : > { %4589 = vsyncadd (%p6003_p2), [#allocation15], 4294967024 }
 0x279   : > { %4591 = dma.done.wait (%p6004_p10), [#allocation18], 1024   ;;  %p6005_p7 = pmov %p5996_p0 }
 0x27a   : > { %s6006_s10 = sld [smem:[#allocation47_spill]] }
 0x27b   : > { %4593 = vsyncadd (%p6005_p7), [#allocation18], 4294966272 }
 0x280   : > { %s808_s6 = sand.u32 1, %s6006_s10  }
 0x281   : > { %s3209_s25 = sshll.u32 %s808_s6, 5 }
 0x282   : > { %s5424_s28 = scalar_lea.vmem [#allocation19], %s3209_s25 }
 0x283   : > { %4595 = dma.done.wait (%p5344_p8), %s762_s5, 512  }
 0x284   : > { %4597 = vsyncadd (%p5344_p8), %s762_s5, 4294966784  ;;  %p6007_p5 = pmov %p5996_p0 }
 0x285   : > { %p6008_p3 = pmov %p5996_p0 }
 0x286   : > { %4599 = dma.done.wait (%p6007_p5), [#allocation6], 256  }
 0x287   : > { %4601 = vsyncadd (%p6008_p3), [#allocation6], 4294967040  ;;  %p6009_p12 = pmov %p5996_p0 }
 0x289   : > { %4603 = dma.done.wait (%p6009_p12), [#allocation9], 16  }
 0x28a   : > { %4605 = vsyncadd (%p5996_p0), [#allocation9], 4294967280  ;;  %p6010_p11 = pmov %p5996_p0 }
 0x28b   : > { %p6011_p13 = pmov %p5996_p0 }
 0x28c   : > { %4607 = dma.done.wait (%p6010_p11), [#allocation12], 16  }
 0x28d   : > { %4609 = vsyncadd (%p6011_p13), [#allocation12], 4294967280  ;;  %p6012_p8 = pmov %p5996_p0 }
 0x28e   : > { %p6013_p4 = pmov %p5996_p0 }
 0x28f   : > { %4611 = dma.done.wait (%p6012_p8), [#allocation15], 16  }
 0x290   : > { %4613 = vsyncadd (%p6013_p4), [#allocation15], 4294967280  ;;  %p6014_p1 = pmov %p5996_p0 }
 0x291   : > { %p6015_p9 = pmov %p5996_p0 }
 0x292   : > { %4615 = dma.done.wait (%p6014_p1), [#allocation18], 256  }
 0x293   : > { %4617 = vsyncadd (%p6015_p9), [#allocation18], 4294967040  ;;  %p6016_p6 = pmov %p5996_p0 }
 0x294   : > { %p6017_p2 = pmov %p5996_p0 }
 0x295   : > { %4619 = dma.done.wait (%p6016_p6), [#allocation26], 1040  }
 0x296   : > { %4621 = vsyncadd (%p6017_p2), [#allocation26], 4294966256  ;;  %p6018_p10 = pmov %p5996_p0 }
 0x297   : > { %p6019_p7 = pmov %p5996_p0 }
 0x298   : > { %4623 = dma.done.wait (%p6018_p10), [#allocation29], 16  }
 0x299   : > { %4625 = vsyncadd (%p6019_p7), [#allocation29], 4294967280  ;;  %v3294_v0 = vld [vmem:[%s765_s27] sm:$0xff]   ;;  %vm914_vm0 = vcmask 261120   ;;  %v3301_v1 = vld [vmem:[%s765_s27 + $0x8] sm:$0xff]   ;;  %vm4698_vm1 = vmmov 0  }
 0x29a   : > { %v5462_v2 = vunpack.c.l.bf16 %v3294_v0  ;;  %v5464_v3 = vunpack.c.l.bf16 %v3301_v1  ;;  %v5466_v4 = vunpack.c.h.bf16 %v3294_v0  ;;  %v5468_v5 = vunpack.c.h.bf16 %v3301_v1  ;;  %v3850_v30 = vld [vmem:[#allocation8] sm:$0xff]   ;;  %v3851_v31 = vld [vmem:[#allocation8 + $0x8] sm:$0xff]   ;;  %v3852_v32 = vld [vmem:[#allocation11] sm:$0xff]   ;;  %s4699_s26 = smov 120   ;;  %s4700_s0 = smov 112  }
 0x29b   : > { %3372 = vmatprep.subr.bf16.mxu1 %v3850_v30  ;;  %v3219_v47 = vld [vmem:[#allocation5] ss:$0 sm:$0xff]  ;;  %v3220_v53 = vld [vmem:[#allocation7] ss:$0 sm:$0xff]  ;;  %vm1232_vm2 = vcmask 64512   ;;  %vm1331_vm3 = vcmask 130048  }
 0x29c   : > { %v915_v6 = vsel %vm914_vm0, %v5462_v2, 0.0  ;;  %v921_v7 = vsel %vm914_vm0, %v5464_v3, 0.0  ;;  %v918_v8 = vsel %vm914_vm0, %v5466_v4, 0.0  ;;  %v924_v9 = vsel %vm914_vm0, %v5468_v5, 0.0  ;;  %3373 = vmatpush3.bf16.msra.mxu1 %v3850_v30  ;;  %v3853_v1 = vld [vmem:[#allocation11 + $0x8] sm:$0xff]   ;;  %s4701_s15 = smov 104  }
 0x29d   : > { %916 = vadd.xlane.f32.xlu0 %v915_v6  ;;  %922 = vadd.xlane.f32.xlu1 %v921_v7  ;;  %v3854_v6 = vld [vmem:[#allocation14] sm:$0xff]   ;;  %v3855_v7 = vld [vmem:[#allocation14 + $0x8] sm:$0xff]   ;;  %vm1730_vm4 = vcmask 1043456   ;;  %s6020_s14 = sld [smem:[#allocation49_spill]]  ;;  %s6021_s4 = sld [smem:[#allocation50_spill]]  ;;  %vm2878_vm9 = vcmask 257024  }
 0x29e   : > { %3374 = vmatprep.subr.bf16.mxu1 %v3851_v31  ;;  %s901_s7 = scalar_lea.vmem [#allocation30], %s5396_s17  ;;  %s6022_s10 = sld [smem:[#allocation74_spill]] }
 0x29f   : > { %s2899_s18 = sshll.u32 %s901_s7, 4  ;;  %s5799_s25 = scalar_lea.sflag [#allocation4], %s763_s19  ;;  %s5789_s18 = int_to_ptr.vmem [resolvable:$true] %s2899_s18 }
 0x2a0   : > { %3375 = vmatpush3.bf16.msra.mxu1 %v3851_v31  ;;  %p6023_p3 = scmp.ne.s32.totalorder %s5966_s30, 0 }
 0x2a1   : > { %919 = vadd.xlane.f32.xlu0 %v918_v8  ;;  %925 = vadd.xlane.f32.xlu1 %v924_v9  ;;  %v4697_v8 = vmov 0.0  }
 0x2a2   : > { %3380 = vmatprep.subr.bf16.mxu1 %v3852_v32  ;;  %3402 = vmatprep.subr.bf16.mxu0 %v4697_v8 }
 0x2a3   : > { %3404 = vmatprep.mubr.msk.bf16.mxu0 %vm4698_vm1, %v4697_v8  ;;  %s3282_s8 = sshll.u32 %s6020_s14, 2  ;;  %s3283_s20 = sshll.u32 %s6021_s4, 3 }
 0x2a4   : > { %s2896_s23 = sadd.s32 %s3283_s20, %s3282_s8 }
 0x2a5   : > { %s3284_s5 = sshll.u32 %s2896_s23, 6 }
 0x2a6   : > { %s5795_s6 = scalar_lea.hbm %s6022_s10, %s3284_s5 }
 0x32a   : > { %v917_v10 = vpop.xlane.xlu0 %916  ;;  %v923_v11 = vpop.xlane.xlu1 %922 }
 0x32b   : > { %v928_v12 = vmul.f32 0.03125, %v917_v10  ;;  %v930_v13 = vmul.f32 0.03125, %v923_v11  ;;  %v3221_v10 = vld [vmem:[#allocation10] ss:$0 sm:$0xff] }
 0x32d   : > { %v932_v14 = vsub.f32 %v5462_v2, %v928_v12  ;;  %v934_v15 = vsub.f32 %v5464_v3, %v930_v13 }
 0x32e   : > { %v920_v16 = vpop.xlane.xlu0 %919  ;;  %v926_v17 = vpop.xlane.xlu1 %925 }
 0x32f   : > { %v929_v18 = vmul.f32 0.03125, %v920_v16  ;;  %v931_v19 = vmul.f32 0.03125, %v926_v17  ;;  %v936_v20 = vmul.f32 %v932_v14, %v932_v14  ;;  %v938_v21 = vmul.f32 %v934_v15, %v934_v15 }
 0x331   : > { %v933_v22 = vsub.f32 %v5466_v4, %v929_v18  ;;  %v935_v23 = vsub.f32 %v5468_v5, %v931_v19  ;;  %v940_v24 = vsel %vm914_vm0, %v936_v20, 0.0  ;;  %v946_v25 = vsel %vm914_vm0, %v938_v21, 0.0  ;;  %v3226_v21 = vld [vmem:[#allocation13] ss:$0 sm:$0xff] }
 0x332   : > { %941 = vadd.xlane.f32.xlu0 %v940_v24 }
 0x333   : > { %v937_v26 = vmul.f32 %v933_v22, %v933_v22  ;;  %v939_v27 = vmul.f32 %v935_v23, %v935_v23 }
 0x335   : > { %v943_v28 = vsel %vm914_vm0, %v937_v26, 0.0  ;;  %v949_v29 = vsel %vm914_vm0, %v939_v27, 0.0 }
 0x336   : > { %947 = vadd.xlane.f32.xlu0 %v946_v25  ;;  %944 = vadd.xlane.f32.xlu1 %v943_v28 }
 0x33a   : > { %950 = vadd.xlane.f32.xlu1 %v949_v29 }
 0x3bf   : > { %v942_v33 = vpop.xlane.xlu0 %941 }
 0x3c0   : > { %v952_v34 = vmul.f32 0.03125, %v942_v33  ;;  %v3231_v33 = vld [vmem:[#allocation16] ss:$0 sm:$0xff] }
 0x3c2   : > { %v956_v35 = vadd.f32 1e-05, %v952_v34 }
 0x3c3   : > { %v945_v36 = vpop.xlane.xlu1 %944  ;;  %v948_v37 = vpop.xlane.xlu0 %947 }
 0x3c4   : > { %3866 = vrsqrt.f32 %v956_v35  ;;  %v953_v38 = vmul.f32 0.03125, %v945_v36  ;;  %v954_v39 = vmul.f32 0.03125, %v948_v37 }
 0x3c6   : > { %v957_v40 = vadd.f32 1e-05, %v953_v38  ;;  %v958_v41 = vadd.f32 1e-05, %v954_v39 }
 0x3c7   : > { %v951_v42 = vpop.xlane.xlu1 %950 }
 0x3c8   : > { %3868 = vrsqrt.f32 %v957_v40  ;;  %v955_v43 = vmul.f32 0.03125, %v951_v42 }
 0x3c9   : > { %3870 = vrsqrt.f32 %v958_v41 }
 0x3ca   : > { %v959_v44 = vadd.f32 1e-05, %v955_v43 }
 0x3cc   : > { %3872 = vrsqrt.f32 %v959_v44  ;;  %v1220_v44 = vld [vmem:[#allocation17] sm:$0xff] }
 0x3ce   : > { %v3867_v45 = vpop.eup %3866 }
 0x3cf   : > { %v964_v46 = vmul.f32 %v3867_v45, %v932_v14 }
 0x3d1   : > { %v975_v51 = vmul.f32 %v3219_v47, %v964_v46  ;;  %v1221_v46 = vld [vmem:[#allocation17 + $0x8] sm:$0xff] }
 0x3d2   : > { %v3869_v48 = vpop.eup %3868 }
 0x3d3   : > { %v3871_v49 = vpop.eup %3870  ;;  %v965_v50 = vmul.f32 %v3869_v48, %v933_v22  ;;  %v986_v57 = vadd.f32 %v3220_v53, %v975_v51 }
 0x3d4   : > { %v966_v52 = vmul.f32 %v3871_v49, %v934_v15 }
 0x3d5   : > { %v976_v54 = vmul.f32 %v3219_v47, %v965_v50 }
 0x3d6   : > { %v3873_v55 = vpop.eup %3872  ;;  %v977_v59 = vmul.f32 %v3219_v47, %v966_v52 }
 0x3d7   : > { %v967_v56 = vmul.f32 %v3873_v55, %v935_v23  ;;  %v987_v58 = vadd.f32 %v3220_v53, %v976_v54  ;;  %v5532_v54 = vld [vmem:[%s5424_s28 + $0x18] sm:$0xff] }
 0x3d8   : > { %v988_v62 = vadd.f32 %v3220_v53, %v977_v59 }
 0x3d9   : > { %v990_v60 = vpack.c.bf16 %v987_v58, %v986_v57  ;;  %v978_v61 = vmul.f32 %v3219_v47, %v967_v56  ;;  %v5529_v47 = vld [vmem:[%s5424_s28 + $0x10] sm:$0xff] }
 0x3db   : > { %3376 = vmatprep.mubr.msk.bf16.mxu1 %vm914_vm0, %v990_v60  ;;  %v989_v63 = vadd.f32 %v3220_v53, %v978_v61 }
 0x3dd   : > { %v991_v0 = vpack.c.bf16 %v989_v63, %v988_v62 }
 0x3df   : > { %3377 = vmatmul.mubr.msk.bf16.vlgmr.msra.gmra.mrb[0].mxu1 %vm914_vm0, %v991_v0 }
 0x3e0   : > { %3381 = vmatpush3.bf16.msra.mxu1 %v3852_v32  ;;  %3384 = vmatprep.mubr.msk.bf16.mxu1 %vm914_vm0, %v990_v60 }
 0x3e1   : > { %3382 = vmatprep.subr.bf16.mxu1 %v3853_v1 }
 0x3e4   : > { %3383 = vmatpush3.bf16.msra.mxu1 %v3853_v1 }
 0x3e5   : > { %3388 = vmatprep.subr.bf16.mxu1 %v3854_v6 }
 0x3e7   : > { %3385 = vmatmul.mubr.msk.bf16.vlgmr.msra.gmra.mrb[4].mxu1 %vm914_vm0, %v991_v0 }
 0x3e8   : > { %3389 = vmatpush3.bf16.msra.mxu1 %v3854_v6  ;;  %3392 = vmatprep.mubr.msk.bf16.mxu1 %vm914_vm0, %v990_v60 }
 0x3e9   : > { %3390 = vmatprep.subr.bf16.mxu1 %v3855_v7 }
 0x3ec   : > { %3391 = vmatpush3.bf16.msra.mxu1 %v3855_v7 }
 0x3ed   : > { %3396 = vmatprep.subr.bf16.mxu1 %v4697_v8 }
 0x3ef   : > { %3393 = vmatmul.mubr.msk.bf16.vlgmr.msra.gmra.mrb[8].mxu1 %vm914_vm0, %v991_v0 }
 0x3f0   : > { %3398 = vmatprep.mubr.msk.bf16.mxu1 %vm4698_vm1, %v4697_v8 }
 0x4b2   : > { %v3378_v9 = vpop.f32.mrb[0].mxu1 }
 0x4b3   : > { %v1055_v11 = vpop.f32.mrb[1].mxu1  ;;  %v1064_v13 = vadd.f32 %v3378_v9, %v3221_v10 }
 0x4b4   : > { %v3379_v12 = vpop.f32.mrb[2].mxu1  ;;  %v1056_v16 = vadd.f32 %v3221_v10, %v1055_v11 }
 0x4b5   : > { %v1067_v14 = vadd.f32 %v3379_v12, %v3221_v10  ;;  %v1058_v15 = vpop.f32.mrb[3].mxu1 }
 0x4b6   : > { %v1059_v17 = vadd.f32 %v3221_v10, %v1058_v15  ;;  %v5545_v15 = vld [vmem:[%s5424_s28 + $0x8] sm:$0xff] }
 0x4b7   : > { %v5498_v18 = vpack.c.bf16 %v1067_v14, %v1064_v13 }
 0x4b8   : > { %v5500_v19 = vpack.c.bf16 %v1059_v17, %v1056_v16  ;;  %v5548_v16 = vld [vmem:[%s5424_s28] sm:$0xff]  ;;  %s4498_s28 = scalar_lea.vmem %s5789_s18, 256 }
 0x4b9   : > { %p4499_p5 = scmp.ne.s32.totalorder %s5789_s18, %s4498_s28 }
 0x4ba   : > { %v3386_v20 = vpop.f32.mrb[4].mxu1 }
 0x4bb   : > { %v1129_v22 = vpop.f32.mrb[5].mxu1  ;;  %v1138_v24 = vadd.f32 %v3386_v20, %v3226_v21  ;;  %p4500_p12 = pnand %p4499_p5, %p6023_p3 }
 0x4bc   : > { %v3387_v23 = vpop.f32.mrb[6].mxu1  ;;  %v1130_v27 = vadd.f32 %v3226_v21, %v1129_v22 }
 0x4bd   : > { %v1141_v25 = vadd.f32 %v3387_v23, %v3226_v21  ;;  %v1132_v26 = vpop.f32.mrb[7].mxu1  ;;  %p4501_p0 = pneg %p4500_p12 }
 0x4be   : > { %v1133_v28 = vadd.f32 %v3226_v21, %v1132_v26 }
 0x4bf   : > { %v5502_v29 = vpack.c.bf16 %v1141_v25, %v1138_v24 }
 0x4c0   : > { %v5504_v30 = vpack.c.bf16 %v1133_v28, %v1130_v27 }
 0x4c1   : > { %v1284_v31 = vsel %vm1232_vm2, %v5502_v29, 0 }
 0x4c2   : > { %v3394_v32 = vpop.f32.mrb[8].mxu1  ;;  %3403 = vmatpush3.bf16.xpose.msra.mxu0 %v1284_v31  ;;  %v1237_v34 = vsel %vm1232_vm2, %v5504_v30, 0 }
 0x4c3   : > { %v1203_v35 = vpop.f32.mrb[9].mxu1  ;;  %3397 = vmatpush3.bf16.xpose.msra.mxu1 %v1237_v34  ;;  %3414 = vmatprep.subr.bf16.mxu0 %v4697_v8  ;;  %v1212_v37 = vadd.f32 %v3394_v32, %v3231_v33 }
 0x4c4   : > { %v3395_v36 = vpop.f32.mrb[10].mxu1  ;;  %3408 = vmatprep.subr.bf16.mxu1 %v4697_v8  ;;  %v1204_v40 = vadd.f32 %v3231_v33, %v1203_v35 }
 0x4c5   : > { %v1215_v38 = vadd.f32 %v3395_v36, %v3231_v33  ;;  %v1206_v39 = vpop.f32.mrb[11].mxu1 }
 0x4c6   : > { %v1207_v41 = vadd.f32 %v3231_v33, %v1206_v39 }
 0x4c7   : > { %v5512_v42 = vpack.c.bf16 %v1215_v38, %v1212_v37 }
 0x4c8   : > { %v5514_v43 = vpack.c.bf16 %v1207_v41, %v1204_v40 }
 0x4c9   : > { %3405 = vmatmul.mubr.msk.bf16.vlgmr.msra.gmra.mrb[0].mxu0 %vm1232_vm2, %v5498_v18 }
 0x4ca   : > { %3399 = vmatmul.mubr.msk.bf16.vlgmr.msra.gmra.mrb[12].mxu1 %vm1232_vm2, %v5500_v19  ;;  %3415 = vmatpush3.bf16.msra.mxu0 %v5512_v42 }
 0x4cb   : > { %3409 = vmatpush3.bf16.msra.mxu1 %v5514_v43  ;;  %3416 = vmatprep.mubr.msk.bf16.mxu0 %vm4698_vm1, %v4697_v8 }
 0x4cc   : > { %3426 = vmatprep.subr.bf16.mxu0 %v4697_v8  ;;  %3410 = vmatprep.mubr.msk.bf16.mxu1 %vm4698_vm1, %v4697_v8 }
 0x4cd   : > { %3420 = vmatprep.subr.bf16.mxu1 %v4697_v8 }
 0x59c   : > { %v1320_v45 = vpop.f32.mrb[0].mxu0 }
 0x59d   : > { %v1321_v48 = vadd.f32 %v1320_v45, %v1220_v44  ;;  %v1273_v49 = vpop.f32.mrb[12].mxu1  ;;  %v3406_v50 = vpop.f32.mrb[1].mxu0 }
 0x59e   : > { %v1274_v51 = vadd.f32 %v1273_v49, %v1220_v44  ;;  %v3400_v52 = vpop.f32.mrb[13].mxu1  ;;  %v1323_v53 = vpop.f32.mrb[2].mxu0 }
 0x59f   : > { %v1324_v55 = vadd.f32 %v1323_v53, %v1221_v46  ;;  %v1276_v56 = vpop.f32.mrb[14].mxu1  ;;  %v3407_v57 = vpop.f32.mrb[3].mxu0  ;;  %v1329_v58 = vadd.f32 %v1321_v48, %v5529_v47 }
 0x5a0   : > { %v1277_v59 = vadd.f32 %v1276_v56, %v1221_v46  ;;  %v3401_v60 = vpop.f32.mrb[15].mxu1  ;;  %v1327_v20 = vadd.f32 %v1274_v51, %v5548_v16 }
 0x5a1   : > { %v1338_v61 = vsel %vm1331_vm3, %v1329_v58, -inf  ;;  %v1330_v62 = vadd.f32 %v1324_v55, %v5532_v54 }
 0x5a2   : > { %1339 = vmax.xlane.f32.xlu0 %v1338_v61  ;;  %v1328_v17 = vadd.f32 %v1277_v59, %v5545_v15  ;;  %v1332_v22 = vsel %vm1331_vm3, %v1327_v20, -inf }
 0x5a3   : > { %v1341_v63 = vsel %vm1331_vm3, %v1330_v62, -inf }
 0x5a4   : > { %1342 = vmax.xlane.f32.xlu1 %v1341_v63  ;;  %v1335_v21 = vsel %vm1331_vm3, %v1328_v17, -inf  ;;  %v1222_v63 = vld [vmem:[#allocation17 + $0x10] sm:$0xff] }
 0x62f   : > { %v1340_v0 = vpop.xlane.xlu0 %1339 }
 0x630   : > { %v1346_v1 = vsub.f32 %v1329_v58, %v1340_v0 }
 0x631   : > { %v1343_v6 = vpop.xlane.xlu1 %1342 }
 0x632   : > { %v1352_v7 = vmul.f32 1.442695, %v1346_v1  ;;  %v1347_v9 = vsub.f32 %v1330_v62, %v1343_v6  ;;  %v1223_v6 = vld [vmem:[#allocation17 + $0x18] sm:$0xff] }
 0x634   : > { %3874 = vpow2.f32 %v1352_v7  ;;  %v1354_v10 = vmul.f32 1.442695, %v1347_v9 }
 0x636   : > { %3876 = vpow2.f32 %v1354_v10 }
 0x63e   : > { %v3875_v11 = vpop.eup %3874 }
 0x63f   : > { %v1362_v12 = vsel %vm1331_vm3, %v3875_v11, 0.0 }
 0x640   : > { %v3877_v13 = vpop.eup %3876  ;;  %1363 = vadd.xlane.f32.xlu0 %v1362_v12 }
 0x641   : > { %v1365_v14 = vsel %vm1331_vm3, %v3877_v13, 0.0 }
 0x642   : > { %1366 = vadd.xlane.f32.xlu1 %v1365_v14 }
 0x653   : > { %1523 = vrot.lane.b32.xlu1 %v5498_v18, %s4699_s26 }
 0x656   : > { %1526 = vrot.lane.b32.xlu0 %v5502_v29, %s4699_s26 }
 0x675   : > { %1336 = vmax.xlane.f32.xlu0 %v1335_v21 }
 0x677   : > { %1333 = vmax.xlane.f32.xlu1 %v1332_v22 }
 0x6cd   : > { %v1364_v23 = vpop.xlane.xlu0 %1363 }
 0x6ce   : > { %3878 = vrcp.f32 %v1364_v23 }
 0x6cf   : > { %v1367_v24 = vpop.xlane.xlu1 %1366 }
 0x6d0   : > { %3880 = vrcp.f32 %v1367_v24 }
 0x6d1   : > { %v1527_v31 = vpop.permute.xlu0 %1526 }
 0x6d2   : > { %v1532_v33 = vsel %vm1232_vm2, %v1527_v31, 0 }
 0x6d3   : > { %v1524_v34 = vpop.permute.xlu1 %1523 }
 0x6d8   : > { %v3879_v25 = vpop.eup %3878 }
 0x6d9   : > { %v1374_v27 = vmul.f32 %v3879_v25, %v3875_v11 }
 0x6da   : > { %v3881_v26 = vpop.eup %3880 }
 0x6db   : > { %v1375_v28 = vmul.f32 %v3881_v26, %v3877_v13 }
 0x6dd   : > { %v1377_v32 = vpack.c.bf16 %v1375_v28, %v1374_v27 }
 0x6df   : > { %3417 = vmatmul.mubr.msk.bf16.vlgmr.msra.gmra.mrb[4].mxu0 %vm1331_vm3, %v1377_v32 }
 0x6e0   : > { %3427 = vmatpush3.bf16.xpose.msra.mxu0 %v1532_v33  ;;  %3428 = vmatprep.mubr.msk.bf16.mxu0 %vm4698_vm1, %v4697_v8 }
 0x6e1   : > { %3438 = vmatprep.subr.bf16.mxu0 %v4697_v8 }
 0x6e7   : > { %3429 = vmatmul.mubr.msk.bf16.vlgmr.msra.gmra.mrb[8].mxu0 %vm1232_vm2, %v1524_v34 }
 0x6e8   : > { %3440 = vmatprep.mubr.msk.bf16.mxu0 %vm4698_vm1, %v4697_v8 }
 0x702   : > { %v1337_v35 = vpop.xlane.xlu0 %1336 }
 0x703   : > { %v1345_v36 = vsub.f32 %v1328_v17, %v1337_v35 }
 0x704   : > { %v1334_v37 = vpop.xlane.xlu1 %1333 }
 0x705   : > { %v1350_v38 = vmul.f32 1.442695, %v1345_v36  ;;  %v1344_v39 = vsub.f32 %v1327_v20, %v1334_v37 }
 0x707   : > { %3882 = vpow2.f32 %v1350_v38  ;;  %v1348_v40 = vmul.f32 1.442695, %v1344_v39 }
 0x709   : > { %3884 = vpow2.f32 %v1348_v40 }
 0x711   : > { %v3883_v41 = vpop.eup %3882 }
 0x712   : > { %v1359_v44 = vsel %vm1331_vm3, %v3883_v41, 0.0 }
 0x713   : > { %v3885_v45 = vpop.eup %3884  ;;  %1360 = vadd.xlane.f32.xlu1 %v1359_v44 }
 0x714   : > { %v1356_v46 = vsel %vm1331_vm3, %v3885_v45, 0.0 }
 0x715   : > { %1357 = vadd.xlane.f32.xlu0 %v1356_v46 }
 0x724   : > { %1470 = vrot.lane.b32.xlu1 %v5500_v19, %s4699_s26 }
 0x72b   : > { %1473 = vrot.lane.b32.xlu0 %v5504_v30, %s4699_s26 }
 0x7a0   : > { %v1361_v48 = vpop.xlane.xlu1 %1360 }
 0x7a1   : > { %3886 = vrcp.f32 %v1361_v48 }
 0x7a2   : > { %v1358_v49 = vpop.xlane.xlu0 %1357 }
 0x7a3   : > { %3888 = vrcp.f32 %v1358_v49 }
 0x7a4   : > { %v1471_v0 = vpop.permute.xlu1 %1470 }
 0x7a6   : > { %v1474_v55 = vpop.permute.xlu0 %1473 }
 0x7a7   : > { %v1479_v57 = vsel %vm1232_vm2, %v1474_v55, 0 }
 0x7ab   : > { %v3887_v50 = vpop.eup %3886 }
 0x7ac   : > { %v1373_v52 = vmul.f32 %v3887_v50, %v3883_v41 }
 0x7ad   : > { %v3889_v51 = vpop.eup %3888 }
 0x7ae   : > { %v1372_v53 = vmul.f32 %v3889_v51, %v3885_v45 }
 0x7b0   : > { %v1376_v56 = vpack.c.bf16 %v1373_v52, %v1372_v53 }
 0x7b2   : > { %3411 = vmatmul.mubr.msk.bf16.vlgmr.msra.gmra.mrb[16].mxu1 %vm1331_vm3, %v1376_v56  ;;  %v5570_v58 = vpop.f32.mrb[4].mxu0 }
 0x7b3   : > { %3421 = vmatpush3.bf16.xpose.msra.mxu1 %v1479_v57  ;;  %v3418_v59 = vpop.f32.mrb[5].mxu0  ;;  %3422 = vmatprep.mubr.msk.bf16.mxu1 %vm4698_vm1, %v4697_v8 }
 0x7b4   : > { %v5574_v60 = vpop.f32.mrb[6].mxu0  ;;  %3432 = vmatprep.subr.bf16.mxu1 %v4697_v8 }
 0x7b5   : > { %v1467_v61 = vpack.c.bf16 %v5574_v60, %v5570_v58  ;;  %v3419_v62 = vpop.f32.mrb[7].mxu0 }
 0x7ba   : > { %3423 = vmatmul.mubr.msk.bf16.vlgmr.msra.gmra.mrb[20].mxu1 %vm1232_vm2, %v1471_v0  ;;  %v1568_v1 = vpop.f32.mrb[8].mxu0 }
 0x7bb   : > { %v1569_v7 = vadd.f32 %v1568_v1, %v1222_v63  ;;  %v3430_v9 = vpop.f32.mrb[9].mxu0  ;;  %3434 = vmatprep.mubr.msk.bf16.mxu1 %vm4698_vm1, %v4697_v8 }
 0x7bc   : > { %v1571_v10 = vpop.f32.mrb[10].mxu0 }
 0x7bd   : > { %v1572_v11 = vadd.f32 %v1571_v10, %v1223_v6  ;;  %v3431_v12 = vpop.f32.mrb[11].mxu0  ;;  %v1577_v13 = vadd.f32 %v1569_v7, %v5529_v47 }
 0x7bf   : > { %v1585_v14 = vsel %vm1331_vm3, %v1577_v13, -inf  ;;  %v1578_v17 = vadd.f32 %v1572_v11, %v5532_v54 }
 0x7c0   : > { %1586 = vmax.xlane.f32.xlu1 %v1585_v14 }
 0x7c1   : > { %v1588_v20 = vsel %vm1331_vm3, %v1578_v17, -inf }
 0x7c2   : > { %1589 = vmax.xlane.f32.xlu0 %v1588_v20 }
 0x7d1   : > { %1843 = vrot.lane.b32.xlu1 %v5504_v30, %s4700_s0 }
 0x84d   : > { %v1587_v21 = vpop.xlane.xlu1 %1586 }
 0x84e   : > { %v1593_v22 = vsub.f32 %v1577_v13, %v1587_v21 }
 0x84f   : > { %v1590_v23 = vpop.xlane.xlu0 %1589 }
 0x850   : > { %v1599_v24 = vmul.f32 1.442695, %v1593_v22  ;;  %v1594_v25 = vsub.f32 %v1578_v17, %v1590_v23 }
 0x851   : > { %v1844_v51 = vpop.permute.xlu1 %1843 }
 0x852   : > { %3890 = vpow2.f32 %v1599_v24  ;;  %v1601_v26 = vmul.f32 1.442695, %v1594_v25  ;;  %v1849_v1 = vsel %vm1232_vm2, %v1844_v51, 0 }
 0x854   : > { %3892 = vpow2.f32 %v1601_v26 }
 0x85c   : > { %v3891_v27 = vpop.eup %3890 }
 0x85d   : > { %v1609_v28 = vsel %vm1331_vm3, %v3891_v27, 0.0 }
 0x85e   : > { %v3893_v31 = vpop.eup %3892  ;;  %1610 = vadd.xlane.f32.xlu0 %v1609_v28 }
 0x85f   : > { %v1612_v32 = vsel %vm1331_vm3, %v3893_v31, 0.0 }
 0x860   : > { %1613 = vadd.xlane.f32.xlu1 %v1612_v32 }
 0x871   : > { %1841 = vrot.lane.b32.xlu1 %v5500_v19, %s4700_s0 }
 0x874   : > { %1674 = vrot.lane.b32.xlu0 %v5512_v42, %s4699_s26 }
 0x875   : > { %1894 = vrot.lane.b32.xlu1 %v5502_v29, %s4700_s0 }
 0x878   : > { %1892 = vrot.lane.b32.xlu0 %v5498_v18, %s4700_s0 }
 0x885   : > { %v5598_v33 = vpop.f32.mrb[16].mxu1 }
 0x886   : > { %v3412_v34 = vpop.f32.mrb[17].mxu1 }
 0x887   : > { %v5600_v35 = vpop.f32.mrb[18].mxu1 }
 0x888   : > { %v1466_v36 = vpack.c.bf16 %v5600_v35, %v5598_v33  ;;  %v3413_v37 = vpop.f32.mrb[19].mxu1 }
 0x88d   : > { %v1515_v38 = vpop.f32.mrb[20].mxu1 }
 0x88e   : > { %v3424_v39 = vpop.f32.mrb[21].mxu1  ;;  %v1516_v41 = vadd.f32 %v1515_v38, %v1222_v63 }
 0x88f   : > { %v1518_v40 = vpop.f32.mrb[22].mxu1 }
 0x890   : > { %v1519_v44 = vadd.f32 %v1518_v40, %v1223_v6  ;;  %v3425_v45 = vpop.f32.mrb[23].mxu1  ;;  %v1575_v48 = vadd.f32 %v1516_v41, %v5548_v16 }
 0x892   : > { %v1576_v46 = vadd.f32 %v1519_v44, %v5545_v15  ;;  %v1579_v50 = vsel %vm1331_vm3, %v1575_v48, -inf  ;;  %v1224_v44 = vld [vmem:[#allocation17 + $0x20] sm:$0xff] }
 0x894   : > { %v1582_v49 = vsel %vm1331_vm3, %v1576_v46, -inf }
 0x897   : > { %1583 = vmax.xlane.f32.xlu0 %v1582_v49 }
 0x899   : > { %1580 = vmax.xlane.f32.xlu1 %v1579_v50 }
 0x8aa   : > { %1626 = vrot.lane.b32.xlu1 %v5514_v43, %s4699_s26  ;;  %s4703_s26 = smov [#allocation30]  }
 0x8eb   : > { %v1611_v52 = vpop.xlane.xlu0 %1610 }
 0x8ec   : > { %3894 = vrcp.f32 %v1611_v52 }
 0x8ed   : > { %v1614_v53 = vpop.xlane.xlu1 %1613 }
 0x8ee   : > { %3896 = vrcp.f32 %v1614_v53 }
 0x8ef   : > { %v1675_v55 = vpop.permute.xlu0 %1674 }
 0x8f0   : > { %3439 = vmatpush3.bf16.msra.mxu0 %v1675_v55 }
 0x8f1   : > { %3456 = vmatprep.subr.bf16.mxu0 %v4697_v8  ;;  %v1842_v0 = vpop.permute.xlu1 %1841 }
 0x8f3   : > { %v1893_v9 = vpop.permute.xlu0 %1892 }
 0x8f5   : > { %v1895_v6 = vpop.permute.xlu1 %1894 }
 0x8f6   : > { %v3895_v56 = vpop.eup %3894  ;;  %v1900_v7 = vsel %vm1232_vm2, %v1895_v6, 0 }
 0x8f7   : > { %v1621_v59 = vmul.f32 %v3895_v56, %v3891_v27 }
 0x8f8   : > { %v3897_v57 = vpop.eup %3896 }
 0x8f9   : > { %v1622_v62 = vmul.f32 %v3897_v57, %v3893_v31 }
 0x8fb   : > { %v1624_v63 = vpack.c.bf16 %v1622_v62, %v1621_v59 }
 0x8fd   : > { %3441 = vmatmul.mubr.msk.bf16.vlgmr.msra.gmra.mrb[12].mxu0 %vm1331_vm3, %v1624_v63 }
 0x8fe   : > { %3457 = vmatpush3.bf16.xpose.msra.mxu0 %v1849_v1  ;;  %3458 = vmatprep.mubr.msk.bf16.mxu0 %vm4698_vm1, %v4697_v8 }
 0x8ff   : > { %3462 = vmatprep.subr.bf16.mxu0 %v4697_v8 }
 0x905   : > { %3459 = vmatmul.mubr.msk.bf16.vlgmr.msra.gmra.mrb[16].mxu0 %vm1232_vm2, %v1842_v0 }
 0x906   : > { %3463 = vmatpush3.bf16.xpose.msra.mxu0 %v1900_v7  ;;  %3464 = vmatprep.mubr.msk.bf16.mxu0 %vm4698_vm1, %v4697_v8 }
 0x907   : > { %3474 = vmatprep.subr.bf16.mxu0 %v4697_v8 }
 0x90d   : > { %3465 = vmatmul.mubr.msk.bf16.vlgmr.msra.gmra.mrb[20].mxu0 %vm1232_vm2, %v1893_v9 }
 0x90e   : > { %3476 = vmatprep.mubr.msk.bf16.mxu0 %vm4698_vm1, %v4697_v8 }
 0x924   : > { %v1584_v10 = vpop.xlane.xlu0 %1583 }
 0x925   : > { %v1592_v11 = vsub.f32 %v1576_v46, %v1584_v10  ;;  %v1225_v46 = vld [vmem:[#allocation17 + $0x28] sm:$0xff] }
 0x926   : > { %v1581_v12 = vpop.xlane.xlu1 %1580 }
 0x927   : > { %v1591_v13 = vsub.f32 %v1575_v48, %v1581_v12  ;;  %v1597_v14 = vmul.f32 1.442695, %v1592_v11  ;;  %v1723_v12 = vld [vmem:[#allocation20 + $0x4] sm:$0xf] }
 0x929   : > { %v1595_v17 = vmul.f32 1.442695, %v1591_v13  ;;  %v1732_v13 = vsel %vm1730_vm4, %v1723_v12, 0 }
 0x92a   : > { %v1627_v20 = vpop.permute.xlu1 %1626 }
 0x92b   : > { %3898 = vpow2.f32 %v1595_v17  ;;  %3433 = vmatpush3.bf16.msra.mxu1 %v1627_v20 }
 0x92c   : > { %3900 = vpow2.f32 %v1597_v14  ;;  %3556 = vmatprep.subr.msk.bf16.mxu1 %vm1730_vm4, %v1723_v12  ;;  %v1468_v14 = vld [vmem:[#allocation20] sm:$0xf] }
 0x935   : > { %v3899_v21 = vpop.eup %3898 }
 0x936   : > { %v1603_v22 = vsel %vm1331_vm3, %v3899_v21, 0.0  ;;  %v3901_v23 = vpop.eup %3900 }
 0x937   : > { %1604 = vadd.xlane.f32.xlu0 %v1603_v22  ;;  %v1606_v24 = vsel %vm1331_vm3, %v3901_v23, 0.0 }
 0x93b   : > { %1607 = vadd.xlane.f32.xlu0 %v1606_v24 }
 0x9c4   : > { %v1605_v25 = vpop.xlane.xlu0 %1604 }
 0x9c5   : > { %3902 = vrcp.f32 %v1605_v25 }
 0x9c8   : > { %v1608_v26 = vpop.xlane.xlu0 %1607 }
 0x9c9   : > { %3904 = vrcp.f32 %v1608_v26 }
 0x9cf   : > { %v3903_v28 = vpop.eup %3902 }
 0x9d0   : > { %v5626_v27 = vpop.f32.mrb[12].mxu0  ;;  %v1619_v39 = vmul.f32 %v3903_v28, %v3899_v21 }
 0x9d1   : > { %v3442_v31 = vpop.f32.mrb[13].mxu0 }
 0x9d2   : > { %v5628_v32 = vpop.f32.mrb[14].mxu0 }
 0x9d3   : > { %v3905_v34 = vpop.eup %3904  ;;  %v1722_v37 = vpack.c.bf16 %v5628_v32, %v5626_v27  ;;  %v3443_v38 = vpop.f32.mrb[15].mxu0 }
 0x9d4   : > { %v1620_v40 = vmul.f32 %v3905_v34, %v3901_v23 }
 0x9d6   : > { %v1623_v41 = vpack.c.bf16 %v1620_v40, %v1619_v39 }
 0x9d8   : > { %3435 = vmatmul.mubr.msk.bf16.vlgmr.msra.gmra.mrb[24].mxu1 %vm1331_vm3, %v1623_v41  ;;  %v1885_v45 = vpop.f32.mrb[16].mxu0 }
 0x9d9   : > { %v1886_v48 = vadd.f32 %v1885_v45, %v1224_v44  ;;  %v3460_v49 = vpop.f32.mrb[17].mxu0  ;;  %3445 = vmatpush3.bf16.msra.mxu1 %v1732_v13 }
 0x9da   : > { %v1888_v50 = vpop.f32.mrb[18].mxu0  ;;  %3557 = vmatprep.subr.msk.bf16.mxu1 %vm1730_vm4, %v1468_v14 }
 0x9db   : > { %v1889_v51 = vadd.f32 %v1888_v50, %v1225_v46  ;;  %v3461_v52 = vpop.f32.mrb[19].mxu0  ;;  %v1943_v53 = vadd.f32 %v1886_v48, %v5548_v16 }
 0x9dd   : > { %v1947_v55 = vsel %vm1331_vm3, %v1943_v53, -inf  ;;  %v1944_v56 = vadd.f32 %v1889_v51, %v5545_v15 }
 0x9de   : > { %1948 = vmax.xlane.f32.xlu0 %v1947_v55 }
 0x9df   : > { %v1950_v63 = vsel %vm1331_vm3, %v1944_v56, -inf }
 0x9e0   : > { %v1936_v57 = vpop.f32.mrb[20].mxu0 }
 0x9e1   : > { %v1937_v59 = vadd.f32 %v1936_v57, %v1224_v44  ;;  %v3466_v62 = vpop.f32.mrb[21].mxu0 }
 0x9e2   : > { %v1939_v0 = vpop.f32.mrb[22].mxu0  ;;  %1951 = vmax.xlane.f32.xlu0 %v1950_v63 }
 0x9e3   : > { %v1940_v1 = vadd.f32 %v1939_v0, %v1225_v46  ;;  %v3467_v6 = vpop.f32.mrb[23].mxu0  ;;  %v1945_v7 = vadd.f32 %v1937_v59, %v5529_v47 }
 0x9e5   : > { %v1953_v9 = vsel %vm1331_vm3, %v1945_v7, -inf  ;;  %v1946_v10 = vadd.f32 %v1940_v1, %v5532_v54 }
 0x9e6   : > { %1954 = vmax.xlane.f32.xlu0 %v1953_v9 }
 0x9e7   : > { %v1956_v11 = vsel %vm1331_vm3, %v1946_v10, -inf }
 0x9ea   : > { %1957 = vmax.xlane.f32.xlu0 %v1956_v11 }
 0xa6b   : > { %v1949_v17 = vpop.xlane.xlu0 %1948 }
 0xa6c   : > { %v1959_v20 = vsub.f32 %v1943_v53, %v1949_v17 }
 0xa6e   : > { %v1963_v21 = vmul.f32 1.442695, %v1959_v20 }
 0xa6f   : > { %v1952_v22 = vpop.xlane.xlu0 %1951 }
 0xa70   : > { %3906 = vpow2.f32 %v1963_v21  ;;  %v1960_v23 = vsub.f32 %v1944_v56, %v1952_v22  ;;  %v1790_v56 = vsel %vm1730_vm4, %v1468_v14, 0 }
 0xa72   : > { %v1965_v24 = vmul.f32 1.442695, %v1960_v23 }
 0xa73   : > { %v1955_v25 = vpop.xlane.xlu0 %1954 }
 0xa74   : > { %3908 = vpow2.f32 %v1965_v24  ;;  %v1961_v26 = vsub.f32 %v1945_v7, %v1955_v25  ;;  %v2089_v7 = vld [vmem:[#allocation20 + $0x8] sm:$0xf]  ;;  %v1226_v25 = vld [vmem:[#allocation17 + $0x30] sm:$0xff] }
 0xa75   : > { %v2097_v9 = vsel %vm1730_vm4, %v2089_v7, 0 }
 0xa76   : > { %v1967_v28 = vmul.f32 1.442695, %v1961_v26 }
 0xa77   : > { %v1958_v31 = vpop.xlane.xlu0 %1957 }
 0xa78   : > { %3910 = vpow2.f32 %v1967_v28  ;;  %v1962_v34 = vsub.f32 %v1946_v10, %v1958_v31  ;;  %v1227_v28 = vld [vmem:[#allocation17 + $0x38] sm:$0xff] }
 0xa7a   : > { %v3907_v38 = vpop.eup %3906  ;;  %v1969_v39 = vmul.f32 1.442695, %v1962_v34 }
 0xa7b   : > { %v1971_v40 = vsel %vm1331_vm3, %v3907_v38, 0.0 }
 0xa7c   : > { %3912 = vpow2.f32 %v1969_v39  ;;  %1972 = vadd.xlane.f32.xlu1 %v1971_v40 }
 0xa7e   : > { %v3909_v41 = vpop.eup %3908 }
 0xa7f   : > { %v1974_v44 = vsel %vm1331_vm3, %v3909_v41, 0.0 }
 0xa80   : > { %1975 = vadd.xlane.f32.xlu0 %v1974_v44 }
 0xa82   : > { %v3911_v45 = vpop.eup %3910 }
 0xa83   : > { %v1977_v46 = vsel %vm1331_vm3, %v3911_v45, 0.0 }
 0xa84   : > { %1978 = vadd.xlane.f32.xlu0 %v1977_v46 }
 0xa86   : > { %v3913_v48 = vpop.eup %3912 }
 0xa87   : > { %v1980_v49 = vsel %vm1331_vm3, %v3913_v48, 0.0 }
 0xa88   : > { %1981 = vadd.xlane.f32.xlu0 %v1980_v49 }
 0xa8d   : > { %2040 = vrot.lane.b32.xlu1 %v5512_v42, %s4700_s0 }
 0xa9e   : > { %1993 = vrot.lane.b32.xlu0 %v5514_v43, %s4700_s0  ;;  %s4502_s0 = sshll.u32 %s4703_s26, 4  ;;  %s4503_s0 = int_to_ptr.vmem [resolvable:$false] %s4502_s0 }
 0xa9f   : > { %p4505_p11 = scmp.lt.s32.totalorder %s5789_s18, %s4503_s0 }
 0xaa2   : > { %2154 = vrot.lane.b32.xlu0 %v5504_v30, %s4701_s15 }
 0xaa6   : > { %2205 = vrot.lane.b32.xlu0 %v5502_v29, %s4701_s15 }
 0xaaa   : > { %2152 = vrot.lane.b32.xlu0 %v5500_v19, %s4701_s15 }
 0xaab   : > { %v1666_v50 = vpop.f32.mrb[24].mxu1 }
 0xaac   : > { %v3436_v51 = vpop.f32.mrb[25].mxu1 }
 0xaad   : > { %v1669_v52 = vpop.f32.mrb[26].mxu1 }
 0xaae   : > { %v1721_v53 = vpack.c.bf16 %v1669_v52, %v1666_v50  ;;  %2203 = vrot.lane.b32.xlu0 %v5498_v18, %s4701_s15  ;;  %v3437_v55 = vpop.f32.mrb[27].mxu1 }
 0xab0   : > { %3446 = vmatprep.mubr.msk.bf16.mxu1 %vm1232_vm2, %v1721_v53 }
 0xab1   : > { %3447 = vmatmul.mubr.msk.bf16.vlgmr.msra.gmra.mrb[28].mxu1 %vm1232_vm2, %v1722_v37 }
 0xab2   : > { %3452 = vmatprep.mubr.msk.bf16.mxu1 %vm1232_vm2, %v1466_v36  ;;  %3451 = vmatpush3.bf16.msra.mxu1 %v1790_v56 }
 0xab3   : > { %3468 = vmatprep.subr.bf16.mxu1 %v4697_v8 }
 0xabd   : > { %3453 = vmatmul.mubr.msk.bf16.vlgmr.msra.gmra.mrb[28].mxu1 %vm1232_vm2, %v1467_v61 }
 0xabe   : > { %3470 = vmatprep.mubr.msk.bf16.mxu1 %vm4698_vm1, %v4697_v8 }
 0xb09   : > { %v1973_v18 = vpop.xlane.xlu1 %1972 }
 0xb0a   : > { %3914 = vrcp.f32 %v1973_v18 }
 0xb0d   : > { %v2041_v19 = vpop.permute.xlu1 %2040  ;;  %v1976_v29 = vpop.xlane.xlu0 %1975 }
 0xb0e   : > { %3916 = vrcp.f32 %v1976_v29  ;;  %3475 = vmatpush3.bf16.msra.mxu0 %v2041_v19 }
 0xb0f   : > { %3486 = vmatprep.subr.bf16.mxu0 %v4697_v8 }
 0xb11   : > { %v1979_v30 = vpop.xlane.xlu0 %1978 }
 0xb12   : > { %3918 = vrcp.f32 %v1979_v30 }
 0xb14   : > { %v3915_v35 = vpop.eup %3914 }
 0xb15   : > { %v1982_v33 = vpop.xlane.xlu0 %1981  ;;  %v1987_v58 = vmul.f32 %v3915_v35, %v3907_v38 }
 0xb16   : > { %3920 = vrcp.f32 %v1982_v33 }
 0xb18   : > { %v3917_v36 = vpop.eup %3916 }
 0xb19   : > { %v1988_v60 = vmul.f32 %v3917_v36, %v3909_v41  ;;  %v1994_v61 = vpop.permute.xlu0 %1993 }
 0xb1a   : > { %3469 = vmatpush3.bf16.msra.mxu1 %v1994_v61 }
 0xb1b   : > { %v1991_v27 = vpack.c.bf16 %v1988_v60, %v1987_v58  ;;  %3558 = vmatprep.subr.msk.bf16.mxu1 %vm1730_vm4, %v2089_v7 }
 0xb1c   : > { %v3919_v32 = vpop.eup %3918 }
 0xb1d   : > { %3471 = vmatmul.mubr.msk.bf16.vlgmr.msra.gmra.mrb[32].mxu1 %vm1331_vm3, %v1991_v27  ;;  %v2155_v57 = vpop.permute.xlu0 %2154  ;;  %v1989_v59 = vmul.f32 %v3919_v32, %v3911_v45 }
 0xb1e   : > { %v2160_v0 = vsel %vm1232_vm2, %v2155_v57, 0  ;;  %3481 = vmatpush3.bf16.msra.mxu1 %v2097_v9 }
 0xb1f   : > { %3492 = vmatprep.subr.bf16.mxu1 %v4697_v8 }
 0xb20   : > { %v3921_v37 = vpop.eup %3920 }
 0xb21   : > { %v1990_v62 = vmul.f32 %v3921_v37, %v3913_v48  ;;  %v2206_v1 = vpop.permute.xlu0 %2205 }
 0xb22   : > { %v2211_v24 = vsel %vm1232_vm2, %v2206_v1, 0 }
 0xb23   : > { %v1992_v63 = vpack.c.bf16 %v1990_v62, %v1989_v59 }
 0xb25   : > { %3477 = vmatmul.mubr.msk.bf16.vlgmr.msra.gmra.mrb[24].mxu0 %vm1331_vm3, %v1992_v63  ;;  %v2153_v6 = vpop.permute.xlu0 %2152 }
 0xb26   : > { %3487 = vmatpush3.bf16.xpose.msra.mxu0 %v2160_v0  ;;  %3488 = vmatprep.mubr.msk.bf16.mxu0 %vm4698_vm1, %v4697_v8 }
 0xb27   : > { %3498 = vmatprep.subr.bf16.mxu0 %v4697_v8 }
 0xb29   : > { %v2204_v44 = vpop.permute.xlu0 %2203 }
 0xb2d   : > { %3489 = vmatmul.mubr.msk.bf16.vlgmr.msra.gmra.mrb[28].mxu0 %vm1232_vm2, %v2153_v6 }
 0xb2e   : > { %3500 = vmatprep.mubr.msk.bf16.mxu0 %vm4698_vm1, %v4697_v8 }
 0xbf0   : > { %v2033_v10 = vpop.f32.mrb[32].mxu1 }
 0xbf1   : > { %v3472_v11 = vpop.f32.mrb[33].mxu1 }
 0xbf2   : > { %v2036_v12 = vpop.f32.mrb[34].mxu1 }
 0xbf3   : > { %v2087_v13 = vpack.c.bf16 %v2036_v12, %v2033_v10  ;;  %v3473_v14 = vpop.f32.mrb[35].mxu1 }
 0xbf5   : > { %3482 = vmatprep.mubr.msk.bf16.mxu1 %vm1232_vm2, %v2087_v13 }
 0xbf8   : > { %v2080_v17 = vpop.f32.mrb[24].mxu0 }
 0xbf9   : > { %v3478_v20 = vpop.f32.mrb[25].mxu0 }
 0xbfa   : > { %v2083_v21 = vpop.f32.mrb[26].mxu0 }
 0xbfb   : > { %v2088_v22 = vpack.c.bf16 %v2083_v21, %v2080_v17  ;;  %v3479_v23 = vpop.f32.mrb[27].mxu0 }
 0xbfd   : > { %3483 = vmatmul.mubr.msk.bf16.vlgmr.msra.gmra.mrb[28].mxu1 %vm1232_vm2, %v2088_v22 }
 0xbfe   : > { %3493 = vmatpush3.bf16.xpose.msra.mxu1 %v2211_v24  ;;  %3494 = vmatprep.mubr.msk.bf16.mxu1 %vm4698_vm1, %v4697_v8  ;;  %v2400_v24 = vld [vmem:[#allocation20 + $0xc] sm:$0xf] }
 0xbff   : > { %3504 = vmatprep.subr.bf16.mxu1 %v4697_v8 }
 0xc00   : > { %v2196_v26 = vpop.f32.mrb[28].mxu0 }
 0xc01   : > { %v2197_v31 = vadd.f32 %v2196_v26, %v1226_v25  ;;  %v3490_v34 = vpop.f32.mrb[29].mxu0 }
 0xc02   : > { %v2199_v38 = vpop.f32.mrb[30].mxu0 }
 0xc03   : > { %v2200_v39 = vadd.f32 %v2199_v38, %v1227_v28  ;;  %v3491_v40 = vpop.f32.mrb[31].mxu0  ;;  %v2254_v41 = vadd.f32 %v2197_v31, %v5548_v16 }
 0xc05   : > { %3495 = vmatmul.mubr.msk.bf16.vlgmr.msra.gmra.mrb[36].mxu1 %vm1232_vm2, %v2204_v44  ;;  %v2258_v45 = vsel %vm1331_vm3, %v2254_v41, -inf  ;;  %v2255_v46 = vadd.f32 %v2200_v39, %v5545_v15 }
 0xc06   : > { %2259 = vmax.xlane.f32.xlu0 %v2258_v45  ;;  %3506 = vmatprep.mubr.msk.bf16.mxu1 %vm4698_vm1, %v4697_v8 }
 0xc07   : > { %v2261_v48 = vsel %vm1331_vm3, %v2255_v46, -inf }
 0xc08   : > { %2262 = vmax.xlane.f32.xlu1 %v2261_v48  ;;  %v3260_v48 = vld [vmem:[#allocation21] ss:$0 sm:$0xff] }
 0xc93   : > { %v2260_v49 = vpop.xlane.xlu0 %2259 }
 0xc94   : > { %v2270_v50 = vsub.f32 %v2254_v41, %v2260_v49 }
 0xc95   : > { %v2263_v53 = vpop.xlane.xlu1 %2262 }
 0xc96   : > { %v2274_v51 = vmul.f32 1.442695, %v2270_v50  ;;  %v2271_v55 = vsub.f32 %v2255_v46, %v2263_v53 }
 0xc98   : > { %3922 = vpow2.f32 %v2274_v51  ;;  %v2276_v56 = vmul.f32 1.442695, %v2271_v55 }
 0xc9a   : > { %3924 = vpow2.f32 %v2276_v56 }
 0xca2   : > { %v3923_v52 = vpop.eup %3922 }
 0xca3   : > { %v2282_v16 = vsel %vm1331_vm3, %v3923_v52, 0.0 }
 0xca4   : > { %2283 = vadd.xlane.f32.xlu1 %v2282_v16  ;;  %v3925_v60 = vpop.eup %3924 }
 0xca5   : > { %v2285_v61 = vsel %vm1331_vm3, %v3925_v60, 0.0 }
 0xcd8   : > { %v2247_v15 = vpop.f32.mrb[36].mxu1 }
 0xcd9   : > { %v2248_v18 = vadd.f32 %v2247_v15, %v1226_v25  ;;  %v3496_v19 = vpop.f32.mrb[37].mxu1  ;;  %v2408_v25 = vsel %vm1730_vm4, %v2400_v24, 0 }
 0xcda   : > { %v2250_v29 = vpop.f32.mrb[38].mxu1 }
 0xcdb   : > { %v2251_v8 = vadd.f32 %v2250_v29, %v1227_v28  ;;  %v3497_v30 = vpop.f32.mrb[39].mxu1  ;;  %v2256_v33 = vadd.f32 %v2248_v18, %v5529_v47 }
 0xcdd   : > { %v2264_v35 = vsel %vm1331_vm3, %v2256_v33, -inf  ;;  %v2257_v36 = vadd.f32 %v2251_v8, %v5532_v54 }
 0xcde   : > { %2265 = vmax.xlane.f32.xlu0 %v2264_v35 }
 0xcdf   : > { %v2267_v58 = vsel %vm1331_vm3, %v2257_v36, -inf }
 0xce2   : > { %2268 = vmax.xlane.f32.xlu0 %v2267_v58 }
 0xce6   : > { %2286 = vadd.xlane.f32.xlu0 %v2285_v61 }
 0xd31   : > { %v2284_v6 = vpop.xlane.xlu1 %2283 }
 0xd6b   : > { %v2266_v27 = vpop.xlane.xlu0 %2265 }
 0xd6c   : > { %v2272_v32 = vsub.f32 %v2256_v33, %v2266_v27 }
 0xd6e   : > { %v2278_v37 = vmul.f32 1.442695, %v2272_v32 }
 0xd6f   : > { %v2269_v57 = vpop.xlane.xlu0 %2268 }
 0xd70   : > { %3926 = vpow2.f32 %v2278_v37  ;;  %v2273_v59 = vsub.f32 %v2257_v36, %v2269_v57 }
 0xd72   : > { %v2280_v62 = vmul.f32 1.442695, %v2273_v59 }
 0xd73   : > { %v2287_v1 = vpop.xlane.xlu0 %2286 }
 0xd74   : > { %3928 = vpow2.f32 %v2280_v62 }
 0xd75   : > { %3930 = vrcp.f32 %v2287_v1 }
 0xd76   : > { %3932 = vrcp.f32 %v2284_v6  ;;  %v3856_v6 = vld [vmem:[#allocation24] sm:$0xff]  }
 0xd7a   : > { %v3927_v47 = vpop.eup %3926 }
 0xd7b   : > { %v2288_v63 = vsel %vm1331_vm3, %v3927_v47, 0.0 }
 0xd7c   : > { %2289 = vadd.xlane.f32.xlu1 %v2288_v63 }
 0xd7e   : > { %v3929_v54 = vpop.eup %3928 }
 0xd7f   : > { %v2291_v0 = vsel %vm1331_vm3, %v3929_v54, 0.0  ;;  %v3931_v7 = vpop.eup %3930 }
 0xd80   : > { %2292 = vadd.xlane.f32.xlu0 %v2291_v0  ;;  %v3933_v10 = vpop.eup %3932  ;;  %v2299_v11 = vmul.f32 %v3931_v7, %v3925_v60  ;;  %v3857_v7 = vld [vmem:[#allocation24 + $0x8] sm:$0xff]  }
 0xd81   : > { %v2298_v12 = vmul.f32 %v3933_v10, %v3923_v52 }
 0xd83   : > { %v2302_v17 = vpack.c.bf16 %v2299_v11, %v2298_v12 }
 0xd8d   : > { %2304 = vrot.lane.b32.xlu1 %v5514_v43, %s4701_s15 }
 0xd96   : > { %2351 = vrot.lane.b32.xlu0 %v5512_v42, %s4701_s15  ;;  %s4504_s15 = scalar_lea.vmem %s4503_s0, 512 }
 0xd97   : > { %p4506_p13 = scmp.lt.s32.totalorder %s4504_s15, %s4498_s28 }
 0xd99   : > { %p4507_p8 = por %p4506_p13, %p4505_p11 }
 0xd9b   : > { %p4508_p4 = pnand %p4507_p8, %p4501_p0 }
 0xe09   : > { %v2290_v9 = vpop.xlane.xlu1 %2289 }
 0xe0a   : > { %3934 = vrcp.f32 %v2290_v9 }
 0xe0d   : > { %v2305_v13 = vpop.permute.xlu1 %2304  ;;  %v2293_v14 = vpop.xlane.xlu0 %2292 }
 0xe0e   : > { %3936 = vrcp.f32 %v2293_v14  ;;  %3499 = vmatpush3.bf16.msra.mxu0 %v2305_v13 }
 0xe0f   : > { %3516 = vmatprep.subr.bf16.mxu0 %v3856_v6 }
 0xe11   : > { %3501 = vmatmul.mubr.msk.bf16.vlgmr.msra.gmra.mrb[32].mxu0 %vm1331_vm3, %v2302_v17  ;;  %v2352_v43 = vpop.permute.xlu0 %2351 }
 0xe12   : > { %3505 = vmatpush3.bf16.msra.mxu1 %v2352_v43  ;;  %3517 = vmatpush3.bf16.msra.mxu0 %v3856_v6 }
 0xe13   : > { %3559 = vmatprep.subr.msk.bf16.mxu1 %vm1730_vm4, %v2400_v24  ;;  %3518 = vmatprep.subr.bf16.mxu0 %v3857_v7  ;;  %v3261_v24 = vld [vmem:[#allocation22] ss:$0 sm:$0xff] }
 0xe14   : > { %v3935_v42 = vpop.eup %3934 }
 0xe15   : > { %v2300_v21 = vmul.f32 %v3935_v42, %v3927_v47 }
 0xe16   : > { %3519 = vmatpush3.bf16.msra.mxu0 %v3857_v7 }
 0xe18   : > { %v3937_v20 = vpop.eup %3936 }
 0xe19   : > { %v2301_v22 = vmul.f32 %v3937_v20, %v3929_v54 }
 0xe1b   : > { %v2303_v23 = vpack.c.bf16 %v2301_v22, %v2300_v21 }
 0xe1d   : > { %3507 = vmatmul.mubr.msk.bf16.vlgmr.msra.gmra.mrb[40].mxu1 %vm1331_vm3, %v2303_v23 }
 0xe1e   : > { %3511 = vmatpush3.bf16.msra.mxu1 %v2408_v25 }
 0xee4   : > { %v2344_v26 = vpop.f32.mrb[32].mxu0 }
 0xee5   : > { %v3502_v28 = vpop.f32.mrb[33].mxu0 }
 0xee6   : > { %v2347_v31 = vpop.f32.mrb[34].mxu0 }
 0xee7   : > { %v2398_v34 = vpack.c.bf16 %v2347_v31, %v2344_v26  ;;  %v3503_v38 = vpop.f32.mrb[35].mxu0 }
 0xee8   : > { %v3262_v38 = vld [vmem:[#allocation23] ss:$0 sm:$0xff] }
 0xee9   : > { %3512 = vmatprep.mubr.msk.bf16.mxu1 %vm1232_vm2, %v2398_v34 }
 0xef0   : > { %v2391_v39 = vpop.f32.mrb[40].mxu1 }
 0xef1   : > { %v3508_v40 = vpop.f32.mrb[41].mxu1 }
 0xef2   : > { %v2394_v41 = vpop.f32.mrb[42].mxu1 }
 0xef3   : > { %v2399_v44 = vpack.c.bf16 %v2394_v41, %v2391_v39  ;;  %v3509_v45 = vpop.f32.mrb[43].mxu1 }
 0xef5   : > { %3513 = vmatmul.mubr.msk.bf16.vlgmr.msra.gmra.mrb[28].mxu1 %vm1232_vm2, %v2399_v44 }
 0xfc8   : > { %v3514_v46 = vpop.f32.mrb[28].mxu1 }
 0xfc9   : > { %v2444_v49 = vpop.f32.mrb[29].mxu1  ;;  %v2465_v50 = vadd.f32 %v3514_v46, %v5464_v3 }
 0xfca   : > { %v2463_v51 = vadd.f32 %v5462_v2, %v2444_v49  ;;  %v3515_v52 = vpop.f32.mrb[30].mxu1 }
 0xfcb   : > { %v2447_v16 = vpop.f32.mrb[31].mxu1  ;;  %v2466_v55 = vadd.f32 %v3515_v52, %v5468_v5  ;;  %v5727_v15 = vadd.f32 %v3260_v48, %v2465_v50 }
 0xfcc   : > { %v5723_v53 = vadd.f32 %v3260_v48, %v2463_v51  ;;  %v2464_v56 = vadd.f32 %v5466_v4, %v2447_v16 }
 0xfcd   : > { %v5733_v29 = vadd.f32 %v3260_v48, %v2466_v55  ;;  %v2484_v3 = vsel %vm914_vm0, %v5727_v15, 0.0  ;;  %v3858_v55 = vld [vmem:[#allocation27] sm:$0xff]  }
 0xfce   : > { %v5729_v18 = vadd.f32 %v3260_v48, %v2464_v56  ;;  %v2478_v19 = vsel %vm914_vm0, %v5723_v53, 0.0  ;;  %3524 = vmatprep.subr.bf16.mxu0 %v3858_v55  ;;  %v3859_v56 = vld [vmem:[#allocation27 + $0x8] sm:$0xff]  }
 0xfcf   : > { %2479 = vadd.xlane.f32.xlu1 %v2478_v19  ;;  %v2487_v4 = vsel %vm914_vm0, %v5733_v29, 0.0  ;;  %v3860_v19 = vld [vmem:[#allocation27 + $0x10] sm:$0xff]  }
 0xfd0   : > { %v2481_v2 = vsel %vm914_vm0, %v5729_v18, 0.0 }
 0xfd1   : > { %2482 = vadd.xlane.f32.xlu0 %v2481_v2  ;;  %v3861_v2 = vld [vmem:[#allocation27 + $0x18] sm:$0xff]  }
 0xfd3   : > { %2485 = vadd.xlane.f32.xlu1 %v2484_v3  ;;  %v3862_v3 = vld [vmem:[#allocation27 + $0x20] sm:$0xff]  }
 0xfd5   : > { %2488 = vadd.xlane.f32.xlu0 %v2487_v4  ;;  %v3863_v4 = vld [vmem:[#allocation27 + $0x28] sm:$0xff]  }
0x105c   : > { %v2480_v5 = vpop.xlane.xlu1 %2479 }
0x105d   : > { %v2490_v8 = vmul.f32 0.03125, %v2480_v5  ;;  %v3864_v5 = vld [vmem:[#allocation27 + $0x30] sm:$0xff]  }
0x105e   : > { %v2483_v30 = vpop.xlane.xlu0 %2482 }
0x105f   : > { %v2494_v33 = vsub.f32 %v5723_v53, %v2490_v8  ;;  %v2491_v35 = vmul.f32 0.03125, %v2483_v30  ;;  %v3865_v8 = vld [vmem:[#allocation27 + $0x38] sm:$0xff]  }
0x1060   : > { %v2486_v36 = vpop.xlane.xlu1 %2485  ;;  %v3263_v30 = vld [vmem:[#allocation25] ss:$0 sm:$0xff] }
0x1061   : > { %v2495_v58 = vsub.f32 %v5729_v18, %v2491_v35  ;;  %v2492_v60 = vmul.f32 0.03125, %v2486_v36  ;;  %v2498_v61 = vmul.f32 %v2494_v33, %v2494_v33 }
0x1062   : > { %v2489_v27 = vpop.xlane.xlu0 %2488 }
0x1063   : > { %v2496_v32 = vsub.f32 %v5727_v15, %v2492_v60  ;;  %v2493_v37 = vmul.f32 0.03125, %v2489_v27  ;;  %v2502_v57 = vsel %vm914_vm0, %v2498_v61, 0.0  ;;  %v2499_v59 = vmul.f32 %v2495_v58, %v2495_v58 }
0x1064   : > { %2503 = vadd.xlane.f32.xlu1 %v2502_v57 }
0x1065   : > { %v2497_v62 = vsub.f32 %v5733_v29, %v2493_v37  ;;  %v2505_v47 = vsel %vm914_vm0, %v2499_v59, 0.0  ;;  %v2500_v63 = vmul.f32 %v2496_v32, %v2496_v32 }
0x1066   : > { %2506 = vadd.xlane.f32.xlu0 %v2505_v47 }
0x1067   : > { %v2508_v54 = vsel %vm914_vm0, %v2500_v63, 0.0  ;;  %v2501_v0 = vmul.f32 %v2497_v62, %v2497_v62 }
0x1068   : > { %2509 = vadd.xlane.f32.xlu1 %v2508_v54 }
0x1069   : > { %v2511_v1 = vsel %vm914_vm0, %v2501_v0, 0.0 }
0x106a   : > { %2512 = vadd.xlane.f32.xlu0 %v2511_v1 }
0x10f1   : > { %v2504_v9 = vpop.xlane.xlu1 %2503 }
0x10f2   : > { %v2514_v10 = vmul.f32 0.03125, %v2504_v9 }
0x10f3   : > { %v2507_v11 = vpop.xlane.xlu0 %2506 }
0x10f4   : > { %v2518_v12 = vadd.f32 1e-05, %v2514_v10  ;;  %v2515_v13 = vmul.f32 0.03125, %v2507_v11 }
0x10f5   : > { %v2510_v14 = vpop.xlane.xlu1 %2509 }
0x10f6   : > { %3938 = vrsqrt.f32 %v2518_v12  ;;  %v2519_v17 = vadd.f32 1e-05, %v2515_v13  ;;  %v2516_v43 = vmul.f32 0.03125, %v2510_v14 }
0x10f7   : > { %v2513_v42 = vpop.xlane.xlu0 %2512 }
0x10f8   : > { %3940 = vrsqrt.f32 %v2519_v17  ;;  %v2520_v20 = vadd.f32 1e-05, %v2516_v43  ;;  %v2517_v21 = vmul.f32 0.03125, %v2513_v42 }
0x10fa   : > { %3942 = vrsqrt.f32 %v2520_v20  ;;  %v2521_v22 = vadd.f32 1e-05, %v2517_v21 }
0x10fc   : > { %3944 = vrsqrt.f32 %v2521_v22 }
0x1100   : > { %v3939_v23 = vpop.eup %3938 }
0x1101   : > { %v2526_v25 = vmul.f32 %v3939_v23, %v2494_v33 }
0x1102   : > { %v3941_v26 = vpop.eup %3940 }
0x1103   : > { %v2527_v28 = vmul.f32 %v3941_v26, %v2495_v58  ;;  %v2537_v31 = vmul.f32 %v3261_v24, %v2526_v25 }
0x1104   : > { %v3943_v34 = vpop.eup %3942 }
0x1105   : > { %v2528_v39 = vmul.f32 %v3943_v34, %v2496_v32  ;;  %v2538_v40 = vmul.f32 %v3261_v24, %v2527_v28  ;;  %v2548_v46 = vadd.f32 %v3262_v38, %v2537_v31 }
0x1106   : > { %v3945_v41 = vpop.eup %3944 }
0x1107   : > { %v2539_v44 = vmul.f32 %v3261_v24, %v2528_v39  ;;  %v2529_v45 = vmul.f32 %v3945_v41, %v2497_v62  ;;  %v2549_v48 = vadd.f32 %v3262_v38, %v2538_v40 }
0x1109   : > { %v2540_v49 = vmul.f32 %v3261_v24, %v2529_v45  ;;  %v2552_v50 = vpack.c.bf16 %v2549_v48, %v2548_v46  ;;  %v2550_v51 = vadd.f32 %v3262_v38, %v2539_v44 }
0x110b   : > { %3520 = vmatprep.mubr.msk.bf16.mxu0 %vm914_vm0, %v2552_v50  ;;  %v2551_v52 = vadd.f32 %v3262_v38, %v2540_v49 }
0x110d   : > { %v2553_v16 = vpack.c.bf16 %v2551_v52, %v2550_v51 }
0x110f   : > { %3521 = vmatmul.mubr.msk.bf16.vlgmr.msra.gmra.mrb[36].mxu0 %vm914_vm0, %v2553_v16 }
0x1110   : > { %3525 = vmatpush3.bf16.msra.mxu0 %v3858_v55 }
0x1111   : > { %3526 = vmatprep.subr.bf16.mxu0 %v3859_v56 }
0x1114   : > { %3527 = vmatpush3.bf16.msra.mxu0 %v3859_v56 }
0x1115   : > { %3528 = vmatprep.subr.bf16.mxu0 %v3860_v19 }
0x1118   : > { %3529 = vmatpush3.bf16.msra.mxu0 %v3860_v19 }
0x1119   : > { %3530 = vmatprep.subr.bf16.mxu0 %v3861_v2 }
0x111c   : > { %3531 = vmatpush3.bf16.msra.mxu0 %v3861_v2 }
0x111d   : > { %3532 = vmatprep.subr.bf16.mxu0 %v3862_v3 }
0x1120   : > { %3533 = vmatpush3.bf16.msra.mxu0 %v3862_v3 }
0x1121   : > { %3534 = vmatprep.subr.bf16.mxu0 %v3863_v4 }
0x1124   : > { %3535 = vmatpush3.bf16.msra.mxu0 %v3863_v4 }
0x1125   : > { %3536 = vmatprep.subr.bf16.mxu0 %v3864_v5 }
0x1128   : > { %3537 = vmatpush3.bf16.msra.mxu0 %v3864_v5 }
0x1129   : > { %3538 = vmatprep.subr.bf16.mxu0 %v3865_v8 }
0x112c   : > { %3539 = vmatpush3.bf16.msra.mxu0 %v3865_v8 }
0x11e2   : > { %v3522_v33 = vpop.f32.mrb[36].mxu0 }
0x11e3   : > { %v5751_v35 = vadd.f32 %v3522_v33, %v3263_v30  ;;  %v2617_v36 = vpop.f32.mrb[37].mxu0 }
0x11e4   : > { %v5753_v58 = vadd.f32 %v3263_v30, %v2617_v36  ;;  %v3523_v60 = vpop.f32.mrb[38].mxu0 }
0x11e5   : > { %v5756_v61 = vmul.f32 0.70710677, %v5751_v35  ;;  %v5758_v27 = vadd.f32 %v3523_v60, %v3263_v30  ;;  %v2620_v32 = vpop.f32.mrb[39].mxu0 }
0x11e6   : > { %v5761_v37 = vmul.f32 0.70710677, %v5753_v58  ;;  %v5767_v62 = vadd.f32 %v3263_v30, %v2620_v32 }
0x11e7   : > { %v2650_v57 = vand.u32 2147483647, %v5756_v61  ;;  %v5765_v59 = vmul.f32 0.70710677, %v5758_v27  ;;  %vm2642_vm5 = vcmp.ge.f32.partialorder %v5756_v61, 0.0 }
0x11e8   : > { %v2648_v47 = vand.u32 2147483647, %v5761_v37  ;;  %v5772_v6 = vmul.f32 0.70710677, %v5767_v62  ;;  %vm2640_vm6 = vcmp.ge.f32.partialorder %v5761_v37, 0.0 }
0x11e9   : > { %v2654_v63 = vmul.f32 0.3275911, %v2650_v57  ;;  %v2651_v0 = vand.u32 2147483647, %v5765_v59  ;;  %v2702_v14 = vsub.f32 0.0, %v2650_v57  ;;  %vm2643_vm7 = vcmp.ge.f32.partialorder %v5765_v59, 0.0 }
0x11ea   : > { %v2652_v54 = vmul.f32 0.3275911, %v2648_v47  ;;  %v2649_v10 = vand.u32 2147483647, %v5772_v6  ;;  %v2700_v17 = vsub.f32 0.0, %v2648_v47  ;;  %vm2641_vm8 = vcmp.ge.f32.partialorder %v5772_v6, 0.0 }
0x11eb   : > { %v2658_v1 = vadd.f32 1.0, %v2654_v63  ;;  %v2655_v9 = vmul.f32 0.3275911, %v2651_v0  ;;  %v2706_v42 = vmul.f32 %v2702_v14, %v2650_v57  ;;  %v2703_v20 = vsub.f32 0.0, %v2651_v0 }
0x11ec   : > { %v2656_v7 = vadd.f32 1.0, %v2652_v54  ;;  %v2653_v12 = vmul.f32 0.3275911, %v2649_v10  ;;  %v2704_v23 = vmul.f32 %v2700_v17, %v2648_v47  ;;  %v2701_v25 = vsub.f32 0.0, %v2649_v10 }
0x11ed   : > { %3946 = vrcp.f32 %v2658_v1  ;;  %v2659_v11 = vadd.f32 1.0, %v2655_v9  ;;  %v2712_v31 = vmul.f32 1.442695, %v2706_v42  ;;  %v2707_v38 = vmul.f32 %v2703_v20, %v2651_v0 }
0x11ee   : > { %3948 = vrcp.f32 %v2656_v7  ;;  %v2657_v13 = vadd.f32 1.0, %v2653_v12  ;;  %v2708_v40 = vmul.f32 1.442695, %v2704_v23  ;;  %v2705_v46 = vmul.f32 %v2701_v25, %v2649_v10 }
0x11ef   : > { %3950 = vrcp.f32 %v2659_v11  ;;  %v2714_v52 = vmul.f32 1.442695, %v2707_v38  ;;  %v4702_v23 = vmov -1.0   ;;  %v2635_v59 = vmul.f32 0.5, %v5758_v27 }
0x11f0   : > { %3952 = vrcp.f32 %v2657_v13  ;;  %v2710_v2 = vmul.f32 1.442695, %v2705_v46  ;;  %v2644_v61 = vsel %vm2640_vm6, 1.0, %v4702_v23  ;;  %v2645_v46 = vsel %vm2641_vm8, 1.0, %v4702_v23 }
0x11f1   : > { %3954 = vpow2.f32 %v2712_v31  ;;  %v2633_v6 = vmul.f32 0.5, %v5767_v62 }
0x11f2   : > { %3956 = vpow2.f32 %v2708_v40  ;;  %v2647_v40 = vsel %vm2643_vm7, 1.0, %v4702_v23 }
0x11f3   : > { %3958 = vpow2.f32 %v2714_v52 }
0x11f4   : > { %3960 = vpow2.f32 %v2710_v2  ;;  %v3268_v2 = vld [vmem:[#allocation28] ss:$0 sm:$0xff] }
0x11f7   : > { %v3947_v43 = vpop.eup %3946 }
0x11f8   : > { %v3949_v21 = vpop.eup %3948  ;;  %v2666_v22 = vmul.f32 1.0614054, %v3947_v43 }
0x11f9   : > { %v2664_v24 = vmul.f32 1.0614054, %v3949_v21  ;;  %v3951_v28 = vpop.eup %3950 }
0x11fa   : > { %v2670_v26 = vadd.f32 -1.4531521, %v2666_v22  ;;  %v2667_v41 = vmul.f32 1.0614054, %v3951_v28  ;;  %v3953_v44 = vpop.eup %3952 }
0x11fb   : > { %v2668_v34 = vadd.f32 -1.4531521, %v2664_v24  ;;  %v2665_v50 = vmul.f32 1.0614054, %v3953_v44  ;;  %v3955_v7 = vpop.eup %3954  ;;  %v2646_v24 = vsel %vm2642_vm5, 1.0, %v4702_v23 }
0x11fc   : > { %v2674_v39 = vmul.f32 %v3947_v43, %v2670_v26  ;;  %v2671_v49 = vadd.f32 -1.4531521, %v2667_v41  ;;  %v3957_v10 = vpop.eup %3956 }
0x11fd   : > { %v2672_v45 = vmul.f32 %v3949_v21, %v2668_v34  ;;  %v2669_v56 = vadd.f32 -1.4531521, %v2665_v50  ;;  %v3959_v22 = vpop.eup %3958  ;;  %v2632_v50 = vmul.f32 0.5, %v5753_v58 }
0x11fe   : > { %v2678_v48 = vadd.f32 1.4214138, %v2674_v39  ;;  %v2675_v55 = vmul.f32 %v3951_v28, %v2671_v49  ;;  %v3961_v31 = vpop.eup %3960 }
0x11ff   : > { %v2676_v51 = vadd.f32 1.4214138, %v2672_v45  ;;  %v2673_v5 = vmul.f32 %v3953_v44, %v2669_v56  ;;  %v2634_v45 = vmul.f32 0.5, %v5751_v35 }
0x1200   : > { %v2682_v16 = vmul.f32 %v3947_v43, %v2678_v48  ;;  %v2679_v4 = vadd.f32 1.4214138, %v2675_v55 }
0x1201   : > { %v2680_v19 = vmul.f32 %v3949_v21, %v2676_v51  ;;  %v2677_v36 = vadd.f32 1.4214138, %v2673_v5 }
0x1202   : > { %v2686_v3 = vadd.f32 -0.28449672, %v2682_v16  ;;  %v2683_v33 = vmul.f32 %v3951_v28, %v2679_v4 }
0x1203   : > { %v2684_v8 = vadd.f32 -0.28449672, %v2680_v19  ;;  %v2681_v47 = vmul.f32 %v3953_v44, %v2677_v36 }
0x1204   : > { %v2690_v30 = vmul.f32 %v3947_v43, %v2686_v3  ;;  %v2687_v57 = vadd.f32 -0.28449672, %v2683_v33 }
0x1205   : > { %v2688_v60 = vmul.f32 %v3949_v21, %v2684_v8  ;;  %v2685_v1 = vadd.f32 -0.28449672, %v2681_v47 }
0x1206   : > { %v2694_v32 = vadd.f32 0.2548296, %v2690_v30  ;;  %v2691_v0 = vmul.f32 %v3951_v28, %v2687_v57 }
0x1207   : > { %v2692_v63 = vadd.f32 0.2548296, %v2688_v60  ;;  %v2689_v13 = vmul.f32 %v3953_v44, %v2685_v1 }
0x1208   : > { %v2698_v54 = vmul.f32 %v3947_v43, %v2694_v32  ;;  %v2695_v12 = vadd.f32 0.2548296, %v2691_v0 }
0x1209   : > { %v2696_v9 = vmul.f32 %v3949_v21, %v2692_v63  ;;  %v2693_v20 = vadd.f32 0.2548296, %v2689_v13 }
0x120a   : > { %v2718_v11 = vmul.f32 %v3955_v7, %v2698_v54  ;;  %v2699_v42 = vmul.f32 %v3951_v28, %v2695_v12 }
0x120b   : > { %v2716_v14 = vmul.f32 %v3957_v10, %v2696_v9  ;;  %v2697_v26 = vmul.f32 %v3953_v44, %v2693_v20 }
0x120c   : > { %v2722_v17 = vsub.f32 1.0, %v2718_v11  ;;  %v2719_v21 = vmul.f32 %v3959_v22, %v2699_v42 }
0x120d   : > { %v2720_v43 = vsub.f32 1.0, %v2716_v14  ;;  %v2717_v39 = vmul.f32 %v3961_v31, %v2697_v26 }
0x120e   : > { %v2726_v25 = vmul.f32 %v2722_v17, %v2646_v24  ;;  %v2723_v38 = vsub.f32 1.0, %v2719_v21 }
0x120f   : > { %v2724_v34 = vmul.f32 %v2720_v43, %v2644_v61  ;;  %v2721_v41 = vsub.f32 1.0, %v2717_v39 }
0x1210   : > { %v2730_v37 = vadd.f32 1.0, %v2726_v25  ;;  %v2727_v28 = vmul.f32 %v2723_v38, %v2647_v40 }
0x1211   : > { %v2728_v48 = vadd.f32 1.0, %v2724_v34  ;;  %v2725_v49 = vmul.f32 %v2721_v41, %v2645_v46 }
0x1212   : > { %v2731_v44 = vadd.f32 1.0, %v2727_v28  ;;  %v2734_v51 = vmul.f32 %v2730_v37, %v2634_v45 }
0x1213   : > { %v2729_v16 = vadd.f32 1.0, %v2725_v49  ;;  %v2732_v55 = vmul.f32 %v2728_v48, %v2632_v50 }
0x1214   : > { %v2735_v52 = vmul.f32 %v2731_v44, %v2635_v59 }
0x1215   : > { %v2733_v19 = vmul.f32 %v2729_v16, %v2633_v6 }
0x1216   : > { %v2737_v56 = vpack.c.bf16 %v2735_v52, %v2734_v51 }
0x1217   : > { %v2736_v35 = vpack.c.bf16 %v2733_v19, %v2732_v55 }
0x1219   : > { %3540 = vmatprep.mubr.bf16.mxu0 %v2736_v35 }
0x121a   : > { %3541 = vmatmul.mubr.bf16.vlgmr.msra.gmra.mrb[40].mxu0 %v2737_v56 }
0x12ed   : > { %v3542_v27 = vpop.f32.mrb[40].mxu0 }
0x12ee   : > { %v2852_v3 = vadd.f32 %v3542_v27, %v3268_v2  ;;  %v2843_v4 = vpop.f32.mrb[41].mxu0 }
0x12ef   : > { %v2844_v5 = vadd.f32 %v3268_v2, %v2843_v4  ;;  %v3543_v58 = vpop.f32.mrb[42].mxu0 }
0x12f0   : > { %v2860_v8 = vadd.f32 %v2852_v3, %v5727_v15  ;;  %v2855_v62 = vadd.f32 %v3543_v58, %v3268_v2  ;;  %v2846_v30 = vpop.f32.mrb[43].mxu0 }
0x12f1   : > { %v2858_v33 = vadd.f32 %v2844_v5, %v5723_v53  ;;  %v2847_v36 = vadd.f32 %v3268_v2, %v2846_v30 }
0x12f2   : > { %v3291_v60 = vpack.c.bf16 %v2860_v8, %v2860_v8  ;;  %v2861_v32 = vadd.f32 %v2855_v62, %v5733_v29 }
0x12f3   : > { %v3289_v57 = vpack.c.bf16 %v2858_v33, %v2858_v33  ;;  %v2859_v15 = vadd.f32 %v2847_v36, %v5729_v18 }
0x12f4   : > { %2881 = vst.msk [vmem:[%s901_s7 + $0x8] sm:$0xf] %vm2878_vm9, %v3291_v60  ;;  %v3292_v47 = vpack.c.bf16 %v2861_v32, %v2861_v32 }
0x12f5   : > { %2879 = vst.msk [vmem:[%s901_s7] sm:$0xf] %vm2878_vm9, %v3289_v57  ;;  %v3290_v63 = vpack.c.bf16 %v2859_v15, %v2859_v15 }
0x12f6   : > { %2882 = vst.msk [vmem:[%s901_s7 + $0xc] sm:$0xf] %vm2878_vm9, %v3292_v47 }
0x12f7   : > { %2880 = vst.msk [vmem:[%s901_s7 + $0x4] sm:$0xf] %vm2878_vm9, %v3290_v63 }
0x12f8   : > { %4511 = shalt.err (!%p4508_p4)
}
0x12f9   : > { %s4512_s19 = scalar_lea.hbm %s5795_s6, 256  ;;  %s4516_s8 = scalar_lea.hbm %s6022_s10, 1024 }
0x12fa   : > { %p4513_p1 = scmp.ne.s32.totalorder %s5795_s6, %s4512_s19  ;;  %p4517_p2 = scmp.lt.u32.totalorder %s5795_s6, %s6022_s10 }
0x12fb   : > { %p4518_p10 = scmp.lt.u32.totalorder %s4516_s8, %s4512_s19  ;;  %p4520_p5 = scmp.lt.u32.totalorder %s4512_s19, %s5795_s6 }
0x12fc   : > { %p4514_p9 = pnand %p4513_p1, %p6023_p3 }
0x12fd   : > { %p4519_p7 = por %p4518_p10, %p4517_p2 }
0x12fe   : > { %p4515_p6 = pneg %p4514_p9 }
0x12ff   : > { %p4521_p12 = por %p4520_p5, %p4519_p7 }
0x1301   : > { %p4522_p0 = pnand %p4521_p12, %p4515_p6 }
0x1303   : > { %4525 = shalt.err (!%p4522_p0)
}
0x1304   : > { %s4704_s7 = smov 64   ;;  %s4705_s5 = smov 4  }
0x1305   : > { %3632 = dma.vmem_to_hbm [thread:$0]  (%p6023_p3), %s5789_s18, 256, %s5795_s6, %s5799_s25, %s4704_s7, %s4704_s7, %s4705_s5  }
0x1306 PF: > { %p3732_p11 = scmp.ge.s32.totalorder %s4672_s3, 2  ;;  %s2914_s17 = sand.u32 1, %s4644_s21  }
0x1307   : > { %p6024_p13 = scmp.ne.s32.totalorder %s5967_s29, 0  ;;  %s2915_s27 = scalar_lea.sflag [#allocation4], %s2914_s17 }
0x1309   : > { %p3694_p8 = pnand %p3732_p11, %p6024_p13 }
0x130b   : > { %4627 = dma.done.wait (!%p3694_p8), %s2915_s27, 256  }
0x130c   : > { %4629 = vsyncadd (!%p3694_p8), %s2915_s27, 4294967040  ;;  %s42_s3 = sadd.s32 1, %s4672_s3   ;;  %s6025_s0 = sld [smem:[#allocation47_spill]] }
0x130d   : > { %p39_p4 = scmp.ge.s32.totalorder %s42_s3, 6   ;;  %s6026_s30 = sld [smem:[#allocation48_spill]] }
0x130e   : > { %s6027_s23 = sld [smem:[#allocation51_spill]]  ;;  %s6028_s18 = sld [smem:[#allocation53_spill]] }
0x130f   : > { %s6029_s25 = sld [smem:[#allocation54_spill]]  ;;  %s6030_s20 = smov %s5334_s2 }
0x1310   : > { %s6031_s21 = smov %s4648_s1  ;;  %s6032_s1 = smov %s4652_s22 }
0x1311   : > { %s6033_s22 = smov %s5139_s12  ;;  %s6034_s2 = smov %s4664_s24 }
0x1312   :  { %41 = sbr.rel (!%p39_p4) target bundleno = 37 (0x25), region = 220 }
0x1314   : > { %s6035_s24 = smov %s6028_s18 }
0x1319   :  { %2920 = vsyncpa [#allocation3], 1 }
0x131a   :  { %2922 = vsyncpa [#allocation3 + $0x1], 1 }
0x131b   :  { %2923 = vsyncpa [#allocation6], 1 }
0x131c   :  { %2924 = vsyncpa [#allocation9], 1 }
0x131d   :  { %2925 = vsyncpa [#allocation12], 1 }
0x131e   :  { %2926 = vsyncpa [#allocation15], 1 }
0x131f   :  { %2927 = vsyncpa [#allocation18], 1 }
0x1320   :  { %2928 = vsyncpa [#allocation26], 1 }
0x1321   :  { %2929 = vsyncpa [#allocation29], 1 }
0x1322   :  { %2930 = vsyncpa [#allocation4], 1 }
0x1323   :  { %2932 = vsyncpa [#allocation4 + $0x1], 1 }

</bundles_post_ra>
